<compile_context>
chip_gen: v7x
topology: tpu7x:2x2x1
jax: 0.10.0
libtpu: 0.0.40
codegen_flags: <defaults>
</compile_context>

<pallas_src>
import functools

import jax
import jax.numpy as jnp
import numpy as np
from jax.experimental import pallas as pl
from jax.experimental.pallas import tpu as pltpu

BN_EPS = 1e-5
CONV_WIDTH = 128          # conv output channels zero-padded 64 -> 128 (lane-dense)


def _round_up(x, m):
    return (x + m - 1) // m * m


# ---------------------------------------------------------------------------
# Single fused kernel: conv0 -> conv1 -> conv2 -> masked segmented max ->
# dense head -> sigmoid.  One grid step processes `bc` batch elements stacked
# along the matmul M dimension; every intermediate stays on-chip.
# ---------------------------------------------------------------------------
def fused_forward_kernel(x_ref, w0_ref, w1_ref, w2_ref, wd0_ref, wd1_ref,
                         aux_ref, o_ref, *, bc, lr, l_valid):
    """x_ref:   (1, Rx, Cin_pad)   raw input rows (bc*lr valid + zero tail pad)
    w0_ref:  (K0, Cin_pad, 128)  conv0 taps (BN scale folded, channels padded)
    w1_ref:  (3, 128, 128)       conv1 taps (BN folded, padded)
    w2_ref:  (3, 128, 128)       conv2 taps (BN folded, padded)
    wd0_ref: (128, 256)          dense0 weight (transposed, BN folded, rows padded)
    wd1_ref: (256, 256)          dense1 weight (transposed, BN folded)
    aux_ref: (8, 256)            rows: conv0/1/2 bias, dense0/1 bias,
                                 final 256->1 weight row, [final bias, 0...], 0
    o_ref:   (1, bc, 128)        sigmoid output broadcast across lanes
    """
    k0, _, cp = w0_ref.shape
    m = bc * lr                # rows kept per chunk through the conv stack
    m1 = m + 8                 # conv1 rows (needs >= m + 2), 8-aligned
    m0 = m1 + 8                # conv0 rows (needs >= m1 + 2), 8-aligned

    # ---- conv0 (K=25) + folded BN + ReLU: K accumulating MXU dots ----------
    acc = jnp.dot(x_ref[0, 0:m0, :], w0_ref[0],
                  preferred_element_type=jnp.float32)
    for k in range(1, k0):
        acc = acc + jnp.dot(x_ref[0, k:k + m0, :], w0_ref[k],
                            preferred_element_type=jnp.float32)
    h = jnp.maximum(acc + aux_ref[0:1, 0:cp], 0.0)                  # (m0, cp)

    # ---- conv1 / conv2 (K=3): 3 accumulating contraction-128 dots ----------
    def conv3(h_in, w_ref, b_row, m_out):
        a = jnp.dot(h_in[0:m_out, :], w_ref[0],
                    preferred_element_type=jnp.float32)
        a = a + jnp.dot(h_in[1:m_out + 1, :], w_ref[1],
                        preferred_element_type=jnp.float32)
        a = a + jnp.dot(h_in[2:m_out + 2, :], w_ref[2],
                        preferred_element_type=jnp.float32)
        return jnp.maximum(a + b_row, 0.0)

    h = conv3(h, w1_ref, aux_ref[1:2, 0:cp], m1)                    # (m1, cp)
    h = conv3(h, w2_ref, aux_ref[2:3, 0:cp], m)                     # (m,  cp)

    # ---- mask invalid rows (l >= l_valid per segment), segmented max pool ---
    h3 = h.reshape(bc, lr, cp)
    l_idx = jax.lax.broadcasted_iota(jnp.int32, (bc, lr, cp), 1)
    h3 = jnp.where(l_idx < l_valid, h3, 0.0)    # ReLU outputs >= 0 -> 0 is safe
    f = jnp.max(h3, axis=1)                                         # (bc, cp)

    # ---- dense head: (Linear + folded BN + ReLU) x2 -------------------------
    d = jnp.maximum(jnp.dot(f, wd0_ref[...], preferred_element_type=jnp.float32)
                    + aux_ref[3:4, :], 0.0)                         # (bc, 256)
    d = jnp.maximum(jnp.dot(d, wd1_ref[...], preferred_element_type=jnp.float32)
                    + aux_ref[4:5, :], 0.0)                         # (bc, 256)

    # ---- final (256 -> 1) linear as VPU mul + lane reduce, then sigmoid -----
    z = jnp.sum(d * aux_ref[5:6, :], axis=-1, keepdims=True) + aux_ref[6:7, 0:1]
    y = 1.0 / (1.0 + jnp.exp(-z))                                   # (bc, 1)
    o_ref[0] = jnp.broadcast_to(y, (bc, 128))


# ---------------------------------------------------------------------------
# Pallas wrapper (single pallas_call for the whole forward)
# ---------------------------------------------------------------------------
@jax.jit
def model_forward_pallas(x_ncl, prepped):
    """x_ncl: (B, C_in, L) float32, PyTorch NCL layout."""
    B, C_in, L = x_ncl.shape
    k0, cin_pad, _ = prepped["w0"].shape
    l_valid = L - (k0 - 1) - 4            # rows surviving conv0 + two K=3 convs
    assert l_valid >= 1, "sequence too short for the conv stack"

    lr = _round_up(L, 8)                  # rows kept per batch element
    # Chunking: fill ~256 MXU rows per step, but keep >= 2 "parallel" grid
    # steps when B >= 2 so v7x can shard chunks across its two TensorCores.
    bc = max(1, min(B, 256 // lr))
    n_chunks = pl.cdiv(B, bc)
    if n_chunks < 2 and B > 1:
        bc = pl.cdiv(B, 2)
        n_chunks = pl.cdiv(B, bc)
    b_pad = n_chunks * bc

    m = bc * lr
    rx = m + 16 + _round_up(k0 - 1, 8)    # rows of input needed by the conv stack

    # (B, C, L) -> (B, L, C): cheap layout change; NO im2col gather (the K=25
    # windows are built in-kernel from static sublane slices).
    x_nlc = jnp.transpose(x_ncl, (0, 2, 1)).astype(jnp.float32)
    xb = jnp.zeros((b_pad, lr, cin_pad), jnp.float32)
    xb = xb.at[:B, :L, :C_in].set(x_nlc)
    xb = xb.reshape(n_chunks, m, cin_pad)
    xb = jnp.pad(xb, ((0, 0), (0, rx - m), (0, 0)))

    kernel = functools.partial(fused_forward_kernel, bc=bc, lr=lr, l_valid=l_valid)

    def full_spec(a):
        nd = a.ndim

        def imap(i):
            return (0,) * nd

        return pl.BlockSpec(a.shape, imap)

    out = pl.pallas_call(
        kernel,
        out_shape=jax.ShapeDtypeStruct((n_chunks, bc, 128), jnp.float32),
        grid=(n_chunks,),
        in_specs=[pl.BlockSpec((1, rx, cin_pad), lambda i: (i, 0, 0)),
                  full_spec(prepped["w0"]), full_spec(prepped["w1"]),
                  full_spec(prepped["w2"]), full_spec(prepped["wd0"]),
                  full_spec(prepped["wd1"]), full_spec(prepped["aux"])],
        out_specs=pl.BlockSpec((1, bc, 128), lambda i: (i, 0, 0)),
        compiler_params=pltpu.CompilerParams(dimension_semantics=("parallel",)),
    )(xb, prepped["w0"], prepped["w1"], prepped["w2"],
      prepped["wd0"], prepped["wd1"], prepped["aux"])

    return out.reshape(b_pad, 128)[:B, :1]                          # (B, 1)


# ---------------------------------------------------------------------------
# Parameter setup (deterministic, PyTorch-shaped), BN folding / repacking
# ---------------------------------------------------------------------------
def make_params(key, in_channels=4, num_filters=64, filter_length=25,
                num_dense_neurons=256, num_classes=1):
    ks = iter(jax.random.split(key, 64))
    nrm = lambda shape, s=0.1: (s * jax.random.normal(next(ks), shape)).astype(jnp.float32)
    uni = lambda shape: jax.random.uniform(next(ks), shape, jnp.float32, 0.5, 1.5)

    def conv_block(c_in, c_out, k):
        return dict(W=nrm((c_out, c_in, k)), b=nrm((c_out,)),
                    gamma=uni((c_out,)), beta=nrm((c_out,)),
                    mean=nrm((c_out,)), var=uni((c_out,)))

    def dense_block(n_in, n_out):
        return dict(W=nrm((n_out, n_in)), b=nrm((n_out,)),
                    gamma=uni((n_out,)), beta=nrm((n_out,)),
                    mean=nrm((n_out,)), var=uni((n_out,)))

    return dict(
        conv0=conv_block(in_channels, num_filters, filter_length),
        conv1=conv_block(num_filters, num_filters, 3),
        conv2=conv_block(num_filters, num_filters, 3),
        dense0=dense_block(num_filters, num_dense_neurons),
        dense1=dense_block(num_dense_neurons, num_dense_neurons),
        pred=dict(W=nrm((num_classes, num_dense_neurons)), b=nrm((num_classes,))),
    )


def prepare_params(p):
    """Fold eval-mode BatchNorm into the weights and repack/pad them ONCE
    (hoisted out of the forward path)."""
    def fold(c):
        scale = c["gamma"] / jnp.sqrt(c["var"] + BN_EPS)
        bias = (c["b"] - c["mean"]) * scale + c["beta"]
        return scale, bias

    def conv_pack(c, cin_to):
        c_out, c_in, _ = c["W"].shape
        scale, bias = fold(c)
        # (C_out, C_in, K) -> (K, C_in, C_out); BN scale folded into C_out cols.
        w = jnp.transpose(c["W"], (2, 1, 0)) * scale[None, None, :]
        w = jnp.pad(w, ((0, 0), (0, cin_to - c_in), (0, CONV_WIDTH - c_out)))
        b = jnp.pad(bias, (0, CONV_WIDTH - c_out))
        return w.astype(jnp.float32), b.astype(jnp.float32)

    def dense_pack(c, in_to):
        _, n_in = c["W"].shape
        scale, bias = fold(c)
        w = c["W"].T * scale[None, :]
        w = jnp.pad(w, ((0, in_to - n_in), (0, 0)))
        return w.astype(jnp.float32), bias.astype(jnp.float32)

    cin_pad = _round_up(p["conv0"]["W"].shape[1], 8)

    w0, b0 = conv_pack(p["conv0"], cin_pad)            # (25,  8, 128), (128,)
    w1, b1 = conv_pack(p["conv1"], CONV_WIDTH)         # (3, 128, 128), (128,)
    w2, b2 = conv_pack(p["conv2"], CONV_WIDTH)         # (3, 128, 128), (128,)
    wd0, bd0 = dense_pack(p["dense0"], CONV_WIDTH)     # (128, 256),    (256,)
    wd1, bd1 = dense_pack(p["dense1"], p["dense1"]["W"].shape[1])   # (256, 256)

    nd = wd0.shape[1]
    assert nd >= CONV_WIDTH
    # One (8, nd) aux slab instead of seven tiny (1, C) inputs.
    aux = jnp.zeros((8, nd), jnp.float32)
    aux = aux.at[0, :CONV_WIDTH].set(b0)
    aux = aux.at[1, :CONV_WIDTH].set(b1)
    aux = aux.at[2, :CONV_WIDTH].set(b2)
    aux = aux.at[3, :].set(bd0)
    aux = aux.at[4, :].set(bd1)
    aux = aux.at[5, :].set(p["pred"]["W"][0].astype(jnp.float32))
    aux = aux.at[6, 0].set(p["pred"]["b"][0].astype(jnp.float32))
    return dict(w0=w0, w1=w1, w2=w2, wd0=wd0, wd1=wd1, aux=aux)


# ---------------------------------------------------------------------------
# Pure-JAX reference (same eval-mode semantics) for verification
# ---------------------------------------------------------------------------
def model_forward_ref(x_ncl, p):
    x = jnp.transpose(x_ncl, (0, 2, 1)).astype(jnp.float32)

    def conv(x, W, b):  # W: (C_out, C_in, K)
        K = W.shape[2]
        L_out = x.shape[1] - K + 1
        acc = jnp.zeros((x.shape[0], L_out, W.shape[0]), jnp.float32)
        for k in range(K):
            acc = acc + jnp.einsum('blc,oc->blo', x[:, k:k + L_out, :], W[:, :, k])
        return acc + b

    def bn(h, c):
        return (h - c["mean"]) / jnp.sqrt(c["var"] + BN_EPS) * c["gamma"] + c["beta"]

    for name in ("conv0", "conv1", "conv2"):
        c = p[name]
        x = jnp.maximum(bn(conv(x, c["W"], c["b"]), c), 0.0)
    x = jnp.max(x, axis=1)
    for name in ("dense0", "dense1"):
        c = p[name]
        x = jnp.maximum(bn(x @ c["W"].T + c["b"], c), 0.0)
    z = x @ p["pred"]["W"].T + p["pred"]["b"]
    return jax.nn.sigmoid(z)


# ---------------------------------------------------------------------------
if __name__ == "__main__":
    # Small shapes consistent with the module: batch=2, in_channels=4, length=64.
    B, C_IN, L = 2, 4, 64
    FILTER_LENGTH = 25
    key = jax.random.PRNGKey(0)
    k_x, k_p = jax.random.split(key)
    x = jax.random.normal(k_x, (B, C_IN, L), jnp.float32)  # PyTorch NCL input
    params = make_params(k_p, in_channels=C_IN, filter_length=FILTER_LENGTH)
    prepped = prepare_params(params)  # BN folded / weights repacked once

    # TODO(synk): dropout is stochastic in training mode; eval-mode (identity) is implemented.
    out = jax.block_until_ready(model_forward_pallas(x, prepped))
    ref = jax.block_until_ready(model_forward_ref(x, params))

    assert out.shape == (B, 1), out.shape
    np.testing.assert_allclose(np.asarray(out), np.asarray(ref), rtol=1e-4, atol=1e-4)
    print("KERNEL_OK")
</pallas_src>

<mosaic_0001>
module attributes {stable_mosaic.version = 11 : i64} {
  func.func @fused_forward_kernel(%arg0: i32, %arg1: memref<1x104x8xf32, #tpu.memory_space<vmem>>, %arg2: memref<25x8x128xf32, #tpu.memory_space<vmem>>, %arg3: memref<3x128x128xf32, #tpu.memory_space<vmem>>, %arg4: memref<3x128x128xf32, #tpu.memory_space<vmem>>, %arg5: memref<128x256xf32, #tpu.memory_space<vmem>>, %arg6: memref<256x256xf32, #tpu.memory_space<vmem>>, %arg7: memref<8x256xf32, #tpu.memory_space<vmem>>, %arg8: memref<1x1x128xf32, #tpu.memory_space<vmem>>) attributes {dimension_semantics = [#tpu.dimension_semantics<parallel>], iteration_bounds = array<i64: 2>, scalar_prefetch = 0 : i64, scratch_operands = 0 : i64, tpu.core_type = #tpu.core_type<tc>, window_params = [{transform_indices = @transform_0, window_bounds = array<i64: 1, 104, 8>}, {pipeline_mode = #tpu.pipeline_mode<synchronous>, transform_indices = @transform_1, window_bounds = array<i64: 25, 8, 128>}, {pipeline_mode = #tpu.pipeline_mode<synchronous>, transform_indices = @transform_2, window_bounds = array<i64: 3, 128, 128>}, {pipeline_mode = #tpu.pipeline_mode<synchronous>, transform_indices = @transform_3, window_bounds = array<i64: 3, 128, 128>}, {pipeline_mode = #tpu.pipeline_mode<synchronous>, transform_indices = @transform_4, window_bounds = array<i64: 128, 256>}, {pipeline_mode = #tpu.pipeline_mode<synchronous>, transform_indices = @transform_5, window_bounds = array<i64: 256, 256>}, {pipeline_mode = #tpu.pipeline_mode<synchronous>, transform_indices = @transform_6, window_bounds = array<i64: 8, 256>}, {transform_indices = @transform_7, window_bounds = array<i64: 1, 1, 128>}]} {
    %c0 = arith.constant 0 : index
    %c0_0 = arith.constant 0 : index
    %c0_1 = arith.constant 0 : index
    %0 = vector.load %arg1[%c0, %c0_0, %c0_1] : memref<1x104x8xf32, #tpu.memory_space<vmem>>, vector<1x80x8xf32>
    %1 = vector.shape_cast %0 : vector<1x80x8xf32> to vector<80x8xf32>
    %c0_2 = arith.constant 0 : index
    %c0_3 = arith.constant 0 : index
    %c0_4 = arith.constant 0 : index
    %2 = vector.load %arg2[%c0_2, %c0_3, %c0_4] : memref<25x8x128xf32, #tpu.memory_space<vmem>>, vector<1x8x128xf32>
    %3 = vector.shape_cast %2 : vector<1x8x128xf32> to vector<8x128xf32>
    %cst = arith.constant dense<0.000000e+00> : vector<80x128xf32>
    %4 = tpu.matmul %1, %3, %cst {dimension_numbers = #tpu.dot_dimension_numbers<[1], [0], [0], [1], [0, 0, 1, 1], [], []>} : vector<80x8xf32>, vector<8x128xf32>, vector<80x128xf32> -> vector<80x128xf32>
    %c0_5 = arith.constant 0 : index
    %c1 = arith.constant 1 : index
    %c0_6 = arith.constant 0 : index
    %5 = vector.load %arg1[%c0_5, %c1, %c0_6] : memref<1x104x8xf32, #tpu.memory_space<vmem>>, vector<1x80x8xf32>
    %6 = vector.shape_cast %5 : vector<1x80x8xf32> to vector<80x8xf32>
    %c1_7 = arith.constant 1 : index
    %c0_8 = arith.constant 0 : index
    %c0_9 = arith.constant 0 : index
    %7 = vector.load %arg2[%c1_7, %c0_8, %c0_9] : memref<25x8x128xf32, #tpu.memory_space<vmem>>, vector<1x8x128xf32>
    %8 = vector.shape_cast %7 : vector<1x8x128xf32> to vector<8x128xf32>
    %cst_10 = arith.constant dense<0.000000e+00> : vector<80x128xf32>
    %9 = tpu.matmul %6, %8, %cst_10 {dimension_numbers = #tpu.dot_dimension_numbers<[1], [0], [0], [1], [0, 0, 1, 1], [], []>} : vector<80x8xf32>, vector<8x128xf32>, vector<80x128xf32> -> vector<80x128xf32>
    %10 = arith.addf %4, %9 : vector<80x128xf32>
    %c0_11 = arith.constant 0 : index
    %c2 = arith.constant 2 : index
    %c0_12 = arith.constant 0 : index
    %11 = vector.load %arg1[%c0_11, %c2, %c0_12] : memref<1x104x8xf32, #tpu.memory_space<vmem>>, vector<1x80x8xf32>
    %12 = vector.shape_cast %11 : vector<1x80x8xf32> to vector<80x8xf32>
    %c2_13 = arith.constant 2 : index
    %c0_14 = arith.constant 0 : index
    %c0_15 = arith.constant 0 : index
    %13 = vector.load %arg2[%c2_13, %c0_14, %c0_15] : memref<25x8x128xf32, #tpu.memory_space<vmem>>, vector<1x8x128xf32>
    %14 = vector.shape_cast %13 : vector<1x8x128xf32> to vector<8x128xf32>
    %cst_16 = arith.constant dense<0.000000e+00> : vector<80x128xf32>
    %15 = tpu.matmul %12, %14, %cst_16 {dimension_numbers = #tpu.dot_dimension_numbers<[1], [0], [0], [1], [0, 0, 1, 1], [], []>} : vector<80x8xf32>, vector<8x128xf32>, vector<80x128xf32> -> vector<80x128xf32>
    %16 = arith.addf %10, %15 : vector<80x128xf32>
    %c0_17 = arith.constant 0 : index
    %c3 = arith.constant 3 : index
    %c0_18 = arith.constant 0 : index
    %17 = vector.load %arg1[%c0_17, %c3, %c0_18] : memref<1x104x8xf32, #tpu.memory_space<vmem>>, vector<1x80x8xf32>
    %18 = vector.shape_cast %17 : vector<1x80x8xf32> to vector<80x8xf32>
    %c3_19 = arith.constant 3 : index
    %c0_20 = arith.constant 0 : index
    %c0_21 = arith.constant 0 : index
    %19 = vector.load %arg2[%c3_19, %c0_20, %c0_21] : memref<25x8x128xf32, #tpu.memory_space<vmem>>, vector<1x8x128xf32>
    %20 = vector.shape_cast %19 : vector<1x8x128xf32> to vector<8x128xf32>
    %cst_22 = arith.constant dense<0.000000e+00> : vector<80x128xf32>
    %21 = tpu.matmul %18, %20, %cst_22 {dimension_numbers = #tpu.dot_dimension_numbers<[1], [0], [0], [1], [0, 0, 1, 1], [], []>} : vector<80x8xf32>, vector<8x128xf32>, vector<80x128xf32> -> vector<80x128xf32>
    %22 = arith.addf %16, %21 : vector<80x128xf32>
    %c0_23 = arith.constant 0 : index
    %c4 = arith.constant 4 : index
    %c0_24 = arith.constant 0 : index
    %23 = vector.load %arg1[%c0_23, %c4, %c0_24] : memref<1x104x8xf32, #tpu.memory_space<vmem>>, vector<1x80x8xf32>
    %24 = vector.shape_cast %23 : vector<1x80x8xf32> to vector<80x8xf32>
    %c4_25 = arith.constant 4 : index
    %c0_26 = arith.constant 0 : index
    %c0_27 = arith.constant 0 : index
    %25 = vector.load %arg2[%c4_25, %c0_26, %c0_27] : memref<25x8x128xf32, #tpu.memory_space<vmem>>, vector<1x8x128xf32>
    %26 = vector.shape_cast %25 : vector<1x8x128xf32> to vector<8x128xf32>
    %cst_28 = arith.constant dense<0.000000e+00> : vector<80x128xf32>
    %27 = tpu.matmul %24, %26, %cst_28 {dimension_numbers = #tpu.dot_dimension_numbers<[1], [0], [0], [1], [0, 0, 1, 1], [], []>} : vector<80x8xf32>, vector<8x128xf32>, vector<80x128xf32> -> vector<80x128xf32>
    %28 = arith.addf %22, %27 : vector<80x128xf32>
    %c0_29 = arith.constant 0 : index
    %c5 = arith.constant 5 : index
    %c0_30 = arith.constant 0 : index
    %29 = vector.load %arg1[%c0_29, %c5, %c0_30] : memref<1x104x8xf32, #tpu.memory_space<vmem>>, vector<1x80x8xf32>
    %30 = vector.shape_cast %29 : vector<1x80x8xf32> to vector<80x8xf32>
    %c5_31 = arith.constant 5 : index
    %c0_32 = arith.constant 0 : index
    %c0_33 = arith.constant 0 : index
    %31 = vector.load %arg2[%c5_31, %c0_32, %c0_33] : memref<25x8x128xf32, #tpu.memory_space<vmem>>, vector<1x8x128xf32>
    %32 = vector.shape_cast %31 : vector<1x8x128xf32> to vector<8x128xf32>
    %cst_34 = arith.constant dense<0.000000e+00> : vector<80x128xf32>
    %33 = tpu.matmul %30, %32, %cst_34 {dimension_numbers = #tpu.dot_dimension_numbers<[1], [0], [0], [1], [0, 0, 1, 1], [], []>} : vector<80x8xf32>, vector<8x128xf32>, vector<80x128xf32> -> vector<80x128xf32>
    %34 = arith.addf %28, %33 : vector<80x128xf32>
    %c0_35 = arith.constant 0 : index
    %c6 = arith.constant 6 : index
    %c0_36 = arith.constant 0 : index
    %35 = vector.load %arg1[%c0_35, %c6, %c0_36] : memref<1x104x8xf32, #tpu.memory_space<vmem>>, vector<1x80x8xf32>
    %36 = vector.shape_cast %35 : vector<1x80x8xf32> to vector<80x8xf32>
    %c6_37 = arith.constant 6 : index
    %c0_38 = arith.constant 0 : index
    %c0_39 = arith.constant 0 : index
    %37 = vector.load %arg2[%c6_37, %c0_38, %c0_39] : memref<25x8x128xf32, #tpu.memory_space<vmem>>, vector<1x8x128xf32>
    %38 = vector.shape_cast %37 : vector<1x8x128xf32> to vector<8x128xf32>
    %cst_40 = arith.constant dense<0.000000e+00> : vector<80x128xf32>
    %39 = tpu.matmul %36, %38, %cst_40 {dimension_numbers = #tpu.dot_dimension_numbers<[1], [0], [0], [1], [0, 0, 1, 1], [], []>} : vector<80x8xf32>, vector<8x128xf32>, vector<80x128xf32> -> vector<80x128xf32>
    %40 = arith.addf %34, %39 : vector<80x128xf32>
    %c0_41 = arith.constant 0 : index
    %c7 = arith.constant 7 : index
    %c0_42 = arith.constant 0 : index
    %41 = vector.load %arg1[%c0_41, %c7, %c0_42] : memref<1x104x8xf32, #tpu.memory_space<vmem>>, vector<1x80x8xf32>
    %42 = vector.shape_cast %41 : vector<1x80x8xf32> to vector<80x8xf32>
    %c7_43 = arith.constant 7 : index
    %c0_44 = arith.constant 0 : index
    %c0_45 = arith.constant 0 : index
    %43 = vector.load %arg2[%c7_43, %c0_44, %c0_45] : memref<25x8x128xf32, #tpu.memory_space<vmem>>, vector<1x8x128xf32>
    %44 = vector.shape_cast %43 : vector<1x8x128xf32> to vector<8x128xf32>
    %cst_46 = arith.constant dense<0.000000e+00> : vector<80x128xf32>
    %45 = tpu.matmul %42, %44, %cst_46 {dimension_numbers = #tpu.dot_dimension_numbers<[1], [0], [0], [1], [0, 0, 1, 1], [], []>} : vector<80x8xf32>, vector<8x128xf32>, vector<80x128xf32> -> vector<80x128xf32>
    %46 = arith.addf %40, %45 : vector<80x128xf32>
    %c0_47 = arith.constant 0 : index
    %c8 = arith.constant 8 : index
    %c0_48 = arith.constant 0 : index
    %47 = vector.load %arg1[%c0_47, %c8, %c0_48] : memref<1x104x8xf32, #tpu.memory_space<vmem>>, vector<1x80x8xf32>
    %48 = vector.shape_cast %47 : vector<1x80x8xf32> to vector<80x8xf32>
    %c8_49 = arith.constant 8 : index
    %c0_50 = arith.constant 0 : index
    %c0_51 = arith.constant 0 : index
    %49 = vector.load %arg2[%c8_49, %c0_50, %c0_51] : memref<25x8x128xf32, #tpu.memory_space<vmem>>, vector<1x8x128xf32>
    %50 = vector.shape_cast %49 : vector<1x8x128xf32> to vector<8x128xf32>
    %cst_52 = arith.constant dense<0.000000e+00> : vector<80x128xf32>
    %51 = tpu.matmul %48, %50, %cst_52 {dimension_numbers = #tpu.dot_dimension_numbers<[1], [0], [0], [1], [0, 0, 1, 1], [], []>} : vector<80x8xf32>, vector<8x128xf32>, vector<80x128xf32> -> vector<80x128xf32>
    %52 = arith.addf %46, %51 : vector<80x128xf32>
    %c0_53 = arith.constant 0 : index
    %c9 = arith.constant 9 : index
    %c0_54 = arith.constant 0 : index
    %53 = vector.load %arg1[%c0_53, %c9, %c0_54] : memref<1x104x8xf32, #tpu.memory_space<vmem>>, vector<1x80x8xf32>
    %54 = vector.shape_cast %53 : vector<1x80x8xf32> to vector<80x8xf32>
    %c9_55 = arith.constant 9 : index
    %c0_56 = arith.constant 0 : index
    %c0_57 = arith.constant 0 : index
    %55 = vector.load %arg2[%c9_55, %c0_56, %c0_57] : memref<25x8x128xf32, #tpu.memory_space<vmem>>, vector<1x8x128xf32>
    %56 = vector.shape_cast %55 : vector<1x8x128xf32> to vector<8x128xf32>
    %cst_58 = arith.constant dense<0.000000e+00> : vector<80x128xf32>
    %57 = tpu.matmul %54, %56, %cst_58 {dimension_numbers = #tpu.dot_dimension_numbers<[1], [0], [0], [1], [0, 0, 1, 1], [], []>} : vector<80x8xf32>, vector<8x128xf32>, vector<80x128xf32> -> vector<80x128xf32>
    %58 = arith.addf %52, %57 : vector<80x128xf32>
    %c0_59 = arith.constant 0 : index
    %c10 = arith.constant 10 : index
    %c0_60 = arith.constant 0 : index
    %59 = vector.load %arg1[%c0_59, %c10, %c0_60] : memref<1x104x8xf32, #tpu.memory_space<vmem>>, vector<1x80x8xf32>
    %60 = vector.shape_cast %59 : vector<1x80x8xf32> to vector<80x8xf32>
    %c10_61 = arith.constant 10 : index
    %c0_62 = arith.constant 0 : index
    %c0_63 = arith.constant 0 : index
    %61 = vector.load %arg2[%c10_61, %c0_62, %c0_63] : memref<25x8x128xf32, #tpu.memory_space<vmem>>, vector<1x8x128xf32>
    %62 = vector.shape_cast %61 : vector<1x8x128xf32> to vector<8x128xf32>
    %cst_64 = arith.constant dense<0.000000e+00> : vector<80x128xf32>
    %63 = tpu.matmul %60, %62, %cst_64 {dimension_numbers = #tpu.dot_dimension_numbers<[1], [0], [0], [1], [0, 0, 1, 1], [], []>} : vector<80x8xf32>, vector<8x128xf32>, vector<80x128xf32> -> vector<80x128xf32>
    %64 = arith.addf %58, %63 : vector<80x128xf32>
    %c0_65 = arith.constant 0 : index
    %c11 = arith.constant 11 : index
    %c0_66 = arith.constant 0 : index
    %65 = vector.load %arg1[%c0_65, %c11, %c0_66] : memref<1x104x8xf32, #tpu.memory_space<vmem>>, vector<1x80x8xf32>
    %66 = vector.shape_cast %65 : vector<1x80x8xf32> to vector<80x8xf32>
    %c11_67 = arith.constant 11 : index
    %c0_68 = arith.constant 0 : index
    %c0_69 = arith.constant 0 : index
    %67 = vector.load %arg2[%c11_67, %c0_68, %c0_69] : memref<25x8x128xf32, #tpu.memory_space<vmem>>, vector<1x8x128xf32>
    %68 = vector.shape_cast %67 : vector<1x8x128xf32> to vector<8x128xf32>
    %cst_70 = arith.constant dense<0.000000e+00> : vector<80x128xf32>
    %69 = tpu.matmul %66, %68, %cst_70 {dimension_numbers = #tpu.dot_dimension_numbers<[1], [0], [0], [1], [0, 0, 1, 1], [], []>} : vector<80x8xf32>, vector<8x128xf32>, vector<80x128xf32> -> vector<80x128xf32>
    %70 = arith.addf %64, %69 : vector<80x128xf32>
    %c0_71 = arith.constant 0 : index
    %c12 = arith.constant 12 : index
    %c0_72 = arith.constant 0 : index
    %71 = vector.load %arg1[%c0_71, %c12, %c0_72] : memref<1x104x8xf32, #tpu.memory_space<vmem>>, vector<1x80x8xf32>
    %72 = vector.shape_cast %71 : vector<1x80x8xf32> to vector<80x8xf32>
    %c12_73 = arith.constant 12 : index
    %c0_74 = arith.constant 0 : index
    %c0_75 = arith.constant 0 : index
    %73 = vector.load %arg2[%c12_73, %c0_74, %c0_75] : memref<25x8x128xf32, #tpu.memory_space<vmem>>, vector<1x8x128xf32>
    %74 = vector.shape_cast %73 : vector<1x8x128xf32> to vector<8x128xf32>
    %cst_76 = arith.constant dense<0.000000e+00> : vector<80x128xf32>
    %75 = tpu.matmul %72, %74, %cst_76 {dimension_numbers = #tpu.dot_dimension_numbers<[1], [0], [0], [1], [0, 0, 1, 1], [], []>} : vector<80x8xf32>, vector<8x128xf32>, vector<80x128xf32> -> vector<80x128xf32>
    %76 = arith.addf %70, %75 : vector<80x128xf32>
    %c0_77 = arith.constant 0 : index
    %c13 = arith.constant 13 : index
    %c0_78 = arith.constant 0 : index
    %77 = vector.load %arg1[%c0_77, %c13, %c0_78] : memref<1x104x8xf32, #tpu.memory_space<vmem>>, vector<1x80x8xf32>
    %78 = vector.shape_cast %77 : vector<1x80x8xf32> to vector<80x8xf32>
    %c13_79 = arith.constant 13 : index
    %c0_80 = arith.constant 0 : index
    %c0_81 = arith.constant 0 : index
    %79 = vector.load %arg2[%c13_79, %c0_80, %c0_81] : memref<25x8x128xf32, #tpu.memory_space<vmem>>, vector<1x8x128xf32>
    %80 = vector.shape_cast %79 : vector<1x8x128xf32> to vector<8x128xf32>
    %cst_82 = arith.constant dense<0.000000e+00> : vector<80x128xf32>
    %81 = tpu.matmul %78, %80, %cst_82 {dimension_numbers = #tpu.dot_dimension_numbers<[1], [0], [0], [1], [0, 0, 1, 1], [], []>} : vector<80x8xf32>, vector<8x128xf32>, vector<80x128xf32> -> vector<80x128xf32>
    %82 = arith.addf %76, %81 : vector<80x128xf32>
    %c0_83 = arith.constant 0 : index
    %c14 = arith.constant 14 : index
    %c0_84 = arith.constant 0 : index
    %83 = vector.load %arg1[%c0_83, %c14, %c0_84] : memref<1x104x8xf32, #tpu.memory_space<vmem>>, vector<1x80x8xf32>
    %84 = vector.shape_cast %83 : vector<1x80x8xf32> to vector<80x8xf32>
    %c14_85 = arith.constant 14 : index
    %c0_86 = arith.constant 0 : index
    %c0_87 = arith.constant 0 : index
    %85 = vector.load %arg2[%c14_85, %c0_86, %c0_87] : memref<25x8x128xf32, #tpu.memory_space<vmem>>, vector<1x8x128xf32>
    %86 = vector.shape_cast %85 : vector<1x8x128xf32> to vector<8x128xf32>
    %cst_88 = arith.constant dense<0.000000e+00> : vector<80x128xf32>
    %87 = tpu.matmul %84, %86, %cst_88 {dimension_numbers = #tpu.dot_dimension_numbers<[1], [0], [0], [1], [0, 0, 1, 1], [], []>} : vector<80x8xf32>, vector<8x128xf32>, vector<80x128xf32> -> vector<80x128xf32>
    %88 = arith.addf %82, %87 : vector<80x128xf32>
    %c0_89 = arith.constant 0 : index
    %c15 = arith.constant 15 : index
    %c0_90 = arith.constant 0 : index
    %89 = vector.load %arg1[%c0_89, %c15, %c0_90] : memref<1x104x8xf32, #tpu.memory_space<vmem>>, vector<1x80x8xf32>
    %90 = vector.shape_cast %89 : vector<1x80x8xf32> to vector<80x8xf32>
    %c15_91 = arith.constant 15 : index
    %c0_92 = arith.constant 0 : index
    %c0_93 = arith.constant 0 : index
    %91 = vector.load %arg2[%c15_91, %c0_92, %c0_93] : memref<25x8x128xf32, #tpu.memory_space<vmem>>, vector<1x8x128xf32>
    %92 = vector.shape_cast %91 : vector<1x8x128xf32> to vector<8x128xf32>
    %cst_94 = arith.constant dense<0.000000e+00> : vector<80x128xf32>
    %93 = tpu.matmul %90, %92, %cst_94 {dimension_numbers = #tpu.dot_dimension_numbers<[1], [0], [0], [1], [0, 0, 1, 1], [], []>} : vector<80x8xf32>, vector<8x128xf32>, vector<80x128xf32> -> vector<80x128xf32>
    %94 = arith.addf %88, %93 : vector<80x128xf32>
    %c0_95 = arith.constant 0 : index
    %c16 = arith.constant 16 : index
    %c0_96 = arith.constant 0 : index
    %95 = vector.load %arg1[%c0_95, %c16, %c0_96] : memref<1x104x8xf32, #tpu.memory_space<vmem>>, vector<1x80x8xf32>
    %96 = vector.shape_cast %95 : vector<1x80x8xf32> to vector<80x8xf32>
    %c16_97 = arith.constant 16 : index
    %c0_98 = arith.constant 0 : index
    %c0_99 = arith.constant 0 : index
    %97 = vector.load %arg2[%c16_97, %c0_98, %c0_99] : memref<25x8x128xf32, #tpu.memory_space<vmem>>, vector<1x8x128xf32>
    %98 = vector.shape_cast %97 : vector<1x8x128xf32> to vector<8x128xf32>
    %cst_100 = arith.constant dense<0.000000e+00> : vector<80x128xf32>
    %99 = tpu.matmul %96, %98, %cst_100 {dimension_numbers = #tpu.dot_dimension_numbers<[1], [0], [0], [1], [0, 0, 1, 1], [], []>} : vector<80x8xf32>, vector<8x128xf32>, vector<80x128xf32> -> vector<80x128xf32>
    %100 = arith.addf %94, %99 : vector<80x128xf32>
    %c0_101 = arith.constant 0 : index
    %c17 = arith.constant 17 : index
    %c0_102 = arith.constant 0 : index
    %101 = vector.load %arg1[%c0_101, %c17, %c0_102] : memref<1x104x8xf32, #tpu.memory_space<vmem>>, vector<1x80x8xf32>
    %102 = vector.shape_cast %101 : vector<1x80x8xf32> to vector<80x8xf32>
    %c17_103 = arith.constant 17 : index
    %c0_104 = arith.constant 0 : index
    %c0_105 = arith.constant 0 : index
    %103 = vector.load %arg2[%c17_103, %c0_104, %c0_105] : memref<25x8x128xf32, #tpu.memory_space<vmem>>, vector<1x8x128xf32>
    %104 = vector.shape_cast %103 : vector<1x8x128xf32> to vector<8x128xf32>
    %cst_106 = arith.constant dense<0.000000e+00> : vector<80x128xf32>
    %105 = tpu.matmul %102, %104, %cst_106 {dimension_numbers = #tpu.dot_dimension_numbers<[1], [0], [0], [1], [0, 0, 1, 1], [], []>} : vector<80x8xf32>, vector<8x128xf32>, vector<80x128xf32> -> vector<80x128xf32>
    %106 = arith.addf %100, %105 : vector<80x128xf32>
    %c0_107 = arith.constant 0 : index
    %c18 = arith.constant 18 : index
    %c0_108 = arith.constant 0 : index
    %107 = vector.load %arg1[%c0_107, %c18, %c0_108] : memref<1x104x8xf32, #tpu.memory_space<vmem>>, vector<1x80x8xf32>
    %108 = vector.shape_cast %107 : vector<1x80x8xf32> to vector<80x8xf32>
    %c18_109 = arith.constant 18 : index
    %c0_110 = arith.constant 0 : index
    %c0_111 = arith.constant 0 : index
    %109 = vector.load %arg2[%c18_109, %c0_110, %c0_111] : memref<25x8x128xf32, #tpu.memory_space<vmem>>, vector<1x8x128xf32>
    %110 = vector.shape_cast %109 : vector<1x8x128xf32> to vector<8x128xf32>
    %cst_112 = arith.constant dense<0.000000e+00> : vector<80x128xf32>
    %111 = tpu.matmul %108, %110, %cst_112 {dimension_numbers = #tpu.dot_dimension_numbers<[1], [0], [0], [1], [0, 0, 1, 1], [], []>} : vector<80x8xf32>, vector<8x128xf32>, vector<80x128xf32> -> vector<80x128xf32>
    %112 = arith.addf %106, %111 : vector<80x128xf32>
    %c0_113 = arith.constant 0 : index
    %c19 = arith.constant 19 : index
    %c0_114 = arith.constant 0 : index
    %113 = vector.load %arg1[%c0_113, %c19, %c0_114] : memref<1x104x8xf32, #tpu.memory_space<vmem>>, vector<1x80x8xf32>
    %114 = vector.shape_cast %113 : vector<1x80x8xf32> to vector<80x8xf32>
    %c19_115 = arith.constant 19 : index
    %c0_116 = arith.constant 0 : index
    %c0_117 = arith.constant 0 : index
    %115 = vector.load %arg2[%c19_115, %c0_116, %c0_117] : memref<25x8x128xf32, #tpu.memory_space<vmem>>, vector<1x8x128xf32>
    %116 = vector.shape_cast %115 : vector<1x8x128xf32> to vector<8x128xf32>
    %cst_118 = arith.constant dense<0.000000e+00> : vector<80x128xf32>
    %117 = tpu.matmul %114, %116, %cst_118 {dimension_numbers = #tpu.dot_dimension_numbers<[1], [0], [0], [1], [0, 0, 1, 1], [], []>} : vector<80x8xf32>, vector<8x128xf32>, vector<80x128xf32> -> vector<80x128xf32>
    %118 = arith.addf %112, %117 : vector<80x128xf32>
    %c0_119 = arith.constant 0 : index
    %c20 = arith.constant 20 : index
    %c0_120 = arith.constant 0 : index
    %119 = vector.load %arg1[%c0_119, %c20, %c0_120] : memref<1x104x8xf32, #tpu.memory_space<vmem>>, vector<1x80x8xf32>
    %120 = vector.shape_cast %119 : vector<1x80x8xf32> to vector<80x8xf32>
    %c20_121 = arith.constant 20 : index
    %c0_122 = arith.constant 0 : index
    %c0_123 = arith.constant 0 : index
    %121 = vector.load %arg2[%c20_121, %c0_122, %c0_123] : memref<25x8x128xf32, #tpu.memory_space<vmem>>, vector<1x8x128xf32>
    %122 = vector.shape_cast %121 : vector<1x8x128xf32> to vector<8x128xf32>
    %cst_124 = arith.constant dense<0.000000e+00> : vector<80x128xf32>
    %123 = tpu.matmul %120, %122, %cst_124 {dimension_numbers = #tpu.dot_dimension_numbers<[1], [0], [0], [1], [0, 0, 1, 1], [], []>} : vector<80x8xf32>, vector<8x128xf32>, vector<80x128xf32> -> vector<80x128xf32>
    %124 = arith.addf %118, %123 : vector<80x128xf32>
    %c0_125 = arith.constant 0 : index
    %c21 = arith.constant 21 : index
    %c0_126 = arith.constant 0 : index
    %125 = vector.load %arg1[%c0_125, %c21, %c0_126] : memref<1x104x8xf32, #tpu.memory_space<vmem>>, vector<1x80x8xf32>
    %126 = vector.shape_cast %125 : vector<1x80x8xf32> to vector<80x8xf32>
    %c21_127 = arith.constant 21 : index
    %c0_128 = arith.constant 0 : index
    %c0_129 = arith.constant 0 : index
    %127 = vector.load %arg2[%c21_127, %c0_128, %c0_129] : memref<25x8x128xf32, #tpu.memory_space<vmem>>, vector<1x8x128xf32>
    %128 = vector.shape_cast %127 : vector<1x8x128xf32> to vector<8x128xf32>
    %cst_130 = arith.constant dense<0.000000e+00> : vector<80x128xf32>
    %129 = tpu.matmul %126, %128, %cst_130 {dimension_numbers = #tpu.dot_dimension_numbers<[1], [0], [0], [1], [0, 0, 1, 1], [], []>} : vector<80x8xf32>, vector<8x128xf32>, vector<80x128xf32> -> vector<80x128xf32>
    %130 = arith.addf %124, %129 : vector<80x128xf32>
    %c0_131 = arith.constant 0 : index
    %c22 = arith.constant 22 : index
    %c0_132 = arith.constant 0 : index
    %131 = vector.load %arg1[%c0_131, %c22, %c0_132] : memref<1x104x8xf32, #tpu.memory_space<vmem>>, vector<1x80x8xf32>
    %132 = vector.shape_cast %131 : vector<1x80x8xf32> to vector<80x8xf32>
    %c22_133 = arith.constant 22 : index
    %c0_134 = arith.constant 0 : index
    %c0_135 = arith.constant 0 : index
    %133 = vector.load %arg2[%c22_133, %c0_134, %c0_135] : memref<25x8x128xf32, #tpu.memory_space<vmem>>, vector<1x8x128xf32>
    %134 = vector.shape_cast %133 : vector<1x8x128xf32> to vector<8x128xf32>
    %cst_136 = arith.constant dense<0.000000e+00> : vector<80x128xf32>
    %135 = tpu.matmul %132, %134, %cst_136 {dimension_numbers = #tpu.dot_dimension_numbers<[1], [0], [0], [1], [0, 0, 1, 1], [], []>} : vector<80x8xf32>, vector<8x128xf32>, vector<80x128xf32> -> vector<80x128xf32>
    %136 = arith.addf %130, %135 : vector<80x128xf32>
    %c0_137 = arith.constant 0 : index
    %c23 = arith.constant 23 : index
    %c0_138 = arith.constant 0 : index
    %137 = vector.load %arg1[%c0_137, %c23, %c0_138] : memref<1x104x8xf32, #tpu.memory_space<vmem>>, vector<1x80x8xf32>
    %138 = vector.shape_cast %137 : vector<1x80x8xf32> to vector<80x8xf32>
    %c23_139 = arith.constant 23 : index
    %c0_140 = arith.constant 0 : index
    %c0_141 = arith.constant 0 : index
    %139 = vector.load %arg2[%c23_139, %c0_140, %c0_141] : memref<25x8x128xf32, #tpu.memory_space<vmem>>, vector<1x8x128xf32>
    %140 = vector.shape_cast %139 : vector<1x8x128xf32> to vector<8x128xf32>
    %cst_142 = arith.constant dense<0.000000e+00> : vector<80x128xf32>
    %141 = tpu.matmul %138, %140, %cst_142 {dimension_numbers = #tpu.dot_dimension_numbers<[1], [0], [0], [1], [0, 0, 1, 1], [], []>} : vector<80x8xf32>, vector<8x128xf32>, vector<80x128xf32> -> vector<80x128xf32>
    %142 = arith.addf %136, %141 : vector<80x128xf32>
    %c0_143 = arith.constant 0 : index
    %c24 = arith.constant 24 : index
    %c0_144 = arith.constant 0 : index
    %143 = vector.load %arg1[%c0_143, %c24, %c0_144] : memref<1x104x8xf32, #tpu.memory_space<vmem>>, vector<1x80x8xf32>
    %144 = vector.shape_cast %143 : vector<1x80x8xf32> to vector<80x8xf32>
    %c24_145 = arith.constant 24 : index
    %c0_146 = arith.constant 0 : index
    %c0_147 = arith.constant 0 : index
    %145 = vector.load %arg2[%c24_145, %c0_146, %c0_147] : memref<25x8x128xf32, #tpu.memory_space<vmem>>, vector<1x8x128xf32>
    %146 = vector.shape_cast %145 : vector<1x8x128xf32> to vector<8x128xf32>
    %cst_148 = arith.constant dense<0.000000e+00> : vector<80x128xf32>
    %147 = tpu.matmul %144, %146, %cst_148 {dimension_numbers = #tpu.dot_dimension_numbers<[1], [0], [0], [1], [0, 0, 1, 1], [], []>} : vector<80x8xf32>, vector<8x128xf32>, vector<80x128xf32> -> vector<80x128xf32>
    %148 = arith.addf %142, %147 : vector<80x128xf32>
    %c0_149 = arith.constant 0 : index
    %c0_150 = arith.constant 0 : index
    %149 = vector.load %arg7[%c0_149, %c0_150] : memref<8x256xf32, #tpu.memory_space<vmem>>, vector<1x128xf32>
    %150 = vector.broadcast %149 : vector<1x128xf32> to vector<80x128xf32>
    %151 = arith.addf %148, %150 : vector<80x128xf32>
    %cst_151 = arith.constant 0.000000e+00 : f32
    %152 = vector.broadcast %cst_151 : f32 to vector<80x128xf32>
    %153 = arith.maximumf %151, %152 : vector<80x128xf32>
    %c1_152 = arith.constant 1 : index
    %c0_153 = arith.constant 0 : index
    %154 = vector.load %arg7[%c1_152, %c0_153] : memref<8x256xf32, #tpu.memory_space<vmem>>, vector<1x128xf32>
    %155 = vector.extract_strided_slice %153 {offsets = [0, 0], sizes = [72, 128], strides = [1, 1]} : vector<80x128xf32> to vector<72x128xf32>
    %c0_154 = arith.constant 0 : index
    %c0_155 = arith.constant 0 : index
    %c0_156 = arith.constant 0 : index
    %156 = vector.load %arg3[%c0_154, %c0_155, %c0_156] : memref<3x128x128xf32, #tpu.memory_space<vmem>>, vector<1x128x128xf32>
    %157 = vector.shape_cast %156 : vector<1x128x128xf32> to vector<128x128xf32>
    %cst_157 = arith.constant dense<0.000000e+00> : vector<72x128xf32>
    %158 = tpu.matmul %155, %157, %cst_157 {dimension_numbers = #tpu.dot_dimension_numbers<[1], [0], [0], [1], [0, 0, 1, 1], [], []>} : vector<72x128xf32>, vector<128x128xf32>, vector<72x128xf32> -> vector<72x128xf32>
    %159 = vector.extract_strided_slice %153 {offsets = [1, 0], sizes = [72, 128], strides = [1, 1]} : vector<80x128xf32> to vector<72x128xf32>
    %c1_158 = arith.constant 1 : index
    %c0_159 = arith.constant 0 : index
    %c0_160 = arith.constant 0 : index
    %160 = vector.load %arg3[%c1_158, %c0_159, %c0_160] : memref<3x128x128xf32, #tpu.memory_space<vmem>>, vector<1x128x128xf32>
    %161 = vector.shape_cast %160 : vector<1x128x128xf32> to vector<128x128xf32>
    %cst_161 = arith.constant dense<0.000000e+00> : vector<72x128xf32>
    %162 = tpu.matmul %159, %161, %cst_161 {dimension_numbers = #tpu.dot_dimension_numbers<[1], [0], [0], [1], [0, 0, 1, 1], [], []>} : vector<72x128xf32>, vector<128x128xf32>, vector<72x128xf32> -> vector<72x128xf32>
    %163 = arith.addf %158, %162 : vector<72x128xf32>
    %164 = vector.extract_strided_slice %153 {offsets = [2, 0], sizes = [72, 128], strides = [1, 1]} : vector<80x128xf32> to vector<72x128xf32>
    %c2_162 = arith.constant 2 : index
    %c0_163 = arith.constant 0 : index
    %c0_164 = arith.constant 0 : index
    %165 = vector.load %arg3[%c2_162, %c0_163, %c0_164] : memref<3x128x128xf32, #tpu.memory_space<vmem>>, vector<1x128x128xf32>
    %166 = vector.shape_cast %165 : vector<1x128x128xf32> to vector<128x128xf32>
    %cst_165 = arith.constant dense<0.000000e+00> : vector<72x128xf32>
    %167 = tpu.matmul %164, %166, %cst_165 {dimension_numbers = #tpu.dot_dimension_numbers<[1], [0], [0], [1], [0, 0, 1, 1], [], []>} : vector<72x128xf32>, vector<128x128xf32>, vector<72x128xf32> -> vector<72x128xf32>
    %168 = arith.addf %163, %167 : vector<72x128xf32>
    %169 = vector.broadcast %154 : vector<1x128xf32> to vector<72x128xf32>
    %170 = arith.addf %168, %169 : vector<72x128xf32>
    %cst_166 = arith.constant 0.000000e+00 : f32
    %171 = vector.broadcast %cst_166 : f32 to vector<72x128xf32>
    %172 = arith.maximumf %170, %171 : vector<72x128xf32>
    %c2_167 = arith.constant 2 : index
    %c0_168 = arith.constant 0 : index
    %173 = vector.load %arg7[%c2_167, %c0_168] : memref<8x256xf32, #tpu.memory_space<vmem>>, vector<1x128xf32>
    %174 = vector.extract_strided_slice %172 {offsets = [0, 0], sizes = [64, 128], strides = [1, 1]} : vector<72x128xf32> to vector<64x128xf32>
    %c0_169 = arith.constant 0 : index
    %c0_170 = arith.constant 0 : index
    %c0_171 = arith.constant 0 : index
    %175 = vector.load %arg4[%c0_169, %c0_170, %c0_171] : memref<3x128x128xf32, #tpu.memory_space<vmem>>, vector<1x128x128xf32>
    %176 = vector.shape_cast %175 : vector<1x128x128xf32> to vector<128x128xf32>
    %cst_172 = arith.constant dense<0.000000e+00> : vector<64x128xf32>
    %177 = tpu.matmul %174, %176, %cst_172 {dimension_numbers = #tpu.dot_dimension_numbers<[1], [0], [0], [1], [0, 0, 1, 1], [], []>} : vector<64x128xf32>, vector<128x128xf32>, vector<64x128xf32> -> vector<64x128xf32>
    %178 = vector.extract_strided_slice %172 {offsets = [1, 0], sizes = [64, 128], strides = [1, 1]} : vector<72x128xf32> to vector<64x128xf32>
    %c1_173 = arith.constant 1 : index
    %c0_174 = arith.constant 0 : index
    %c0_175 = arith.constant 0 : index
    %179 = vector.load %arg4[%c1_173, %c0_174, %c0_175] : memref<3x128x128xf32, #tpu.memory_space<vmem>>, vector<1x128x128xf32>
    %180 = vector.shape_cast %179 : vector<1x128x128xf32> to vector<128x128xf32>
    %cst_176 = arith.constant dense<0.000000e+00> : vector<64x128xf32>
    %181 = tpu.matmul %178, %180, %cst_176 {dimension_numbers = #tpu.dot_dimension_numbers<[1], [0], [0], [1], [0, 0, 1, 1], [], []>} : vector<64x128xf32>, vector<128x128xf32>, vector<64x128xf32> -> vector<64x128xf32>
    %182 = arith.addf %177, %181 : vector<64x128xf32>
    %183 = vector.extract_strided_slice %172 {offsets = [2, 0], sizes = [64, 128], strides = [1, 1]} : vector<72x128xf32> to vector<64x128xf32>
    %c2_177 = arith.constant 2 : index
    %c0_178 = arith.constant 0 : index
    %c0_179 = arith.constant 0 : index
    %184 = vector.load %arg4[%c2_177, %c0_178, %c0_179] : memref<3x128x128xf32, #tpu.memory_space<vmem>>, vector<1x128x128xf32>
    %185 = vector.shape_cast %184 : vector<1x128x128xf32> to vector<128x128xf32>
    %cst_180 = arith.constant dense<0.000000e+00> : vector<64x128xf32>
    %186 = tpu.matmul %183, %185, %cst_180 {dimension_numbers = #tpu.dot_dimension_numbers<[1], [0], [0], [1], [0, 0, 1, 1], [], []>} : vector<64x128xf32>, vector<128x128xf32>, vector<64x128xf32> -> vector<64x128xf32>
    %187 = arith.addf %182, %186 : vector<64x128xf32>
    %188 = vector.broadcast %173 : vector<1x128xf32> to vector<64x128xf32>
    %189 = arith.addf %187, %188 : vector<64x128xf32>
    %cst_181 = arith.constant 0.000000e+00 : f32
    %190 = vector.broadcast %cst_181 : f32 to vector<64x128xf32>
    %191 = arith.maximumf %189, %190 : vector<64x128xf32>
    %192 = vector.shape_cast %191 : vector<64x128xf32> to vector<1x64x128xf32>
    %193 = tpu.iota {dimensions = array<i32: 1>} : vector<1x64x128xi32>
    %c36_i32 = arith.constant 36 : i32
    %194 = vector.broadcast %c36_i32 : i32 to vector<1x64x128xi32>
    %195 = arith.cmpi slt, %193, %194 : vector<1x64x128xi32>
    %cst_182 = arith.constant 0.000000e+00 : f32
    %196 = vector.broadcast %cst_182 : f32 to vector<1x64x128xf32>
    %197 = arith.select %195, %192, %196 : vector<1x64x128xi1>, vector<1x64x128xf32>
    %cst_183 = arith.constant dense<0xFF800000> : vector<1x128xf32>
    %198 = vector.multi_reduction <maximumf>, %197, %cst_183 [1] : vector<1x64x128xf32> to vector<1x128xf32>
    %c0_184 = arith.constant 0 : index
    %c0_185 = arith.constant 0 : index
    %199 = vector.load %arg5[%c0_184, %c0_185] : memref<128x256xf32, #tpu.memory_space<vmem>>, vector<128x256xf32>
    %cst_186 = arith.constant dense<0.000000e+00> : vector<1x256xf32>
    %200 = tpu.matmul %198, %199, %cst_186 {dimension_numbers = #tpu.dot_dimension_numbers<[1], [0], [0], [1], [0, 0, 1, 1], [], []>} : vector<1x128xf32>, vector<128x256xf32>, vector<1x256xf32> -> vector<1x256xf32>
    %c3_187 = arith.constant 3 : index
    %c0_188 = arith.constant 0 : index
    %201 = vector.load %arg7[%c3_187, %c0_188] : memref<8x256xf32, #tpu.memory_space<vmem>>, vector<1x256xf32>
    %202 = arith.addf %200, %201 : vector<1x256xf32>
    %cst_189 = arith.constant 0.000000e+00 : f32
    %203 = vector.broadcast %cst_189 : f32 to vector<1x256xf32>
    %204 = arith.maximumf %202, %203 : vector<1x256xf32>
    %c0_190 = arith.constant 0 : index
    %c0_191 = arith.constant 0 : index
    %205 = vector.load %arg6[%c0_190, %c0_191] : memref<256x256xf32, #tpu.memory_space<vmem>>, vector<256x256xf32>
    %cst_192 = arith.constant dense<0.000000e+00> : vector<1x256xf32>
    %206 = tpu.matmul %204, %205, %cst_192 {dimension_numbers = #tpu.dot_dimension_numbers<[1], [0], [0], [1], [0, 0, 1, 1], [], []>} : vector<1x256xf32>, vector<256x256xf32>, vector<1x256xf32> -> vector<1x256xf32>
    %c4_193 = arith.constant 4 : index
    %c0_194 = arith.constant 0 : index
    %207 = vector.load %arg7[%c4_193, %c0_194] : memref<8x256xf32, #tpu.memory_space<vmem>>, vector<1x256xf32>
    %208 = arith.addf %206, %207 : vector<1x256xf32>
    %cst_195 = arith.constant 0.000000e+00 : f32
    %209 = vector.broadcast %cst_195 : f32 to vector<1x256xf32>
    %210 = arith.maximumf %208, %209 : vector<1x256xf32>
    %c5_196 = arith.constant 5 : index
    %c0_197 = arith.constant 0 : index
    %211 = vector.load %arg7[%c5_196, %c0_197] : memref<8x256xf32, #tpu.memory_space<vmem>>, vector<1x256xf32>
    %212 = arith.mulf %210, %211 : vector<1x256xf32>
    %cst_198 = arith.constant dense<0.000000e+00> : vector<1xf32>
    %213 = vector.multi_reduction <add>, %212, %cst_198 [1] : vector<1x256xf32> to vector<1xf32>
    %214 = vector.shape_cast %213 : vector<1xf32> to vector<1x1xf32>
    %c6_199 = arith.constant 6 : index
    %c0_200 = arith.constant 0 : index
    %215 = vector.load %arg7[%c6_199, %c0_200] : memref<8x256xf32, #tpu.memory_space<vmem>>, vector<1x1xf32>
    %216 = arith.addf %214, %215 : vector<1x1xf32>
    %cst_201 = arith.constant 0.000000e+00 : f32
    %217 = vector.broadcast %cst_201 : f32 to vector<1x1xf32>
    %218 = arith.subf %217, %216 : vector<1x1xf32>
    %219 = math.exp %218 : vector<1x1xf32>
    %cst_202 = arith.constant 1.000000e+00 : f32
    %220 = vector.broadcast %cst_202 : f32 to vector<1x1xf32>
    %221 = arith.addf %220, %219 : vector<1x1xf32>
    %cst_203 = arith.constant 1.000000e+00 : f32
    %222 = vector.broadcast %cst_203 : f32 to vector<1x1xf32>
    %223 = arith.divf %222, %221 : vector<1x1xf32>
    %224 = vector.shape_cast %223 : vector<1x1xf32> to vector<1x1xf32>
    %225 = vector.broadcast %224 : vector<1x1xf32> to vector<1x128xf32>
    %c0_204 = arith.constant 0 : index
    %c0_205 = arith.constant 0 : index
    %c0_206 = arith.constant 0 : index
    %226 = vector.load %arg8[%c0_204, %c0_205, %c0_206] : memref<1x1x128xf32, #tpu.memory_space<vmem>>, vector<1x1x128xf32>
    %227 = vector.shape_cast %226 : vector<1x1x128xf32> to vector<1x128xf32>
    %228 = vector.shape_cast %225 : vector<1x128xf32> to vector<1x1x128xf32>
    tpu.vector_store %arg8[%c0_204, %c0_205, %c0_206], %228 {strides = array<i32>} : memref<1x1x128xf32, #tpu.memory_space<vmem>>, vector<1x1x128xf32>,
    return
  }
  func.func @transform_0(%arg0: i32) -> (i32, i32, i32) {
    %c0_i32 = arith.constant 0 : i32
    %c0_i32_0 = arith.constant 0 : i32
    %c0_i32_1 = arith.constant 0 : i32
    return %arg0, %c0_i32, %c0_i32_0 : i32, i32, i32
  }
  func.func @transform_1(%arg0: i32) -> (i32, i32, i32) {
    %c0_i32 = arith.constant 0 : i32
    %c0_i32_0 = arith.constant 0 : i32
    %c0_i32_1 = arith.constant 0 : i32
    %c0_i32_2 = arith.constant 0 : i32
    return %c0_i32, %c0_i32_0, %c0_i32_1 : i32, i32, i32
  }
  func.func @transform_2(%arg0: i32) -> (i32, i32, i32) {
    %c0_i32 = arith.constant 0 : i32
    %c0_i32_0 = arith.constant 0 : i32
    %c0_i32_1 = arith.constant 0 : i32
    %c0_i32_2 = arith.constant 0 : i32
    return %c0_i32, %c0_i32_0, %c0_i32_1 : i32, i32, i32
  }
  func.func @transform_3(%arg0: i32) -> (i32, i32, i32) {
    %c0_i32 = arith.constant 0 : i32
    %c0_i32_0 = arith.constant 0 : i32
    %c0_i32_1 = arith.constant 0 : i32
    %c0_i32_2 = arith.constant 0 : i32
    return %c0_i32, %c0_i32_0, %c0_i32_1 : i32, i32, i32
  }
  func.func @transform_4(%arg0: i32) -> (i32, i32) {
    %c0_i32 = arith.constant 0 : i32
    %c0_i32_0 = arith.constant 0 : i32
    %c0_i32_1 = arith.constant 0 : i32
    return %c0_i32, %c0_i32_0 : i32, i32
  }
  func.func @transform_5(%arg0: i32) -> (i32, i32) {
    %c0_i32 = arith.constant 0 : i32
    %c0_i32_0 = arith.constant 0 : i32
    %c0_i32_1 = arith.constant 0 : i32
    return %c0_i32, %c0_i32_0 : i32, i32
  }
  func.func @transform_6(%arg0: i32) -> (i32, i32) {
    %c0_i32 = arith.constant 0 : i32
    %c0_i32_0 = arith.constant 0 : i32
    %c0_i32_1 = arith.constant 0 : i32
    return %c0_i32, %c0_i32_0 : i32, i32
  }
  func.func @transform_7(%arg0: i32) -> (i32, i32, i32) {
    %c0_i32 = arith.constant 0 : i32
    %c0_i32_0 = arith.constant 0 : i32
    %c0_i32_1 = arith.constant 0 : i32
    return %arg0, %c0_i32, %c0_i32_0 : i32, i32, i32
  }
}

</mosaic_0001>

<bundles_post_ra>
// kernel: model_forward_pallas.1
= control target key start
LH: loop header
LB: loop body
LE: loop exit
PB: predicated region body
PF: predicated region fallthrough
CT: control target
= control target key end

     0   :  { %12 = vsyncpa [#allocation3], 0  ;;  %s9427_s0 = inlined_call_operand.vmem [shape: f32[2,104,8], index: 0, kind: input, shape index: {}]   ;;  %s9428_s1 = inlined_call_operand.hbm [shape: f32[25,8,128], index: 1, kind: input, shape index: {}]   ;;  %s9429_s2 = inlined_call_operand.vmem [shape: f32[3,128,128], index: 2, kind: input, shape index: {}]   ;;  %s9430_s3 = inlined_call_operand.hbm [shape: f32[3,128,128], index: 3, kind: input, shape index: {}]   ;;  %s9431_s4 = inlined_call_operand.hbm [shape: f32[128,256], index: 4, kind: input, shape index: {}]   ;;  %s9432_s5 = inlined_call_operand.hbm [shape: f32[256,256], index: 5, kind: input, shape index: {}]   ;;  %s9433_s6 = inlined_call_operand.vmem [shape: f32[8,256], index: 6, kind: input, shape index: {}]   ;;  %s9434_s7 = inlined_call_operand.vmem [shape: f32[2,1,128], index: 7, kind: output, shape index: {}]  }
   0x1   :  { %13 = vsyncpa [#allocation5], 0 }
   0x2   :  { %14 = vsyncpa [#allocation8], 0  ;;  %s8080_s24 = smov 0  }
   0x3 LB: > { %s8086_s25 = sadd.s32 4294967295, %s8026_s24   ;;  %p5866_p0 = scmp.ge.s32.totalorder %s8026_s24, 1  ;;  %s8026_s24 = sphi %s8080_s24, %s20_s24  }
   0x4   : > { %p203_p1 = scmp.lt.s32.totalorder %s8026_s24, 3  ;;  %p9435_p2 = scmp.eq.s32.totalorder %s8086_s25, 0 }
   0x5   : > { %s8028_s27 = smov [#allocation4]   ;;  %s8029_s29 = smov [#allocation2]  }
   0x6   : > { %p8091_p3 = pnand %p5866_p0, %p203_p1  ;;  %s231_s28 = sshll.u32 %s8028_s27, 4  ;;  %s8095_s28 = int_to_ptr.vmem [resolvable:$true] %s231_s28 }
   0x7   : > { %s215_s30 = sshll.u32 %s8029_s29, 4  ;;  %s8030_s9 = smov [#allocation6]   ;;  %s8099_s30 = int_to_ptr.vmem [resolvable:$true] %s215_s30 }
   0x8   : > { %s9450_s26 = scalar_select %p8091_p3, 1, 0 }
   0x9   : > { %p7850_p4 = pneg %p8091_p3  ;;  %s244_s10 = sshll.u32 %s8030_s9, 4  ;;  %s8107_s10 = int_to_ptr.vmem [resolvable:$true] %s244_s10 }
   0xa   : > { %s7896_s13 = scalar_lea.hbm %s9430_s3, 6144 }
   0xb   : > { %p8103_p5 = pnand %p9435_p2, %p7850_p4  ;;  %p7897_p6 = scmp.ne.s32.totalorder %s9430_s3, %s7896_s13 }
   0xc   : > { %p7903_p10 = scmp.lt.u32.totalorder %s7896_s13, %s9430_s3 }
   0xd   : > { %p8117_p7 = pneg %p8103_p5 }
   0xf   : > { %p7899_p8 = pnand %p8117_p7, %p7897_p6 }
  0x11   : > { %p7900_p9 = pneg %p7899_p8 }
  0x13   : > { %p7905_p11 = pnand %p7903_p10, %p7900_p9 }
  0x15   : > { %7908 = shalt.err (!%p7905_p11)
}
  0x16   : > { %s7909_s19 = scalar_lea.vmem %s8095_s28, 6144  ;;  %p7917_p1 = scmp.lt.s32.totalorder %s8095_s28, %s8095_s28 }
  0x17   : > { %p7910_p12 = scmp.ne.s32.totalorder %s8095_s28, %s7909_s19  ;;  %p7918_p4 = scmp.lt.s32.totalorder %s7909_s19, %s7909_s19 }
  0x19   : > { %p7912_p13 = pnand %p7910_p12, %p8117_p7  ;;  %p7919_p6 = por %p7918_p4, %p7917_p1 }
  0x1b   : > { %p7913_p0 = pneg %p7912_p13 }
  0x1d   : > { %p7920_p8 = pnand %p7919_p6, %p7913_p0 }
  0x1f   : > { %7923 = shalt.err (!%p7920_p8)
}
  0x20   : > { %s8031_s20 = smov 128   ;;  %s8032_s21 = smov 8  }
  0x21   : > { %7856 = dma.hbm_to_vmem [thread:$0]  (!%p8103_p5), %s9430_s3, 6144, %s8095_s28, [#allocation5], %s8031_s20, %s8031_s20, %s8032_s21  }
  0x22   : > { %s7924_s9 = scalar_lea.hbm %s9428_s1, 3200 }
  0x23   : > { %p7925_p9 = scmp.ne.s32.totalorder %s9428_s1, %s7924_s9  ;;  %p7931_p12 = scmp.lt.u32.totalorder %s7924_s9, %s9428_s1 }
  0x25   : > { %p7927_p10 = pnand %p7925_p9, %p8117_p7 }
  0x27   : > { %p7928_p11 = pneg %p7927_p10 }
  0x29   : > { %p7933_p13 = pnand %p7931_p12, %p7928_p11 }
  0x2b   : > { %7936 = shalt.err (!%p7933_p13)
}
  0x2c   : > { %s7937_s28 = scalar_lea.vmem %s8099_s30, 3200  ;;  %p7945_p6 = scmp.lt.s32.totalorder %s8099_s30, %s8099_s30 }
  0x2d   : > { %p7938_p0 = scmp.ne.s32.totalorder %s8099_s30, %s7937_s28  ;;  %p7946_p8 = scmp.lt.s32.totalorder %s7937_s28, %s7937_s28 }
  0x2f   : > { %p7940_p1 = pnand %p7938_p0, %p8117_p7  ;;  %p7947_p9 = por %p7946_p8, %p7945_p6 }
  0x31   : > { %p7941_p4 = pneg %p7940_p1 }
  0x33   : > { %p7948_p10 = pnand %p7947_p9, %p7941_p4 }
  0x35   : > { %7951 = shalt.err (!%p7948_p10)
}
  0x36   : > { %7853 = dma.hbm_to_vmem [thread:$0]  (!%p8103_p5), %s9428_s1, 3200, %s8099_s30, [#allocation3], %s8031_s20, %s8031_s20, %s8032_s21  }
  0x37   : > { %s7952_s22 = scalar_lea.hbm %s9431_s4, 4096 }
  0x38   : > { %p7953_p11 = scmp.ne.s32.totalorder %s9431_s4, %s7952_s22  ;;  %p7959_p0 = scmp.lt.u32.totalorder %s7952_s22, %s9431_s4 }
  0x3a   : > { %p7955_p12 = pnand %p7953_p11, %p8117_p7 }
  0x3c   : > { %p7956_p13 = pneg %p7955_p12 }
  0x3e   : > { %p7961_p1 = pnand %p7959_p0, %p7956_p13 }
  0x40   : > { %7964 = shalt.err (!%p7961_p1)
}
  0x41   : > { %s7965_s30 = scalar_lea.vmem %s8107_s10, 4096  ;;  %p7973_p9 = scmp.lt.s32.totalorder %s8107_s10, %s8107_s10 }
  0x42   : > { %p7966_p4 = scmp.ne.s32.totalorder %s8107_s10, %s7965_s30  ;;  %p7974_p10 = scmp.lt.s32.totalorder %s7965_s30, %s7965_s30 }
  0x44   : > { %p7968_p6 = pnand %p7966_p4, %p8117_p7  ;;  %p7975_p11 = por %p7974_p10, %p7973_p9 }
  0x46   : > { %p7969_p8 = pneg %p7968_p6 }
  0x48   : > { %p7976_p12 = pnand %p7975_p11, %p7969_p8 }
  0x4a   : > { %7979 = shalt.err (!%p7976_p12)
}
  0x4b   : > { %s8033_s20 = smov 256   ;;  %s8034_s21 = smov 16  }
  0x4c   : > { %7859 = dma.hbm_to_vmem [thread:$0]  (!%p8103_p5), %s9431_s4, 4096, %s8107_s10, [#allocation5], %s8033_s20, %s8033_s20, %s8034_s21  }
  0x4d   : > { %s8035_s13 = smov [#allocation7]   ;;  %s7980_s17 = scalar_lea.hbm %s9432_s5, 8192 }
  0x4e   : > { %s257_s14 = sshll.u32 %s8035_s13, 4  ;;  %p7981_p13 = scmp.ne.s32.totalorder %s9432_s5, %s7980_s17  ;;  %s258_s14 = int_to_ptr.vmem [resolvable:$true] %s257_s14 }
  0x4f   : > { %p7987_p4 = scmp.lt.u32.totalorder %s7980_s17, %s9432_s5 }
  0x50   : > { %p7983_p0 = pnand %p7981_p13, %p8117_p7 }
  0x52   : > { %p7984_p1 = pneg %p7983_p0 }
  0x54   : > { %p7989_p6 = pnand %p7987_p4, %p7984_p1 }
  0x56   : > { %7992 = shalt.err (!%p7989_p6)
}
  0x57   : > { %s7993_s10 = scalar_lea.vmem %s258_s14, 8192  ;;  %p8001_p11 = scmp.lt.s32.totalorder %s258_s14, %s258_s14 }
  0x58   : > { %p7994_p8 = scmp.ne.s32.totalorder %s258_s14, %s7993_s10  ;;  %p8002_p12 = scmp.lt.s32.totalorder %s7993_s10, %s7993_s10 }
  0x5a   : > { %p7996_p9 = pnand %p7994_p8, %p8117_p7  ;;  %p8003_p2 = por %p8002_p12, %p8001_p11 }
  0x5c   : > { %p7997_p10 = pneg %p7996_p9 }
  0x5e   : > { %p8004_p3 = pnand %p8003_p2, %p7997_p10 }
  0x60   : > { %8007 = shalt.err (!%p8004_p3)
}
  0x61   : > { %7862 = dma.hbm_to_vmem [thread:$0]  (!%p8103_p5), %s9432_s5, 8192, %s258_s14, [#allocation8], %s8033_s20, %s8033_s20, %s8034_s21  }
  0x62   : > { %p9453_p13 = scmp.ne.s32.totalorder %s9450_s26, 0 }
  0x64   : > { %284 = sbr.rel (%p9453_p13) target bundleno = 2078 (0x81e), region = 48 }
  0x6b   : > { %p9454_p0 = scmp.eq.s32.totalorder %s8086_s25, 0 }
  0x6d   : > { %8013 = dma.done.wait (%p9454_p0), [#allocation3], 3200   ;;  %p9455_p7 = pmov %p9454_p0 }
  0x6e   : > { %p9456_p1 = pmov %p9454_p0 }
  0x6f   : > { %8015 = vsyncadd (%p9455_p7), [#allocation3], 4294964096 }
  0x70   : > { %8017 = dma.done.wait (%p9456_p1), [#allocation5], 10240   ;;  %p9457_p2 = pmov %p9454_p0 }
  0x71   : > { %p9458_p3 = pmov %p9454_p0 }
  0x72   : > { %8019 = vsyncadd (%p9457_p2), [#allocation5], 4294957056 }
  0x73   : > { %8021 = dma.done.wait (%p9458_p3), [#allocation8], 8192   ;;  %p9459_p5 = pmov %p9454_p0 }
  0x74   : > { %p326_p4 = scmp.lt.s32.totalorder %s8086_s25, 1  ;;  %vm357_vm0 = vcmask 64512   ;;  %v1160_v0 = vld [vmem:[#allocation2 + $0x28] sm:$0xff]  ;;  %v1327_v3 = vld [vmem:[#allocation2 + $0x30] sm:$0xff]  ;;  %v1494_v6 = vld [vmem:[#allocation2 + $0x38] sm:$0xff]  ;;  %vm8037_vm1 = vmmov 0  }
  0x75   : > { %8023 = vsyncadd (%p9459_p5), [#allocation8], 4294959104  ;;  %6672 = vmatprep.subr.mxu0 %v1160_v0  ;;  %v1661_v16 = vld [vmem:[#allocation2 + $0x40] sm:$0xff]  ;;  %v1828_v27 = vld [vmem:[#allocation2 + $0x48] sm:$0xff]  ;;  %vm4554_vm2 = vcmask 1046528   ;;  %vm4820_vm3 = vcmask 1045504  }
  0x76   : > { %s9487_s25 = smov (!%p326_p4, %s8086_s25), 1  ;;  %6673 = vmatpush3.msra.mxu0 %v1160_v0  ;;  %v1995_v38 = vld [vmem:[#allocation2 + $0x50] sm:$0xff]  ;;  %v2162_v49 = vld [vmem:[#allocation2 + $0x58] sm:$0xff]  ;;  %v356_v54 = vld [vmem:[#allocation2 + $0x8] sm:$0xff]  ;;  %vm5756_vm5 = vcmask 1040384  }
  0x77   : > { %s7833_s26 = smul.u32 104, %s9487_s25  ;;  %6689 = vmatprep.subr.mxu0 %v1327_v3  ;;  %6587 = vmatprep.subr.mxu1 %v356_v54  ;;  %v2329_v62 = vld [vmem:[#allocation2 + $0x60] sm:$0xff]  ;;  %s333_s28 = scalar_lea.vmem %s9434_s7, %s9487_s25 }
  0x78   : > { %6588 = vmatpush3.msra.mxu1 %v356_v54 }
  0x79   : > { %s8224_s9 = scalar_lea.vmem %s9427_s0, %s7833_s26 }
  0x7a   : > { %v1149_v1 = vld [vmem:[%s8224_s9 + $0x5] sm:$0xff]  ;;  %v8228_v2 = vld [vmem:[%s8224_s9 + $0xd] sm:$0xff]  ;;  %v8232_v4 = vld [vmem:[%s8224_s9 + $0x15] sm:$0xff] }
  0x7b   : > { %6674 = vmatprep.mubr.msk.f32.mxu0 %vm357_vm0, %v1149_v1  ;;  %v8239_v5 = vld [vmem:[%s8224_s9 + $0x1d] sm:$0xff]  ;;  %v8242_v7 = vld [vmem:[%s8224_s9 + $0x25] sm:$0xff]  ;;  %v8249_v8 = vld [vmem:[%s8224_s9 + $0x2d] sm:$0xff] }
  0x7c   : > { %6675 = vmatmul.mubr.msk.f32.vlgmr.msra.gmra.mrb[0].mxu0 %vm357_vm0, %v8228_v2  ;;  %v8252_v9 = vld [vmem:[%s8224_s9 + $0x35] sm:$0xff]  ;;  %v8259_v10 = vld [vmem:[%s8224_s9 + $0x3d] sm:$0xff]  ;;  %v8262_v11 = vld [vmem:[%s8224_s9 + $0x45] sm:$0xff] }
  0x7d   : > { %6690 = vmatpush3.msra.mxu0 %v1327_v3  ;;  %6677 = vmatprep.mubr.msk.f32.mxu0 %vm357_vm0, %v8232_v4  ;;  %v8269_v12 = vld [vmem:[%s8224_s9 + $0x4d] sm:$0xff]  ;;  %v8279_v15 = vld [vmem:[%s8224_s9 + $0x16] sm:$0xff]  ;;  %v8286_v17 = vld [vmem:[%s8224_s9 + $0x1e] sm:$0xff] }
  0x7e   : > { %6706 = vmatprep.subr.mxu0 %v1494_v6  ;;  %v1316_v13 = vld [vmem:[%s8224_s9 + $0x6] sm:$0xff]  ;;  %v8276_v14 = vld [vmem:[%s8224_s9 + $0xe] sm:$0xff]  ;;  %v8299_v20 = vld [vmem:[%s8224_s9 + $0x36] sm:$0xff] }
  0x7f   : > { %v8289_v18 = vld [vmem:[%s8224_s9 + $0x26] sm:$0xff]  ;;  %v8296_v19 = vld [vmem:[%s8224_s9 + $0x2e] sm:$0xff]  ;;  %v8306_v21 = vld [vmem:[%s8224_s9 + $0x3e] sm:$0xff] }
  0x80   : > { %6678 = vmatmul.mubr.msk.f32.gmra.mrb[2].mxu0 %vm357_vm0, %v8239_v5  ;;  %v8309_v22 = vld [vmem:[%s8224_s9 + $0x46] sm:$0xff]  ;;  %v8316_v23 = vld [vmem:[%s8224_s9 + $0x4e] sm:$0xff]  ;;  %v8326_v26 = vld [vmem:[%s8224_s9 + $0x17] sm:$0xff] }
  0x81   : > { %6680 = vmatprep.mubr.msk.f32.mxu0 %vm357_vm0, %v8242_v7  ;;  %v1483_v24 = vld [vmem:[%s8224_s9 + $0x7] sm:$0xff]  ;;  %v8323_v25 = vld [vmem:[%s8224_s9 + $0xf] sm:$0xff]  ;;  %v8333_v28 = vld [vmem:[%s8224_s9 + $0x1f] sm:$0xff] }
  0x82   : > { %v8336_v29 = vld [vmem:[%s8224_s9 + $0x27] sm:$0xff]  ;;  %v8343_v30 = vld [vmem:[%s8224_s9 + $0x2f] sm:$0xff]  ;;  %v8346_v31 = vld [vmem:[%s8224_s9 + $0x37] sm:$0xff] }
  0x83   : > { %v8353_v32 = vld [vmem:[%s8224_s9 + $0x3f] sm:$0xff]  ;;  %v8356_v33 = vld [vmem:[%s8224_s9 + $0x47] sm:$0xff]  ;;  %v8363_v34 = vld [vmem:[%s8224_s9 + $0x4f] sm:$0xff] }
  0x84   : > { %6681 = vmatmul.mubr.msk.f32.gmra.mrb[4].mxu0 %vm357_vm0, %v8249_v8  ;;  %v8366_v35 = vld [vmem:[%s8224_s9 + $0x8] sm:$0xff]  ;;  %v8373_v36 = vld [vmem:[%s8224_s9 + $0x10] sm:$0xff]  ;;  %v8376_v37 = vld [vmem:[%s8224_s9 + $0x18] sm:$0xff] }
  0x85   : > { %6683 = vmatprep.mubr.msk.f32.mxu0 %vm357_vm0, %v8252_v9  ;;  %v8383_v39 = vld [vmem:[%s8224_s9 + $0x20] sm:$0xff]  ;;  %v8386_v40 = vld [vmem:[%s8224_s9 + $0x28] sm:$0xff]  ;;  %v8393_v41 = vld [vmem:[%s8224_s9 + $0x30] sm:$0xff] }
  0x86   : > { %v8396_v42 = vld [vmem:[%s8224_s9 + $0x38] sm:$0xff]  ;;  %v8403_v43 = vld [vmem:[%s8224_s9 + $0x40] sm:$0xff]  ;;  %v8406_v44 = vld [vmem:[%s8224_s9 + $0x48] sm:$0xff] }
  0x87   : > { %v8413_v45 = vld [vmem:[%s8224_s9 + $0x50] sm:$0xff]  ;;  %v8423_v48 = vld [vmem:[%s8224_s9 + $0x19] sm:$0xff]  ;;  %v8430_v50 = vld [vmem:[%s8224_s9 + $0x21] sm:$0xff] }
  0x88   : > { %6684 = vmatmul.mubr.msk.f32.gmra.mrb[6].mxu0 %vm357_vm0, %v8259_v10  ;;  %v1817_v46 = vld [vmem:[%s8224_s9 + $0x9] sm:$0xff]  ;;  %v8420_v47 = vld [vmem:[%s8224_s9 + $0x11] sm:$0xff]  ;;  %v8443_v53 = vld [vmem:[%s8224_s9 + $0x39] sm:$0xff] }
  0x89   : > { %6686 = vmatprep.mubr.msk.f32.mxu0 %vm357_vm0, %v8262_v11  ;;  %v8433_v51 = vld [vmem:[%s8224_s9 + $0x29] sm:$0xff]  ;;  %v8440_v52 = vld [vmem:[%s8224_s9 + $0x31] sm:$0xff]  ;;  %9460 = vst [vmem:[#allocation12_spill] sm:$0xff] %v8443_v53  ;;  %v345_v55 = vld [vmem:[%s8224_s9 + $0x1] sm:$0xff] }
  0x8a   : > { %v8451_v56 = vld [vmem:[%s8224_s9 + $0x41] sm:$0xff]  ;;  %v8454_v57 = vld [vmem:[%s8224_s9 + $0x49] sm:$0xff]  ;;  %6589 = vmatprep.mubr.msk.f32.mxu1 %vm357_vm0, %v345_v55  ;;  %v8465_v58 = vld [vmem:[%s8224_s9 + $0x51] sm:$0xff] }
  0x8b   : > { %9461 = vst [vmem:[#allocation13_spill] sm:$0xff] %v8451_v56  ;;  %9462 = vst [vmem:[#allocation14_spill] sm:$0xff] %v8454_v57  ;;  %6590 = vmatmul.mubr.msk.f32.vlgmr.msra.gmra.mrb[0].mxu1 %vm357_vm0, %v1817_v46  ;;  %v8468_v59 = vld [vmem:[%s8224_s9 + $0xa] sm:$0xff]  ;;  %v8479_v60 = vld [vmem:[%s8224_s9 + $0x12] sm:$0xff] }
  0x8c   : > { %6687 = vmatmul.mubr.msk.f32.gmra.mrb[8].mxu0 %vm357_vm0, %v8269_v12  ;;  %6592 = vmatprep.mubr.msk.f32.mxu1 %vm357_vm0, %v8420_v47  ;;  %9463 = vst [vmem:[#allocation15_spill] sm:$0xff] %v8465_v58  ;;  %v8482_v61 = vld [vmem:[%s8224_s9 + $0x1a] sm:$0xff]  ;;  %v8493_v63 = vld [vmem:[%s8224_s9 + $0x22] sm:$0xff]  ;;  %v8496_v0 = vld [vmem:[%s8224_s9 + $0x2a] sm:$0xff] }
  0x8d   : > { %6691 = vmatprep.mubr.msk.f32.mxu0 %vm357_vm0, %v1316_v13  ;;  %9464 = vst [vmem:[#allocation16_spill] sm:$0xff] %v8482_v61  ;;  %9465 = vst [vmem:[#allocation17_spill] sm:$0xff] %v8493_v63  ;;  %v8507_v1 = vld [vmem:[%s8224_s9 + $0x32] sm:$0xff]  ;;  %v8510_v3 = vld [vmem:[%s8224_s9 + $0x3a] sm:$0xff] }
  0x8e   : > { %9466 = vst [vmem:[#allocation18_spill] sm:$0xff] %v8496_v0  ;;  %9467 = vst [vmem:[#allocation19_spill] sm:$0xff] %v8507_v1  ;;  %v334_v13 = vld [vmem:[%s8224_s9] sm:$0xff]  ;;  %v8566_v55 = vld [vmem:[%s8224_s9 + $0x2b] sm:$0xff] }
  0x8f   : > { %6593 = vmatmul.mubr.msk.f32.gmra.mrb[2].mxu1 %vm357_vm0, %v8423_v48  ;;  %9468 = vst [vmem:[#allocation20_spill] sm:$0xff] %v8510_v3  ;;  %v8563_v54 = vld [vmem:[%s8224_s9 + $0x23] sm:$0xff] }
  0x90   : > { %6692 = vmatmul.mubr.msk.f32.vlgmr.msra.gmra.mrb[0].mxu0 %vm357_vm0, %v8276_v14  ;;  %6595 = vmatprep.mubr.msk.f32.mxu1 %vm357_vm0, %v8430_v50 }
  0x91   : > { %6707 = vmatpush3.msra.mxu0 %v1494_v6  ;;  %6694 = vmatprep.mubr.msk.f32.mxu0 %vm357_vm0, %v8279_v15  ;;  %v344_v6 = vld [vmem:[#allocation2] sm:$0xff] }
  0x92   : > { %6723 = vmatprep.subr.mxu0 %v1661_v16  ;;  %6604 = vmatprep.subr.mxu1 %v344_v6 }
  0x93   : > { %6596 = vmatmul.mubr.msk.f32.gmra.mrb[4].mxu1 %vm357_vm0, %v8433_v51 }
  0x94   : > { %6695 = vmatmul.mubr.msk.f32.gmra.mrb[2].mxu0 %vm357_vm0, %v8286_v17  ;;  %6598 = vmatprep.mubr.msk.f32.mxu1 %vm357_vm0, %v8440_v52 }
  0x95   : > { %6697 = vmatprep.mubr.msk.f32.mxu0 %vm357_vm0, %v8289_v18  ;;  %6605 = vmatpush3.msra.mxu1 %v344_v6  ;;  %v8580_v6 = vld [vmem:[%s8224_s9 + $0x3b] sm:$0xff] }
  0x97   : > { %6599 = vmatmul.mubr.msk.f32.gmra.mrb[6].mxu1 %vm357_vm0, %v8443_v53 }
  0x98   : > { %6698 = vmatmul.mubr.msk.f32.gmra.mrb[4].mxu0 %vm357_vm0, %v8296_v19  ;;  %6601 = vmatprep.mubr.msk.f32.mxu1 %vm357_vm0, %v8451_v56 }
  0x99   : > { %6700 = vmatprep.mubr.msk.f32.mxu0 %vm357_vm0, %v8299_v20 }
  0x9b   : > { %6602 = vmatmul.mubr.msk.f32.gmra.mrb[8].mxu1 %vm357_vm0, %v8454_v57 }
  0x9c   : > { %6701 = vmatmul.mubr.msk.f32.gmra.mrb[6].mxu0 %vm357_vm0, %v8306_v21  ;;  %6606 = vmatprep.mubr.msk.f32.mxu1 %vm357_vm0, %v334_v13  ;;  %v659_v13 = vld [vmem:[#allocation2 + $0x10] sm:$0xff] }
  0x9d   : > { %6703 = vmatprep.mubr.msk.f32.mxu0 %vm357_vm0, %v8309_v22  ;;  %6621 = vmatprep.subr.mxu1 %v659_v13 }
  0x9f   : > { %6607 = vmatmul.mubr.msk.f32.vlgmr.msra.gmra.mrb[0].mxu1 %vm357_vm0, %v8366_v35 }
  0xa0   : > { %6704 = vmatmul.mubr.msk.f32.gmra.mrb[8].mxu0 %vm357_vm0, %v8316_v23  ;;  %6609 = vmatprep.mubr.msk.f32.mxu1 %vm357_vm0, %v8373_v36 }
  0xa1   : > { %6708 = vmatprep.mubr.msk.f32.mxu0 %vm357_vm0, %v1483_v24  ;;  %v8523_v24 = vld [vmem:[%s8224_s9 + $0x4a] sm:$0xff]  ;;  %6622 = vmatpush3.msra.mxu1 %v659_v13 }
  0xa2   : > { %9470 = vst [vmem:[#allocation22_spill] sm:$0xff] %v8523_v24  ;;  %v2663_v13 = vld [vmem:[#allocation2 + $0x70] sm:$0xff] }
  0xa3   : > { %6610 = vmatmul.mubr.msk.f32.gmra.mrb[2].mxu1 %vm357_vm0, %v8376_v37 }
  0xa4   : > { %6709 = vmatmul.mubr.msk.f32.vlgmr.msra.gmra.mrb[0].mxu0 %vm357_vm0, %v8323_v25  ;;  %6612 = vmatprep.mubr.msk.f32.mxu1 %vm357_vm0, %v8383_v39 }
  0xa5   : > { %6724 = vmatpush3.msra.mxu0 %v1661_v16  ;;  %6711 = vmatprep.mubr.msk.f32.mxu0 %vm357_vm0, %v8326_v26  ;;  %v8520_v16 = vld [vmem:[%s8224_s9 + $0x42] sm:$0xff] }
  0xa6   : > { %6740 = vmatprep.subr.mxu0 %v1828_v27  ;;  %9469 = vst [vmem:[#allocation21_spill] sm:$0xff] %v8520_v16 }
  0xa7   : > { %6613 = vmatmul.mubr.msk.f32.gmra.mrb[4].mxu1 %vm357_vm0, %v8386_v40 }
  0xa8   : > { %6712 = vmatmul.mubr.msk.f32.gmra.mrb[2].mxu0 %vm357_vm0, %v8333_v28  ;;  %6615 = vmatprep.mubr.msk.f32.mxu1 %vm357_vm0, %v8393_v41 }
  0xa9   : > { %6714 = vmatprep.mubr.msk.f32.mxu0 %vm357_vm0, %v8336_v29 }
  0xab   : > { %6616 = vmatmul.mubr.msk.f32.gmra.mrb[6].mxu1 %vm357_vm0, %v8396_v42 }
  0xac   : > { %6715 = vmatmul.mubr.msk.f32.gmra.mrb[4].mxu0 %vm357_vm0, %v8343_v30  ;;  %6618 = vmatprep.mubr.msk.f32.mxu1 %vm357_vm0, %v8403_v43 }
  0xad   : > { %6717 = vmatprep.mubr.msk.f32.mxu0 %vm357_vm0, %v8346_v31 }
  0xaf   : > { %6619 = vmatmul.mubr.msk.f32.gmra.mrb[8].mxu1 %vm357_vm0, %v8406_v44 }
  0xb0   : > { %6718 = vmatmul.mubr.msk.f32.gmra.mrb[6].mxu0 %vm357_vm0, %v8353_v32 }
  0xb1   : > { %6720 = vmatprep.mubr.msk.f32.mxu0 %vm357_vm0, %v8356_v33 }
  0xb4   : > { %6721 = vmatmul.mubr.msk.f32.gmra.mrb[8].mxu0 %vm357_vm0, %v8363_v34 }
  0xb5   : > { %6725 = vmatprep.mubr.msk.f32.mxu0 %vm357_vm0, %v8366_v35  ;;  %v8549_v35 = vld [vmem:[%s8224_s9 + $0x13] sm:$0xff] }
  0xb8   : > { %6726 = vmatmul.mubr.msk.f32.vlgmr.msra.gmra.mrb[0].mxu0 %vm357_vm0, %v8373_v36 }
  0xb9   : > { %6741 = vmatpush3.msra.mxu0 %v1828_v27  ;;  %6728 = vmatprep.mubr.msk.f32.mxu0 %vm357_vm0, %v8376_v37  ;;  %v8535_v27 = vld [vmem:[%s8224_s9 + $0x52] sm:$0xff] }
  0xba   : > { %6757 = vmatprep.subr.mxu0 %v1995_v38  ;;  %9471 = vst [vmem:[#allocation23_spill] sm:$0xff] %v8535_v27 }
  0xbc   : > { %6729 = vmatmul.mubr.msk.f32.gmra.mrb[2].mxu0 %vm357_vm0, %v8383_v39 }
  0xbd   : > { %6731 = vmatprep.mubr.msk.f32.mxu0 %vm357_vm0, %v8386_v40 }
  0xc0   : > { %6732 = vmatmul.mubr.msk.f32.gmra.mrb[4].mxu0 %vm357_vm0, %v8393_v41 }
  0xc1   : > { %6734 = vmatprep.mubr.msk.f32.mxu0 %vm357_vm0, %v8396_v42 }
  0xc4   : > { %6735 = vmatmul.mubr.msk.f32.gmra.mrb[6].mxu0 %vm357_vm0, %v8403_v43 }
  0xc5   : > { %6737 = vmatprep.mubr.msk.f32.mxu0 %vm357_vm0, %v8406_v44 }
  0xc8   : > { %6738 = vmatmul.mubr.msk.f32.gmra.mrb[8].mxu0 %vm357_vm0, %v8413_v45 }
  0xc9   : > { %6742 = vmatprep.mubr.msk.f32.mxu0 %vm357_vm0, %v1817_v46  ;;  %v8552_v46 = vld [vmem:[%s8224_s9 + $0x1b] sm:$0xff] }
  0xcc   : > { %6743 = vmatmul.mubr.msk.f32.vlgmr.msra.gmra.mrb[0].mxu0 %vm357_vm0, %v8420_v47 }
  0xcd   : > { %6758 = vmatpush3.msra.mxu0 %v1995_v38  ;;  %6745 = vmatprep.mubr.msk.f32.mxu0 %vm357_vm0, %v8423_v48  ;;  %v8538_v38 = vld [vmem:[%s8224_s9 + $0xb] sm:$0xff] }
  0xce   : > { %6774 = vmatprep.subr.mxu0 %v2162_v49 }
  0xd0   : > { %6746 = vmatmul.mubr.msk.f32.gmra.mrb[2].mxu0 %vm357_vm0, %v8430_v50 }
  0xd1   : > { %6748 = vmatprep.mubr.msk.f32.mxu0 %vm357_vm0, %v8433_v51 }
  0xd4   : > { %6749 = vmatmul.mubr.msk.f32.gmra.mrb[4].mxu0 %vm357_vm0, %v8440_v52 }
  0xd5   : > { %6751 = vmatprep.mubr.msk.f32.mxu0 %vm357_vm0, %v8443_v53  ;;  %v2318_v53 = vld [vmem:[%s8224_s9 + $0xc] sm:$0xff] }
  0xd8   : > { %6752 = vmatmul.mubr.msk.f32.gmra.mrb[6].mxu0 %vm357_vm0, %v8451_v56  ;;  %v8605_v56 = vld [vmem:[%s8224_s9 + $0x53] sm:$0xff] }
  0xd9   : > { %6754 = vmatprep.mubr.msk.f32.mxu0 %vm357_vm0, %v8454_v57  ;;  %v8593_v57 = vld [vmem:[%s8224_s9 + $0x4b] sm:$0xff]  ;;  %9472 = vst [vmem:[#allocation24_spill] sm:$0xff] %v8605_v56 }
  0xdc   : > { %6755 = vmatmul.mubr.msk.f32.gmra.mrb[8].mxu0 %vm357_vm0, %v8465_v58  ;;  %v8590_v58 = vld [vmem:[%s8224_s9 + $0x43] sm:$0xff] }
  0xdd   : > { %6759 = vmatprep.mubr.msk.f32.mxu0 %vm357_vm0, %v8468_v59 }
  0xe0   : > { %6760 = vmatmul.mubr.msk.f32.vlgmr.msra.gmra.mrb[0].mxu0 %vm357_vm0, %v8479_v60 }
  0xe1   : > { %6775 = vmatpush3.msra.mxu0 %v2162_v49  ;;  %6762 = vmatprep.mubr.msk.f32.mxu0 %vm357_vm0, %v8482_v61  ;;  %v2496_v49 = vld [vmem:[#allocation2 + $0x68] sm:$0xff] }
  0xe2   : > { %6791 = vmatprep.subr.mxu0 %v2329_v62 }
  0xe4   : > { %6763 = vmatmul.mubr.msk.f32.gmra.mrb[2].mxu0 %vm357_vm0, %v8493_v63 }
  0xe5   : > { %6765 = vmatprep.mubr.msk.f32.mxu0 %vm357_vm0, %v8496_v0 }
  0xe8   : > { %6766 = vmatmul.mubr.msk.f32.gmra.mrb[4].mxu0 %vm357_vm0, %v8507_v1 }
  0xe9   : > { %6768 = vmatprep.mubr.msk.f32.mxu0 %vm357_vm0, %v8510_v3 }
  0xec   : > { %6769 = vmatmul.mubr.msk.f32.gmra.mrb[6].mxu0 %vm357_vm0, %v8520_v16 }
  0xed   : > { %6771 = vmatprep.mubr.msk.f32.mxu0 %vm357_vm0, %v8523_v24 }
  0xf0   : > { %6772 = vmatmul.mubr.msk.f32.gmra.mrb[8].mxu0 %vm357_vm0, %v8535_v27  ;;  %v648_v27 = vld [vmem:[%s8224_s9 + $0x2] sm:$0xff] }
  0xf1   : > { %6776 = vmatprep.mubr.msk.f32.mxu0 %vm357_vm0, %v8538_v38  ;;  %6623 = vmatprep.mubr.msk.f32.mxu1 %vm357_vm0, %v648_v27  ;;  %v8619_v27 = vld [vmem:[%s8224_s9 + $0x1c] sm:$0xff] }
  0xf2   : > { %6624 = vmatmul.mubr.msk.f32.vlgmr.msra.gmra.mrb[0].mxu1 %vm357_vm0, %v8468_v59  ;;  %v8616_v59 = vld [vmem:[%s8224_s9 + $0x14] sm:$0xff] }
  0xf3   : > { %6626 = vmatprep.mubr.msk.f32.mxu1 %vm357_vm0, %v8479_v60 }
  0xf4   : > { %6777 = vmatmul.mubr.msk.f32.vlgmr.msra.gmra.mrb[0].mxu0 %vm357_vm0, %v8549_v35 }
  0xf5   : > { %6792 = vmatpush3.msra.mxu0 %v2329_v62  ;;  %6779 = vmatprep.mubr.msk.f32.mxu0 %vm357_vm0, %v8552_v46  ;;  %v8577_v62 = vld [vmem:[%s8224_s9 + $0x33] sm:$0xff] }
  0xf6   : > { %6808 = vmatprep.subr.mxu0 %v2496_v49  ;;  %6627 = vmatmul.mubr.msk.f32.gmra.mrb[2].mxu1 %vm357_vm0, %v8482_v61  ;;  %v8660_v61 = vld [vmem:[%s8224_s9 + $0x4c] sm:$0xff] }
  0xf7   : > { %6629 = vmatprep.mubr.msk.f32.mxu1 %vm357_vm0, %v8493_v63  ;;  %v8633_v63 = vld [vmem:[%s8224_s9 + $0x2c] sm:$0xff] }
  0xf8   : > { %6780 = vmatmul.mubr.msk.f32.gmra.mrb[2].mxu0 %vm357_vm0, %v8563_v54 }
  0xf9   : > { %6782 = vmatprep.mubr.msk.f32.mxu0 %vm357_vm0, %v8566_v55 }
  0xfa   : > { %6630 = vmatmul.mubr.msk.f32.gmra.mrb[4].mxu1 %vm357_vm0, %v8496_v0  ;;  %v815_v0 = vld [vmem:[%s8224_s9 + $0x3] sm:$0xff] }
  0xfb   : > { %6632 = vmatprep.mubr.msk.f32.mxu1 %vm357_vm0, %v8507_v1  ;;  %v8647_v1 = vld [vmem:[%s8224_s9 + $0x3c] sm:$0xff] }
  0xfc   : > { %6783 = vmatmul.mubr.msk.f32.gmra.mrb[4].mxu0 %vm357_vm0, %v8577_v62 }
  0xfd   : > { %6785 = vmatprep.mubr.msk.f32.mxu0 %vm357_vm0, %v8580_v6 }
  0xfe   : > { %6633 = vmatmul.mubr.msk.f32.gmra.mrb[6].mxu1 %vm357_vm0, %v8510_v3  ;;  %v826_v3 = vld [vmem:[#allocation2 + $0x18] sm:$0xff] }
  0xff   : > { %6635 = vmatprep.mubr.msk.f32.mxu1 %vm357_vm0, %v8520_v16  ;;  %v8657_v16 = vld [vmem:[%s8224_s9 + $0x44] sm:$0xff]  ;;  %6638 = vmatprep.subr.mxu1 %v826_v3 }
 0x100   : > { %6786 = vmatmul.mubr.msk.f32.gmra.mrb[6].mxu0 %vm357_vm0, %v8590_v58  ;;  %6639 = vmatpush3.msra.mxu1 %v826_v3  ;;  %v982_v3 = vld [vmem:[%s8224_s9 + $0x4] sm:$0xff] }
 0x101   : > { %6788 = vmatprep.mubr.msk.f32.mxu0 %vm357_vm0, %v8593_v57 }
 0x102   : > { %6636 = vmatmul.mubr.msk.f32.gmra.mrb[8].mxu1 %vm357_vm0, %v8523_v24  ;;  %v8672_v24 = vld [vmem:[%s8224_s9 + $0x54] sm:$0xff] }
 0x103   : > { %6640 = vmatprep.mubr.msk.f32.mxu1 %vm357_vm0, %v815_v0  ;;  %v2830_v0 = vld [vmem:[#allocation2 + $0x78] sm:$0xff] }
 0x104   : > { %6789 = vmatmul.mubr.msk.f32.gmra.mrb[8].mxu0 %vm357_vm0, %v8605_v56  ;;  %v8630_v56 = vld [vmem:[%s8224_s9 + $0x24] sm:$0xff] }
 0x105   : > { %6793 = vmatprep.mubr.msk.f32.mxu0 %vm357_vm0, %v2318_v53 }
 0x106   : > { %6641 = vmatmul.mubr.msk.f32.vlgmr.msra.gmra.mrb[0].mxu1 %vm357_vm0, %v8538_v38  ;;  %v8714_v38 = vld [vmem:[%s8224_s9 + $0x55] sm:$0xff] }
 0x107   : > { %6643 = vmatprep.mubr.msk.f32.mxu1 %vm357_vm0, %v8549_v35 }
 0x108   : > { %6794 = vmatmul.mubr.msk.f32.vlgmr.msra.gmra.mrb[0].mxu0 %vm357_vm0, %v8616_v59 }
 0x109   : > { %6809 = vmatpush3.msra.mxu0 %v2496_v49  ;;  %6796 = vmatprep.mubr.msk.f32.mxu0 %vm357_vm0, %v8619_v27  ;;  %v8644_v49 = vld [vmem:[%s8224_s9 + $0x34] sm:$0xff] }
 0x10a   : > { %6825 = vmatprep.subr.mxu0 %v2663_v13  ;;  %6644 = vmatmul.mubr.msk.f32.gmra.mrb[2].mxu1 %vm357_vm0, %v8552_v46 }
 0x10b   : > { %6646 = vmatprep.mubr.msk.f32.mxu1 %vm357_vm0, %v8563_v54 }
 0x10c   : > { %6797 = vmatmul.mubr.msk.f32.gmra.mrb[2].mxu0 %vm357_vm0, %v8630_v56 }
 0x10d   : > { %6799 = vmatprep.mubr.msk.f32.mxu0 %vm357_vm0, %v8633_v63 }
 0x10e   : > { %6647 = vmatmul.mubr.msk.f32.gmra.mrb[4].mxu1 %vm357_vm0, %v8566_v55 }
 0x10f   : > { %6649 = vmatprep.mubr.msk.f32.mxu1 %vm357_vm0, %v8577_v62 }
 0x110   : > { %6800 = vmatmul.mubr.msk.f32.gmra.mrb[4].mxu0 %vm357_vm0, %v8644_v49 }
 0x111   : > { %6802 = vmatprep.mubr.msk.f32.mxu0 %vm357_vm0, %v8647_v1 }
 0x112   : > { %6650 = vmatmul.mubr.msk.f32.gmra.mrb[6].mxu1 %vm357_vm0, %v8580_v6 }
 0x113   : > { %6652 = vmatprep.mubr.msk.f32.mxu1 %vm357_vm0, %v8590_v58 }
 0x114   : > { %6803 = vmatmul.mubr.msk.f32.gmra.mrb[6].mxu0 %vm357_vm0, %v8657_v16 }
 0x115   : > { %6805 = vmatprep.mubr.msk.f32.mxu0 %vm357_vm0, %v8660_v61 }
 0x116   : > { %6653 = vmatmul.mubr.msk.f32.gmra.mrb[8].mxu1 %vm357_vm0, %v8593_v57 }
 0x117   : > { %6657 = vmatprep.mubr.msk.f32.mxu1 %vm357_vm0, %v982_v3  ;;  %v9473_v3 = vld [vmem:[#allocation12_spill] sm:$0xff] }
 0x118   : > { %6806 = vmatmul.mubr.msk.f32.gmra.mrb[8].mxu0 %vm357_vm0, %v8672_v24 }
 0x119   : > { %6810 = vmatprep.mubr.msk.f32.mxu0 %vm357_vm0, %v8228_v2  ;;  %v993_v2 = vld [vmem:[#allocation2 + $0x20] sm:$0xff] }
 0x11a   : > { %6655 = vmatprep.subr.mxu1 %v993_v2 }
 0x11b   : > { %6656 = vmatpush3.msra.mxu1 %v993_v2  ;;  %v3498_v2 = vld [vmem:[#allocation2 + $0x98] sm:$0xff] }
 0x11c   : > { %6811 = vmatmul.mubr.msk.f32.vlgmr.msra.gmra.mrb[0].mxu0 %vm357_vm0, %v8232_v4  ;;  %6658 = vmatmul.mubr.msk.f32.vlgmr.msra.gmra.mrb[0].mxu1 %vm357_vm0, %v2318_v53  ;;  %v2997_v53 = vld [vmem:[#allocation2 + $0x80] sm:$0xff] }
 0x11d   : > { %6826 = vmatpush3.msra.mxu0 %v2663_v13  ;;  %6813 = vmatprep.mubr.msk.f32.mxu0 %vm357_vm0, %v8239_v5  ;;  %v3164_v13 = vld [vmem:[#allocation2 + $0x88] sm:$0xff] }
 0x11e   : > { %6842 = vmatprep.subr.mxu0 %v2830_v0  ;;  %6660 = vmatprep.mubr.msk.f32.mxu1 %vm357_vm0, %v8616_v59 }
 0x120   : > { %6814 = vmatmul.mubr.msk.f32.gmra.mrb[2].mxu0 %vm357_vm0, %v8242_v7  ;;  %6661 = vmatmul.mubr.msk.f32.gmra.mrb[2].mxu1 %vm357_vm0, %v8619_v27 }
 0x121   : > { %6816 = vmatprep.mubr.msk.f32.mxu0 %vm357_vm0, %v8249_v8  ;;  %6663 = vmatprep.mubr.msk.f32.mxu1 %vm357_vm0, %v8630_v56 }
 0x124   : > { %6817 = vmatmul.mubr.msk.f32.gmra.mrb[4].mxu0 %vm357_vm0, %v8252_v9  ;;  %6664 = vmatmul.mubr.msk.f32.gmra.mrb[4].mxu1 %vm357_vm0, %v8633_v63 }
 0x125   : > { %6819 = vmatprep.mubr.msk.f32.mxu0 %vm357_vm0, %v8259_v10  ;;  %6666 = vmatprep.mubr.msk.f32.mxu1 %vm357_vm0, %v8644_v49 }
 0x128   : > { %6820 = vmatmul.mubr.msk.f32.gmra.mrb[6].mxu0 %vm357_vm0, %v8262_v11  ;;  %6667 = vmatmul.mubr.msk.f32.gmra.mrb[6].mxu1 %vm357_vm0, %v8647_v1 }
 0x129   : > { %6822 = vmatprep.mubr.msk.f32.mxu0 %vm357_vm0, %v8269_v12  ;;  %6669 = vmatprep.mubr.msk.f32.mxu1 %vm357_vm0, %v8657_v16 }
 0x12c   : > { %6823 = vmatmul.mubr.msk.f32.gmra.mrb[8].mxu0 %vm357_vm0, %v8714_v38  ;;  %6670 = vmatmul.mubr.msk.f32.gmra.mrb[8].mxu1 %vm357_vm0, %v8660_v61 }
 0x12d   : > { %6827 = vmatprep.mubr.msk.f32.mxu0 %vm357_vm0, %v8276_v14  ;;  %v8751_v14 = vld [vmem:[%s8224_s9 + $0x56] sm:$0xff] }
 0x130   : > { %6828 = vmatmul.mubr.msk.f32.vlgmr.msra.gmra.mrb[0].mxu0 %vm357_vm0, %v8279_v15 }
 0x131   : > { %6843 = vmatpush3.msra.mxu0 %v2830_v0  ;;  %6830 = vmatprep.mubr.msk.f32.mxu0 %vm357_vm0, %v8286_v17  ;;  %v3331_v0 = vld [vmem:[#allocation2 + $0x90] sm:$0xff] }
 0x132   : > { %6859 = vmatprep.subr.mxu0 %v2997_v53 }
 0x134   : > { %6831 = vmatmul.mubr.msk.f32.gmra.mrb[2].mxu0 %vm357_vm0, %v8289_v18 }
 0x135   : > { %6833 = vmatprep.mubr.msk.f32.mxu0 %vm357_vm0, %v8296_v19 }
 0x138   : > { %6834 = vmatmul.mubr.msk.f32.gmra.mrb[4].mxu0 %vm357_vm0, %v8299_v20 }
 0x139   : > { %6836 = vmatprep.mubr.msk.f32.mxu0 %vm357_vm0, %v8306_v21 }
 0x13c   : > { %6837 = vmatmul.mubr.msk.f32.gmra.mrb[6].mxu0 %vm357_vm0, %v8309_v22 }
 0x13d   : > { %6839 = vmatprep.mubr.msk.f32.mxu0 %vm357_vm0, %v8316_v23 }
 0x140   : > { %6840 = vmatmul.mubr.msk.f32.gmra.mrb[8].mxu0 %vm357_vm0, %v8751_v14 }
 0x141   : > { %6844 = vmatprep.mubr.msk.f32.mxu0 %vm357_vm0, %v8323_v25  ;;  %v8774_v25 = vld [vmem:[%s8224_s9 + $0x57] sm:$0xff] }
 0x144   : > { %6845 = vmatmul.mubr.msk.f32.vlgmr.msra.gmra.mrb[0].mxu0 %vm357_vm0, %v8326_v26 }
 0x145   : > { %6860 = vmatpush3.msra.mxu0 %v2997_v53  ;;  %6847 = vmatprep.mubr.msk.f32.mxu0 %vm357_vm0, %v8333_v28  ;;  %v9474_v53 = vld [vmem:[#allocation13_spill] sm:$0xff] }
 0x146   : > { %6876 = vmatprep.subr.mxu0 %v3164_v13 }
 0x148   : > { %6848 = vmatmul.mubr.msk.f32.gmra.mrb[2].mxu0 %vm357_vm0, %v8336_v29 }
 0x149   : > { %6850 = vmatprep.mubr.msk.f32.mxu0 %vm357_vm0, %v8343_v30 }
 0x14c   : > { %6851 = vmatmul.mubr.msk.f32.gmra.mrb[4].mxu0 %vm357_vm0, %v8346_v31 }
 0x14d   : > { %6853 = vmatprep.mubr.msk.f32.mxu0 %vm357_vm0, %v8353_v32 }
 0x150   : > { %6854 = vmatmul.mubr.msk.f32.gmra.mrb[6].mxu0 %vm357_vm0, %v8356_v33 }
 0x151   : > { %6856 = vmatprep.mubr.msk.f32.mxu0 %vm357_vm0, %v8363_v34 }
 0x154   : > { %6857 = vmatmul.mubr.msk.f32.gmra.mrb[8].mxu0 %vm357_vm0, %v8774_v25 }
 0x155   : > { %6861 = vmatprep.mubr.msk.f32.mxu0 %vm357_vm0, %v8373_v36  ;;  %v8797_v36 = vld [vmem:[%s8224_s9 + $0x58] sm:$0xff] }
 0x158   : > { %6862 = vmatmul.mubr.msk.f32.vlgmr.msra.gmra.mrb[0].mxu0 %vm357_vm0, %v8376_v37 }
 0x159   : > { %6877 = vmatpush3.msra.mxu0 %v3164_v13  ;;  %6864 = vmatprep.mubr.msk.f32.mxu0 %vm357_vm0, %v8383_v39  ;;  %v9478_v13 = vld [vmem:[#allocation17_spill] sm:$0xff] }
 0x15a   : > { %6893 = vmatprep.subr.mxu0 %v3331_v0 }
 0x15c   : > { %6865 = vmatmul.mubr.msk.f32.gmra.mrb[2].mxu0 %vm357_vm0, %v8386_v40 }
 0x15d   : > { %6867 = vmatprep.mubr.msk.f32.mxu0 %vm357_vm0, %v8393_v41 }
 0x160   : > { %6868 = vmatmul.mubr.msk.f32.gmra.mrb[4].mxu0 %vm357_vm0, %v8396_v42 }
 0x161   : > { %6870 = vmatprep.mubr.msk.f32.mxu0 %vm357_vm0, %v8403_v43 }
 0x164   : > { %6871 = vmatmul.mubr.msk.f32.gmra.mrb[6].mxu0 %vm357_vm0, %v8406_v44 }
 0x165   : > { %6873 = vmatprep.mubr.msk.f32.mxu0 %vm357_vm0, %v8413_v45 }
 0x168   : > { %6874 = vmatmul.mubr.msk.f32.gmra.mrb[8].mxu0 %vm357_vm0, %v8797_v36 }
 0x169   : > { %6878 = vmatprep.mubr.msk.f32.mxu0 %vm357_vm0, %v8420_v47  ;;  %v9475_v47 = vld [vmem:[#allocation14_spill] sm:$0xff] }
 0x16c   : > { %6879 = vmatmul.mubr.msk.f32.vlgmr.msra.gmra.mrb[0].mxu0 %vm357_vm0, %v8423_v48  ;;  %v9476_v48 = vld [vmem:[#allocation15_spill] sm:$0xff] }
 0x16d   : > { %6894 = vmatpush3.msra.mxu0 %v3331_v0  ;;  %6881 = vmatprep.mubr.msk.f32.mxu0 %vm357_vm0, %v8430_v50  ;;  %v3162_v50 = vld [vmem:[%s8224_s9 + $0x59] sm:$0xff] }
 0x16e   : > { %6910 = vmatprep.subr.mxu0 %v3498_v2  ;;  %v9479_v0 = vld [vmem:[#allocation18_spill] sm:$0xff] }
 0x170   : > { %6882 = vmatmul.mubr.msk.f32.gmra.mrb[2].mxu0 %vm357_vm0, %v8433_v51  ;;  %v3665_v51 = vld [vmem:[#allocation2 + $0xa0] sm:$0xff] }
 0x171   : > { %6884 = vmatprep.mubr.msk.f32.mxu0 %vm357_vm0, %v8440_v52  ;;  %v9477_v52 = vld [vmem:[#allocation16_spill] sm:$0xff] }
 0x174   : > { %6885 = vmatmul.mubr.msk.f32.gmra.mrb[4].mxu0 %vm357_vm0, %v9473_v3  ;;  %v9480_v3 = vld [vmem:[#allocation19_spill] sm:$0xff] }
 0x175   : > { %6887 = vmatprep.mubr.msk.f32.mxu0 %vm357_vm0, %v9474_v53  ;;  %v9481_v53 = vld [vmem:[#allocation20_spill] sm:$0xff] }
 0x178   : > { %6888 = vmatmul.mubr.msk.f32.gmra.mrb[6].mxu0 %vm357_vm0, %v9475_v47  ;;  %v6129_v47 = vld [vmem:[%s9429_s2 + $0x88] sm:$0xff] }
 0x179   : > { %6890 = vmatprep.mubr.msk.f32.mxu0 %vm357_vm0, %v9476_v48  ;;  %v6130_v48 = vld [vmem:[%s9429_s2 + $0x90] sm:$0xff] }
 0x17c   : > { %6891 = vmatmul.mubr.msk.f32.gmra.mrb[8].mxu0 %vm357_vm0, %v3162_v50  ;;  %v9483_v50 = vld [vmem:[#allocation22_spill] sm:$0xff] }
 0x17d   : > { %6895 = vmatprep.mubr.msk.f32.mxu0 %vm357_vm0, %v8479_v60  ;;  %v9482_v60 = vld [vmem:[#allocation21_spill] sm:$0xff] }
 0x180   : > { %6896 = vmatmul.mubr.msk.f32.vlgmr.msra.gmra.mrb[0].mxu0 %vm357_vm0, %v9477_v52  ;;  %v8036_v52 = vmov 0.0|0.0  }
 0x181   : > { %6911 = vmatpush3.msra.mxu0 %v3498_v2  ;;  %6898 = vmatprep.mubr.msk.f32.mxu0 %vm357_vm0, %v9478_v13  ;;  %v6128_v2 = vld [vmem:[%s9429_s2 + $0x80] sm:$0xff] }
 0x182   : > { %6927 = vmatprep.subr.mxu0 %v3665_v51  ;;  %7321 = vmatprep.subr.bf16.mxu1 %v8036_v52  ;;  %v7322_v13 = vpack.c.bf16 %v6129_v47, %v6128_v2  ;;  %v6133_v2 = vld [vmem:[%s9429_s2 + $0xa8] sm:$0xff] }
 0x184   : > { %6899 = vmatmul.mubr.msk.f32.gmra.mrb[2].mxu0 %vm357_vm0, %v9479_v0  ;;  %v6131_v0 = vld [vmem:[%s9429_s2 + $0x98] sm:$0xff]  ;;  %7323 = vmatpush3.bf16.msra.mxu1 %v7322_v13 }
 0x185   : > { %6901 = vmatprep.mubr.msk.f32.mxu0 %vm357_vm0, %v9480_v3  ;;  %v9484_v3 = vld [vmem:[#allocation23_spill] sm:$0xff]  ;;  %7324 = vmatprep.subr.bf16.mxu1 %v8036_v52  ;;  %v6135_v13 = vld [vmem:[%s9429_s2 + $0xb8] sm:$0xff] }
 0x188   : > { %6902 = vmatmul.mubr.msk.f32.gmra.mrb[4].mxu0 %vm357_vm0, %v9481_v53  ;;  %v3329_v53 = vld [vmem:[%s8224_s9 + $0x5a] sm:$0xff] }
 0x189   : > { %6904 = vmatprep.mubr.msk.f32.mxu0 %vm357_vm0, %v9482_v60  ;;  %v7325_v60 = vpack.c.bf16 %v6131_v0, %v6130_v48  ;;  %v6134_v48 = vld [vmem:[%s9429_s2 + $0xb0] sm:$0xff]  ;;  %v6136_v0 = vld [vmem:[%s9429_s2 + $0xc0] sm:$0xff] }
 0x18b   : > { %7326 = vmatpush3.bf16.msra.mxu1 %v7325_v60 }
 0x18c   : > { %6905 = vmatmul.mubr.msk.f32.gmra.mrb[6].mxu0 %vm357_vm0, %v9483_v50  ;;  %v6132_v50 = vld [vmem:[%s9429_s2 + $0xa0] sm:$0xff]  ;;  %7327 = vmatprep.subr.bf16.mxu1 %v8036_v52 }
 0x18d   : > { %6907 = vmatprep.mubr.msk.f32.mxu0 %vm357_vm0, %v9484_v3  ;;  %v7328_v47 = vpack.c.bf16 %v6133_v2, %v6132_v50  ;;  %v3832_v3 = vld [vmem:[#allocation2 + $0xa8] sm:$0xff] }
 0x18f   : > { %7329 = vmatpush3.bf16.msra.mxu1 %v7328_v47 }
 0x190   : > { %6908 = vmatmul.mubr.msk.f32.gmra.mrb[8].mxu0 %vm357_vm0, %v3329_v53  ;;  %7330 = vmatprep.subr.bf16.mxu1 %v8036_v52  ;;  %v6137_v53 = vld [vmem:[%s9429_s2 + $0xc8] sm:$0xff] }
 0x191   : > { %6912 = vmatprep.mubr.msk.f32.mxu0 %vm357_vm0, %v8549_v35  ;;  %v7331_v35 = vpack.c.bf16 %v6135_v13, %v6134_v48  ;;  %v4514_v48 = vld [vmem:[%s9429_s2 + $0x18] sm:$0xff] }
 0x193   : > { %7332 = vmatpush3.bf16.msra.mxu1 %v7331_v35 }
 0x194   : > { %6913 = vmatmul.mubr.msk.f32.vlgmr.msra.gmra.mrb[0].mxu0 %vm357_vm0, %v8552_v46  ;;  %v7334_v46 = vpack.c.bf16 %v6137_v53, %v6136_v0  ;;  %7333 = vmatprep.subr.bf16.mxu1 %v8036_v52  ;;  %v4515_v53 = vld [vmem:[%s9429_s2 + $0x20] sm:$0xff] }
 0x195   : > { %6928 = vmatpush3.msra.mxu0 %v3665_v51  ;;  %6915 = vmatprep.mubr.msk.f32.mxu0 %vm357_vm0, %v8563_v54  ;;  %v9485_v54 = vld [vmem:[#allocation24_spill] sm:$0xff] }
 0x196   : > { %6944 = vmatprep.subr.mxu0 %v3832_v3 }
 0x197   : > { %7335 = vmatpush3.bf16.msra.mxu1 %v7334_v46  ;;  %v4516_v46 = vld [vmem:[%s9429_s2 + $0x28] sm:$0xff] }
 0x198   : > { %6916 = vmatmul.mubr.msk.f32.gmra.mrb[2].mxu0 %vm357_vm0, %v8566_v55  ;;  %7336 = vmatprep.subr.bf16.mxu1 %v8036_v52  ;;  %v3496_v55 = vld [vmem:[%s8224_s9 + $0x5b] sm:$0xff] }
 0x199   : > { %6918 = vmatprep.mubr.msk.f32.mxu0 %vm357_vm0, %v8577_v62  ;;  %v3999_v62 = vld [vmem:[#allocation2 + $0xb0] sm:$0xff] }
 0x19c   : > { %6919 = vmatmul.mubr.msk.f32.gmra.mrb[4].mxu0 %vm357_vm0, %v8580_v6 }
 0x19d   : > { %6921 = vmatprep.mubr.msk.f32.mxu0 %vm357_vm0, %v8590_v58 }
 0x1a0   : > { %6922 = vmatmul.mubr.msk.f32.gmra.mrb[6].mxu0 %vm357_vm0, %v8593_v57  ;;  %v4166_v57 = vld [vmem:[#allocation2 + $0xb8] sm:$0xff] }
 0x1a1   : > { %6924 = vmatprep.mubr.msk.f32.mxu0 %vm357_vm0, %v9485_v54 }
 0x1a4   : > { %6925 = vmatmul.mubr.msk.f32.gmra.mrb[8].mxu0 %vm357_vm0, %v3496_v55 }
 0x1a5   : > { %6929 = vmatprep.mubr.msk.f32.mxu0 %vm357_vm0, %v8616_v59 }
 0x1a8   : > { %6930 = vmatmul.mubr.msk.f32.vlgmr.msra.gmra.mrb[0].mxu0 %vm357_vm0, %v8619_v27 }
 0x1a9   : > { %6945 = vmatpush3.msra.mxu0 %v3832_v3  ;;  %6932 = vmatprep.mubr.msk.f32.mxu0 %vm357_vm0, %v8630_v56  ;;  %v3663_v56 = vld [vmem:[%s8224_s9 + $0x5c] sm:$0xff]  ;;  %v4513_v3 = vld [vmem:[%s9429_s2 + $0x10] sm:$0xff] }
 0x1aa   : > { %6961 = vmatprep.subr.mxu0 %v3999_v62 }
 0x1ac   : > { %6933 = vmatmul.mubr.msk.f32.gmra.mrb[2].mxu0 %vm357_vm0, %v8633_v63 }
 0x1ad   : > { %6935 = vmatprep.mubr.msk.f32.mxu0 %vm357_vm0, %v8644_v49 }
 0x1b0   : > { %6936 = vmatmul.mubr.msk.f32.gmra.mrb[4].mxu0 %vm357_vm0, %v8647_v1 }
 0x1b1   : > { %6938 = vmatprep.mubr.msk.f32.mxu0 %vm357_vm0, %v8657_v16  ;;  %v4511_v16 = vld [vmem:[%s9429_s2] sm:$0xff] }
 0x1b4   : > { %6939 = vmatmul.mubr.msk.f32.gmra.mrb[6].mxu0 %vm357_vm0, %v8660_v61 }
 0x1b5   : > { %6941 = vmatprep.mubr.msk.f32.mxu0 %vm357_vm0, %v8672_v24  ;;  %v4512_v24 = vld [vmem:[%s9429_s2 + $0x8] sm:$0xff] }
 0x1b6   : > { %v7346_v60 = vpack.c.bf16 %v4512_v24, %v4511_v16 }
 0x1b8   : > { %6942 = vmatmul.mubr.msk.f32.gmra.mrb[8].mxu0 %vm357_vm0, %v3663_v56 }
 0x1b9   : > { %6946 = vmatprep.mubr.msk.f32.mxu0 %vm357_vm0, %v8232_v4  ;;  %v3830_v4 = vld [vmem:[%s8224_s9 + $0x5d] sm:$0xff] }
 0x1bc   : > { %6947 = vmatmul.mubr.msk.f32.vlgmr.msra.gmra.mrb[0].mxu0 %vm357_vm0, %v8239_v5  ;;  %v4333_v5 = vld [vmem:[#allocation2 + $0xc0] sm:$0xff] }
 0x1bd   : > { %6962 = vmatpush3.msra.mxu0 %v3999_v62  ;;  %6949 = vmatprep.mubr.msk.f32.mxu0 %vm357_vm0, %v8242_v7  ;;  %v3997_v7 = vld [vmem:[%s8224_s9 + $0x5e] sm:$0xff] }
 0x1be   : > { %6978 = vmatprep.subr.mxu0 %v4166_v57 }
 0x1c0   : > { %6950 = vmatmul.mubr.msk.f32.gmra.mrb[2].mxu0 %vm357_vm0, %v8249_v8  ;;  %v4164_v8 = vld [vmem:[%s8224_s9 + $0x5f] sm:$0xff] }
 0x1c1   : > { %6952 = vmatprep.mubr.msk.f32.mxu0 %vm357_vm0, %v8252_v9 }
 0x1c4   : > { %6953 = vmatmul.mubr.msk.f32.gmra.mrb[4].mxu0 %vm357_vm0, %v8259_v10 }
 0x1c5   : > { %6955 = vmatprep.mubr.msk.f32.mxu0 %vm357_vm0, %v8262_v11 }
 0x1c8   : > { %6956 = vmatmul.mubr.msk.f32.gmra.mrb[6].mxu0 %vm357_vm0, %v8269_v12 }
 0x1c9   : > { %6958 = vmatprep.mubr.msk.f32.mxu0 %vm357_vm0, %v8714_v38 }
 0x1cc   : > { %6959 = vmatmul.mubr.msk.f32.gmra.mrb[8].mxu0 %vm357_vm0, %v3830_v4 }
 0x1cd   : > { %6963 = vmatprep.mubr.msk.f32.mxu0 %vm357_vm0, %v8279_v15 }
 0x1d0   : > { %6964 = vmatmul.mubr.msk.f32.vlgmr.msra.gmra.mrb[0].mxu0 %vm357_vm0, %v8286_v17 }
 0x1d1   : > { %6979 = vmatpush3.msra.mxu0 %v4166_v57  ;;  %6966 = vmatprep.mubr.msk.f32.mxu0 %vm357_vm0, %v8289_v18  ;;  %v4331_v18 = vld [vmem:[%s8224_s9 + $0x60] sm:$0xff] }
 0x1d2   : > { %6995 = vmatprep.subr.mxu0 %v4333_v5 }
 0x1d4   : > { %6967 = vmatmul.mubr.msk.f32.gmra.mrb[2].mxu0 %vm357_vm0, %v8296_v19 }
 0x1d5   : > { %6969 = vmatprep.mubr.msk.f32.mxu0 %vm357_vm0, %v8299_v20 }
 0x1d8   : > { %6970 = vmatmul.mubr.msk.f32.gmra.mrb[4].mxu0 %vm357_vm0, %v8306_v21 }
 0x1d9   : > { %6972 = vmatprep.mubr.msk.f32.mxu0 %vm357_vm0, %v8309_v22 }
 0x1dc   : > { %6973 = vmatmul.mubr.msk.f32.gmra.mrb[6].mxu0 %vm357_vm0, %v8316_v23  ;;  %v6138_v23 = vld [vmem:[%s9429_s2 + $0xd0] sm:$0xff] }
 0x1dd   : > { %6975 = vmatprep.mubr.msk.f32.mxu0 %vm357_vm0, %v8751_v14 }
 0x1e0   : > { %6976 = vmatmul.mubr.msk.f32.gmra.mrb[8].mxu0 %vm357_vm0, %v3997_v7  ;;  %v7349_v7 = vpack.c.bf16 %v4514_v48, %v4513_v3 }
 0x1e1   : > { %6980 = vmatprep.mubr.msk.f32.mxu0 %vm357_vm0, %v8326_v26  ;;  %v6139_v26 = vld [vmem:[%s9429_s2 + $0xd8] sm:$0xff] }
 0x1e4   : > { %6981 = vmatmul.mubr.msk.f32.vlgmr.msra.gmra.mrb[0].mxu0 %vm357_vm0, %v8333_v28  ;;  %v7337_v28 = vpack.c.bf16 %v6139_v26, %v6138_v23  ;;  %v4517_v26 = vld [vmem:[%s9429_s2 + $0x30] sm:$0xff] }
 0x1e5   : > { %6996 = vmatpush3.msra.mxu0 %v4333_v5  ;;  %6983 = vmatprep.mubr.msk.f32.mxu0 %vm357_vm0, %v8336_v29  ;;  %v6140_v29 = vld [vmem:[%s9429_s2 + $0xe0] sm:$0xff] }
 0x1e6   : > { %7338 = vmatpush3.bf16.msra.mxu1 %v7337_v28 }
 0x1e7   : > { %7339 = vmatprep.subr.bf16.mxu1 %v8036_v52 }
 0x1e8   : > { %6984 = vmatmul.mubr.msk.f32.gmra.mrb[2].mxu0 %vm357_vm0, %v8343_v30  ;;  %v6141_v30 = vld [vmem:[%s9429_s2 + $0xe8] sm:$0xff] }
 0x1e9   : > { %6986 = vmatprep.mubr.msk.f32.mxu0 %vm357_vm0, %v8346_v31  ;;  %v7340_v31 = vpack.c.bf16 %v6141_v30, %v6140_v29 }
 0x1eb   : > { %7341 = vmatpush3.bf16.msra.mxu1 %v7340_v31 }
 0x1ec   : > { %6987 = vmatmul.mubr.msk.f32.gmra.mrb[4].mxu0 %vm357_vm0, %v8353_v32  ;;  %7342 = vmatprep.subr.bf16.mxu1 %v8036_v52  ;;  %v6142_v32 = vld [vmem:[%s9429_s2 + $0xf0] sm:$0xff] }
 0x1ed   : > { %6989 = vmatprep.mubr.msk.f32.mxu0 %vm357_vm0, %v8356_v33  ;;  %v6143_v33 = vld [vmem:[%s9429_s2 + $0xf8] sm:$0xff] }
 0x1ef   : > { %v6659_v9 = vpop.f32.mrb[0].mxu1 }
 0x1f0   : > { %6990 = vmatmul.mubr.msk.f32.gmra.mrb[6].mxu0 %vm357_vm0, %v8363_v34  ;;  %v1090_v10 = vpop.f32.mrb[1].mxu1  ;;  %v7343_v34 = vpack.c.bf16 %v6143_v33, %v6142_v32 }
 0x1f1   : > { %6992 = vmatprep.mubr.msk.f32.mxu0 %vm357_vm0, %v8774_v25 }
 0x1f2   : > { %7344 = vmatpush3.bf16.msra.mxu1 %v7343_v34 }
 0x1f3   : > { %v6662_v11 = vpop.f32.mrb[2].mxu1  ;;  %7345 = vmatprep.subr.bf16.mxu1 %v8036_v52 }
 0x1f4   : > { %6993 = vmatmul.mubr.msk.f32.gmra.mrb[8].mxu0 %vm357_vm0, %v4164_v8  ;;  %v1100_v12 = vpop.f32.mrb[3].mxu1 }
 0x1f5   : > { %6997 = vmatprep.mubr.msk.f32.mxu0 %vm357_vm0, %v8376_v37  ;;  %v8038_v37 = vmov 0.0  }
 0x1f6   : > { %7044 = vmatprep.mubr.msk.f32.mxu1 %vm8037_vm1, %v8038_v37 }
 0x1f7   : > { %v6665_v15 = vpop.f32.mrb[4].mxu1 }
 0x1f8   : > { %6998 = vmatmul.mubr.msk.f32.vlgmr.msra.gmra.mrb[0].mxu0 %vm357_vm0, %v8383_v39  ;;  %v1110_v17 = vpop.f32.mrb[5].mxu1 }
 0x1f9   : > { %7000 = vmatprep.mubr.msk.f32.mxu0 %vm357_vm0, %v8386_v40  ;;  %v9031_v40 = vld [vmem:[%s9433_s6] ss:$0 sm:$0xff] }
 0x1fb   : > { %v8996_v19 = vpop.f32.mrb[6].mxu1 }
 0x1fc   : > { %7001 = vmatmul.mubr.msk.f32.gmra.mrb[2].mxu0 %vm357_vm0, %v8393_v41  ;;  %v8998_v20 = vpop.f32.mrb[7].mxu1 }
 0x1fd   : > { %7003 = vmatprep.mubr.msk.f32.mxu0 %vm357_vm0, %v8396_v42 }
 0x1ff   : > { %v9001_v21 = vpop.f32.mrb[8].mxu1 }
 0x200   : > { %7004 = vmatmul.mubr.msk.f32.gmra.mrb[4].mxu0 %vm357_vm0, %v8403_v43  ;;  %v9003_v22 = vpop.f32.mrb[9].mxu1 }
 0x201   : > { %7006 = vmatprep.mubr.msk.f32.mxu0 %vm357_vm0, %v8406_v44 }
 0x204   : > { %7007 = vmatmul.mubr.msk.f32.gmra.mrb[6].mxu0 %vm357_vm0, %v8413_v45 }
 0x205   : > { %7009 = vmatprep.mubr.msk.f32.mxu0 %vm357_vm0, %v8797_v36 }
 0x208   : > { %7010 = vmatmul.mubr.msk.f32.gmra.mrb[8].mxu0 %vm357_vm0, %v4331_v18 }
 0x2cb   : > { %v6999_v39 = vpop.f32.mrb[0].mxu0 }
 0x2cc   : > { %v7585_v41 = vadd.f32 %v6999_v39, %v6659_v9  ;;  %v4430_v42 = vpop.f32.mrb[1].mxu0 }
 0x2cd   : > { %v7586_v43 = vadd.f32 %v4430_v42, %v1090_v10 }
 0x2ce   : > { %v4491_v44 = vadd.f32 %v7585_v41, %v9031_v40 }
 0x2cf   : > { %v4490_v45 = vadd.f32 %v7586_v43, %v9031_v40  ;;  %v7002_v58 = vpop.f32.mrb[2].mxu0 }
 0x2d0   : > { %v9035_v61 = vmax.f32 %v4491_v44, 0.0  ;;  %v7587_v63 = vadd.f32 %v7002_v58, %v6662_v11  ;;  %v4440_v1 = vpop.f32.mrb[3].mxu0 }
 0x2d1   : > { %v9043_v6 = vmax.f32 %v4490_v45, 0.0  ;;  %v7588_v59 = vadd.f32 %v4440_v1, %v1100_v12  ;;  %v7352_v12 = vpack.c.bf16 %v4516_v46, %v4515_v53  ;;  %v4521_v46 = vld [vmem:[%s9429_s2 + $0x50] sm:$0xff] }
 0x2d2   : > { %v4556_v27 = vrot.slane %v9035_v61, 1  ;;  %v4822_v49 = vrot.slane %v9035_v61, 2  ;;  %v4493_v38 = vadd.f32 %v7587_v63, %v9031_v40 }
 0x2d3   : > { %v4555_v14 = vrot.slane %v9043_v6, 1  ;;  %v4821_v25 = vrot.slane %v9043_v6, 2  ;;  %v4492_v36 = vadd.f32 %v7588_v59, %v9031_v40  ;;  %v7005_v51 = vpop.f32.mrb[4].mxu0 }
 0x2d4   : > { %v9051_v50 = vmax.f32 %v4493_v38, 0.0  ;;  %v7589_v2 = vadd.f32 %v7005_v51, %v6665_v15  ;;  %v4450_v47 = vpop.f32.mrb[5].mxu0 }
 0x2d5   : > { %v9059_v13 = vmax.f32 %v4492_v36, 0.0  ;;  %v7590_v35 = vadd.f32 %v4450_v47, %v1110_v17  ;;  %v4557_v0 = vsel %vm4554_vm2, %v4555_v14, %v4556_v27  ;;  %v9069_v54 = vsel %vm4820_vm3, %v4821_v25, %v4822_v49  ;;  %v4519_v25 = vld [vmem:[%s9429_s2 + $0x40] sm:$0xff] }
 0x2d6   : > { %v4495_v55 = vadd.f32 %v7589_v2, %v9031_v40  ;;  %7045 = vmatmul.mubr.f32.vlgmr.msra.gmra.mrb[10].mxu1 %v4557_v0  ;;  %v4560_v62 = vrot.slane %v9051_v50, 1  ;;  %v4826_v56 = vrot.slane %v9051_v50, 2 }
 0x2d7   : > { %v4494_v57 = vadd.f32 %v7590_v35, %v9031_v40  ;;  %v7008_v4 = vpop.f32.mrb[6].mxu0  ;;  %7347 = vmatpush3.bf16.msra.mxu1 %v7346_v60  ;;  %7047 = vmatprep.mubr.msk.f32.mxu1 %vm8037_vm1, %v8038_v37  ;;  %v4558_v5 = vrot.slane %v9059_v13, 1  ;;  %v4824_v8 = vrot.slane %v9059_v13, 2 }
 0x2d8   : > { %v9079_v9 = vmax.f32 %v4495_v55, 0.0  ;;  %v7591_v10 = vadd.f32 %v7008_v4, %v8996_v19  ;;  %v4460_v11 = vpop.f32.mrb[7].mxu0  ;;  %7348 = vmatprep.subr.bf16.mxu1 %v8036_v52  ;;  %v4518_v19 = vld [vmem:[%s9429_s2 + $0x38] sm:$0xff] }
 0x2d9   : > { %v9083_v15 = vmax.f32 %v4494_v57, 0.0  ;;  %v7592_v17 = vadd.f32 %v4460_v11, %v8998_v20  ;;  %v4559_v18 = vsel %vm4554_vm2, %v4556_v27, %v4558_v5  ;;  %v4561_v23 = vsel %vm4554_vm2, %v4558_v5, %v4560_v62  ;;  %v4522_v55 = vld [vmem:[%s9429_s2 + $0x58] sm:$0xff]  ;;  %v4525_v11 = vld [vmem:[%s9429_s2 + $0x70] sm:$0xff] }
 0x2da   : > { %v4497_v28 = vadd.f32 %v7591_v10, %v9031_v40  ;;  %7048 = vmatmul.mubr.f32.gmra.mrb[12].mxu1 %v4559_v18  ;;  %v4564_v29 = vrot.slane %v9079_v9, 1  ;;  %v9097_v30 = vsel %vm4820_vm3, %v4822_v49, %v4824_v8  ;;  %v9100_v20 = vsel %vm4820_vm3, %v4824_v8, %v4826_v56  ;;  %v4524_v8 = vld [vmem:[%s9429_s2 + $0x68] sm:$0xff]  ;;  %v6144_v18 = vld [vmem:[%s9429_s2 + $0x100] sm:$0xff] }
 0x2db   : > { %v4496_v31 = vadd.f32 %v7592_v17, %v9031_v40  ;;  %v7011_v32 = vpop.f32.mrb[8].mxu0  ;;  %7350 = vmatpush3.bf16.msra.mxu1 %v7349_v7  ;;  %7050 = vmatprep.mubr.msk.f32.mxu1 %vm8037_vm1, %v8038_v37  ;;  %v4562_v33 = vrot.slane %v9083_v15, 1  ;;  %v4828_v34 = vrot.slane %v9083_v15, 2  ;;  %v4830_v39 = vrot.slane %v9079_v9, 2  ;;  %v4523_v7 = vld [vmem:[%s9429_s2 + $0x60] sm:$0xff] }
 0x2dc   : > { %v9108_v41 = vmax.f32 %v4497_v28, 0.0  ;;  %v7593_v42 = vadd.f32 %v7011_v32, %v9001_v21  ;;  %v4470_v43 = vpop.f32.mrb[9].mxu0  ;;  %7351 = vmatprep.subr.bf16.mxu1 %v8036_v52  ;;  %v7355_v44 = vpack.c.bf16 %v4518_v19, %v4517_v26  ;;  %v7361_v5 = vpack.c.bf16 %v4522_v55, %v4521_v46  ;;  %v6146_v19 = vld [vmem:[%s9429_s2 + $0x110] sm:$0xff]  ;;  %v6147_v28 = vld [vmem:[%s9429_s2 + $0x118] sm:$0xff]  ;;  %v6149_v32 = vld [vmem:[%s9429_s2 + $0x128] sm:$0xff] }
 0x2dd   : > { %v9112_v45 = vmax.f32 %v4496_v31, 0.0  ;;  %v7594_v58 = vadd.f32 %v4470_v43, %v9003_v22  ;;  %v4563_v63 = vsel %vm4554_vm2, %v4560_v62, %v4562_v33  ;;  %v4565_v1 = vsel %vm4554_vm2, %v4562_v33, %v4564_v29  ;;  %v6148_v31 = vld [vmem:[%s9429_s2 + $0x120] sm:$0xff]  ;;  %v6150_v33 = vld [vmem:[%s9429_s2 + $0x130] sm:$0xff] }
 0x2de   : > { %v4499_v16 = vadd.f32 %v7593_v42, %v9031_v40  ;;  %7051 = vmatmul.mubr.f32.gmra.mrb[14].mxu1 %v4561_v23  ;;  %v4568_v24 = vrot.slane %v9108_v41, 1  ;;  %v9120_v59 = vsel %vm4820_vm3, %v4826_v56, %v4828_v34  ;;  %v9123_v21 = vsel %vm4820_vm3, %v4828_v34, %v4830_v39  ;;  %v6145_v23 = vld [vmem:[%s9429_s2 + $0x108] sm:$0xff]  ;;  %v6151_v34 = vld [vmem:[%s9429_s2 + $0x138] sm:$0xff]  ;;  %v6154_v43 = vld [vmem:[%s9429_s2 + $0x150] sm:$0xff] }
 0x2df   : > { %v4498_v27 = vadd.f32 %v7594_v58, %v9031_v40  ;;  %7353 = vmatpush3.bf16.msra.mxu1 %v7352_v12  ;;  %7053 = vmatprep.mubr.msk.f32.mxu1 %vm8037_vm1, %v8038_v37  ;;  %v4566_v22 = vrot.slane %v9112_v45, 1  ;;  %v4832_v49 = vrot.slane %v9112_v45, 2  ;;  %v4834_v38 = vrot.slane %v9108_v41, 2  ;;  %v4520_v40 = vld [vmem:[%s9429_s2 + $0x48] sm:$0xff]  ;;  %v4526_v12 = vld [vmem:[%s9429_s2 + $0x78] sm:$0xff]  ;;  %v6156_v58 = vld [vmem:[%s9429_s2 + $0x160] sm:$0xff] }
 0x2e0   : > { %v4509_v14 = vmax.f32 %v4499_v16, 0.0  ;;  %7354 = vmatprep.subr.bf16.mxu1 %v8036_v52  ;;  %v7358_v35 = vpack.c.bf16 %v4520_v40, %v4519_v25  ;;  %v7364_v10 = vpack.c.bf16 %v4524_v8, %v4523_v7  ;;  %v7367_v17 = vpack.c.bf16 %v4526_v12, %v4525_v11  ;;  %v6153_v42 = vld [vmem:[%s9429_s2 + $0x148] sm:$0xff]  ;;  %v6159_v16 = vld [vmem:[%s9429_s2 + $0x178] sm:$0xff] }
 0x2e1   : > { %v9138_v36 = vmax.f32 %v4498_v27, 0.0  ;;  %v4567_v51 = vsel %vm4554_vm2, %v4564_v29, %v4566_v22  ;;  %v4569_v60 = vsel %vm4554_vm2, %v4566_v22, %v4568_v24  ;;  %v9143_v2 = vsel %vm4820_vm3, %v4830_v39, %v4832_v49  ;;  %v6152_v39 = vld [vmem:[%s9429_s2 + $0x140] sm:$0xff]  ;;  %v5010_v27 = vld [vmem:[#allocation4 + $0xb0] sm:$0xff] }
 0x2e2   : > { %v4572_v47 = vrot.slane %v4509_v14, 1  ;;  %v4838_v3 = vrot.slane %v4509_v14, 2  ;;  %7054 = vmatmul.mubr.f32.gmra.mrb[16].mxu1 %v4563_v63  ;;  %v9146_v48 = vsel %vm4820_vm3, %v4832_v49, %v4834_v38  ;;  %v7370_v26 = vpack.c.bf16 %v6145_v23, %v6144_v18  ;;  %v6157_v63 = vld [vmem:[%s9429_s2 + $0x168] sm:$0xff]  ;;  %v5011_v22 = vld [vmem:[#allocation4 + $0xb8] sm:$0xff]  ;;  %v5013_v14 = vld [vmem:[#allocation4 + $0xc8] sm:$0xff] }
 0x2e3   : > { %7056 = vmatprep.mubr.msk.f32.mxu1 %vm8037_vm1, %v8038_v37  ;;  %7356 = vmatpush3.bf16.msra.mxu1 %v7355_v44  ;;  %v4570_v0 = vrot.slane %v9138_v36, 1  ;;  %v4836_v53 = vrot.slane %v9138_v36, 2  ;;  %v7373_v29 = vpack.c.bf16 %v6147_v28, %v6146_v19  ;;  %v6155_v44 = vld [vmem:[%s9429_s2 + $0x158] sm:$0xff]  ;;  %v7405_v49 = vpack.c.bf16 %v5011_v22, %v5010_v27  ;;  %v9312_v27 = vld [vmem:[%s9433_s6 + $0x1] ss:$0 sm:$0xff] }
 0x2e4   : > { %7357 = vmatprep.subr.bf16.mxu1 %v8036_v52  ;;  %v5014_v40 = vld [vmem:[#allocation4 + $0xd0] sm:$0xff] }
 0x2e5   : > { %v4571_v62 = vsel %vm4554_vm2, %v4568_v24, %v4570_v0  ;;  %v4573_v56 = vsel %vm4554_vm2, %v4570_v0, %v4572_v47  ;;  %v9162_v57 = vsel %vm4820_vm3, %v4834_v38, %v4836_v53  ;;  %v9165_v4 = vsel %vm4820_vm3, %v4836_v53, %v4838_v3  ;;  %v5008_v24 = vld [vmem:[#allocation4 + $0xa0] sm:$0xff]  ;;  %v5018_v3 = vld [vmem:[#allocation4 + $0xf0] sm:$0xff]  ;;  %v4988_v53 = vld [vmem:[#allocation4 + $0x8] sm:$0xff] }
 0x2e6   : > { %7057 = vmatmul.mubr.f32.gmra.mrb[18].mxu1 %v4565_v1  ;;  %v6158_v1 = vld [vmem:[%s9429_s2 + $0x170] sm:$0xff]  ;;  %v5012_v38 = vld [vmem:[#allocation4 + $0xc0] sm:$0xff] }
 0x2e7   : > { %7059 = vmatprep.mubr.msk.f32.mxu1 %vm8037_vm1, %v8038_v37  ;;  %7359 = vmatpush3.bf16.msra.mxu1 %v7358_v35  ;;  %v7409_v25 = vpack.c.bf16 %v5013_v14, %v5012_v38  ;;  %v4987_v0 = vld [vmem:[#allocation4] sm:$0xff] }
 0x2e8   : > { %7360 = vmatprep.subr.bf16.mxu1 %v8036_v52  ;;  %v9300_v46 = vpack.c.bf16 %v4988_v53, %v4987_v0 }
 0x2ea   : > { %7060 = vmatmul.mubr.f32.gmra.mrb[20].mxu1 %v4567_v51 }
 0x2eb   : > { %7062 = vmatprep.mubr.msk.f32.mxu1 %vm8037_vm1, %v8038_v37  ;;  %7362 = vmatpush3.bf16.msra.mxu1 %v7361_v5 }
 0x2ec   : > { %7363 = vmatprep.subr.bf16.mxu1 %v8036_v52 }
 0x2ee   : > { %7063 = vmatmul.mubr.f32.gmra.mrb[22].mxu1 %v4569_v60  ;;  %v5016_v60 = vld [vmem:[#allocation4 + $0xe0] sm:$0xff] }
 0x2ef   : > { %7065 = vmatprep.mubr.msk.f32.mxu1 %vm8037_vm1, %v8038_v37  ;;  %7365 = vmatpush3.bf16.msra.mxu1 %v7364_v10 }
 0x2f0   : > { %7366 = vmatprep.subr.bf16.mxu1 %v8036_v52 }
 0x2f2   : > { %7066 = vmatmul.mubr.f32.gmra.mrb[24].mxu1 %v4571_v62 }
 0x2f3   : > { %7068 = vmatprep.mubr.msk.f32.mxu1 %vm8037_vm1, %v8038_v37  ;;  %7368 = vmatpush3.bf16.msra.mxu1 %v7367_v17 }
 0x2f4   : > { %7369 = vmatprep.subr.bf16.mxu1 %v8036_v52 }
 0x2f6   : > { %7069 = vmatmul.mubr.f32.gmra.mrb[26].mxu1 %v4573_v56 }
 0x2f7   : > { %7103 = vmatprep.mubr.msk.f32.mxu1 %vm8037_vm1, %v8038_v37 }
 0x2fa   : > { %7104 = vmatmul.mubr.f32.vlgmr.msra.gmra.mrb[28].mxu1 %v9043_v6  ;;  %v7376_v6 = vpack.c.bf16 %v6149_v32, %v6148_v31 }
 0x2fb   : > { %7371 = vmatpush3.bf16.msra.mxu1 %v7370_v26  ;;  %7106 = vmatprep.mubr.msk.f32.mxu1 %vm8037_vm1, %v8038_v37 }
 0x2fc   : > { %7372 = vmatprep.subr.bf16.mxu1 %v8036_v52 }
 0x2fe   : > { %7107 = vmatmul.mubr.f32.gmra.mrb[30].mxu1 %v9035_v61  ;;  %v7379_v61 = vpack.c.bf16 %v6151_v34, %v6150_v33 }
 0x2ff   : > { %7374 = vmatpush3.bf16.msra.mxu1 %v7373_v29  ;;  %7109 = vmatprep.mubr.msk.f32.mxu1 %vm8037_vm1, %v8038_v37 }
 0x300   : > { %7375 = vmatprep.subr.bf16.mxu1 %v8036_v52 }
 0x302   : > { %7110 = vmatmul.mubr.f32.gmra.mrb[32].mxu1 %v9059_v13  ;;  %v7382_v13 = vpack.c.bf16 %v6153_v42, %v6152_v39 }
 0x303   : > { %7377 = vmatpush3.bf16.msra.mxu1 %v7376_v6  ;;  %7112 = vmatprep.mubr.msk.f32.mxu1 %vm8037_vm1, %v8038_v37 }
 0x304   : > { %7378 = vmatprep.subr.bf16.mxu1 %v8036_v52 }
 0x306   : > { %7113 = vmatmul.mubr.f32.gmra.mrb[34].mxu1 %v9051_v50  ;;  %v7385_v50 = vpack.c.bf16 %v6155_v44, %v6154_v43 }
 0x307   : > { %7115 = vmatprep.mubr.msk.f32.mxu1 %vm8037_vm1, %v8038_v37  ;;  %7380 = vmatpush3.bf16.msra.mxu1 %v7379_v61 }
 0x308   : > { %7381 = vmatprep.subr.bf16.mxu1 %v8036_v52 }
 0x30a   : > { %7116 = vmatmul.mubr.f32.gmra.mrb[36].mxu1 %v9083_v15  ;;  %v7388_v15 = vpack.c.bf16 %v6157_v63, %v6156_v58 }
 0x30b   : > { %7118 = vmatprep.mubr.msk.f32.mxu1 %vm8037_vm1, %v8038_v37  ;;  %7383 = vmatpush3.bf16.msra.mxu1 %v7382_v13 }
 0x30c   : > { %7384 = vmatprep.subr.bf16.mxu1 %v8036_v52 }
 0x30e   : > { %7119 = vmatmul.mubr.f32.gmra.mrb[38].mxu1 %v9079_v9  ;;  %v7391_v9 = vpack.c.bf16 %v6159_v16, %v6158_v1 }
 0x30f   : > { %7121 = vmatprep.mubr.msk.f32.mxu1 %vm8037_vm1, %v8038_v37  ;;  %7386 = vmatpush3.bf16.msra.mxu1 %v7385_v50 }
 0x310   : > { %7387 = vmatprep.subr.bf16.mxu1 %v8036_v52 }
 0x312   : > { %7122 = vmatmul.mubr.f32.gmra.mrb[40].mxu1 %v9112_v45 }
 0x313   : > { %7124 = vmatprep.mubr.msk.f32.mxu1 %vm8037_vm1, %v8038_v37  ;;  %7389 = vmatpush3.bf16.msra.mxu1 %v7388_v15 }
 0x314   : > { %7390 = vmatprep.subr.bf16.mxu1 %v8036_v52  ;;  %v5004_v52 = vld [vmem:[#allocation4 + $0x80] sm:$0xff] }
 0x316   : > { %7125 = vmatmul.mubr.f32.gmra.mrb[42].mxu1 %v9108_v41  ;;  %v5007_v41 = vld [vmem:[#allocation4 + $0x98] sm:$0xff] }
 0x317   : > { %7127 = vmatprep.mubr.msk.f32.mxu1 %vm8037_vm1, %v8038_v37  ;;  %7392 = vmatpush3.bf16.msra.mxu1 %v7391_v9 }
 0x31a   : > { %7128 = vmatmul.mubr.f32.gmra.mrb[44].mxu1 %v9138_v36  ;;  %v5015_v36 = vld [vmem:[#allocation4 + $0xd8] sm:$0xff] }
 0x31b   : > { %7162 = vmatprep.mubr.msk.f32.mxu1 %vm8037_vm1, %v8038_v37  ;;  %v7413_v51 = vpack.c.bf16 %v5015_v36, %v5014_v40 }
 0x31e   : > { %7163 = vmatmul.mubr.f32.vlgmr.msra.gmra.mrb[46].mxu1 %v9069_v54  ;;  %v5005_v54 = vld [vmem:[#allocation4 + $0x88] sm:$0xff] }
 0x31f   : > { %7165 = vmatprep.mubr.msk.f32.mxu1 %vm8037_vm1, %v8038_v37 }
 0x322   : > { %7166 = vmatmul.mubr.f32.gmra.mrb[48].mxu1 %v9097_v30  ;;  %v7393_v30 = vpack.c.bf16 %v5005_v54, %v5004_v52 }
 0x323   : > { %7168 = vmatprep.mubr.msk.f32.mxu1 %vm8037_vm1, %v8038_v37 }
 0x324   : > { %7394 = vmatprep.subr.bf16.mxu1 %v7393_v30 }
 0x325   : > { %7396 = vmatpush3.bf16.msra.mxu1 %v7393_v30 }
 0x326   : > { %7169 = vmatmul.mubr.f32.gmra.mrb[50].mxu1 %v9100_v20  ;;  %v5006_v20 = vld [vmem:[#allocation4 + $0x90] sm:$0xff] }
 0x327   : > { %7171 = vmatprep.mubr.msk.f32.mxu1 %vm8037_vm1, %v8038_v37  ;;  %v7397_v45 = vpack.c.bf16 %v5007_v41, %v5006_v20 }
 0x329   : > { %7398 = vmatprep.subr.bf16.mxu1 %v7397_v45 }
 0x32a   : > { %7172 = vmatmul.mubr.f32.gmra.mrb[52].mxu1 %v9120_v59  ;;  %v5009_v59 = vld [vmem:[#allocation4 + $0xa8] sm:$0xff] }
 0x32b   : > { %7174 = vmatprep.mubr.msk.f32.mxu1 %vm8037_vm1, %v8038_v37  ;;  %7400 = vmatpush3.bf16.msra.mxu1 %v7397_v45 }
 0x32e   : > { %7175 = vmatmul.mubr.f32.gmra.mrb[54].mxu1 %v9123_v21  ;;  %v7401_v21 = vpack.c.bf16 %v5009_v59, %v5008_v24 }
 0x32f   : > { %7177 = vmatprep.mubr.msk.f32.mxu1 %vm8037_vm1, %v8038_v37 }
 0x330   : > { %7402 = vmatprep.subr.bf16.mxu1 %v7401_v21 }
 0x331   : > { %7404 = vmatpush3.bf16.msra.mxu1 %v7401_v21 }
 0x332   : > { %7178 = vmatmul.mubr.f32.gmra.mrb[56].mxu1 %v9143_v2  ;;  %7406 = vmatprep.subr.bf16.mxu1 %v7405_v49  ;;  %v5017_v2 = vld [vmem:[#allocation4 + $0xe8] sm:$0xff] }
 0x333   : > { %7180 = vmatprep.mubr.msk.f32.mxu1 %vm8037_vm1, %v8038_v37  ;;  %v7417_v47 = vpack.c.bf16 %v5017_v2, %v5016_v60 }
 0x335   : > { %7408 = vmatpush3.bf16.msra.mxu1 %v7405_v49 }
 0x336   : > { %7181 = vmatmul.mubr.f32.gmra.mrb[58].mxu1 %v9146_v48  ;;  %7410 = vmatprep.subr.bf16.mxu1 %v7409_v25  ;;  %v5019_v48 = vld [vmem:[#allocation4 + $0xf8] sm:$0xff] }
 0x337   : > { %7183 = vmatprep.mubr.msk.f32.mxu1 %vm8037_vm1, %v8038_v37  ;;  %v7421_v35 = vpack.c.bf16 %v5019_v48, %v5018_v3 }
 0x339   : > { %7412 = vmatpush3.bf16.msra.mxu1 %v7409_v25 }
 0x33a   : > { %7184 = vmatmul.mubr.f32.gmra.mrb[60].mxu1 %v9162_v57  ;;  %7414 = vmatprep.subr.bf16.mxu1 %v7413_v51 }
 0x33b   : > { %7186 = vmatprep.mubr.msk.f32.mxu1 %vm8037_vm1, %v8038_v37 }
 0x33d   : > { %7416 = vmatpush3.bf16.msra.mxu1 %v7413_v51 }
 0x33e   : > { %7187 = vmatmul.mubr.f32.gmra.mrb[62].mxu1 %v9165_v4  ;;  %7418 = vmatprep.subr.bf16.mxu1 %v7417_v47 }
 0x341   : > { %7420 = vmatpush3.bf16.msra.mxu1 %v7417_v47 }
 0x342   : > { %7422 = vmatprep.subr.bf16.mxu1 %v7421_v35 }
 0x345   : > { %7424 = vmatpush3.bf16.msra.mxu1 %v7421_v35 }
 0x346   : > { %7426 = vmatprep.subr.bf16.mxu1 %v9300_v46 }
 0x3a9   : > { %v4649_v55 = vpop.f32.mrb[10].mxu1 }
 0x3aa   : > { %v7046_v62 = vpop.f32.mrb[11].mxu1 }
 0x3ad   : > { %v4654_v56 = vpop.f32.mrb[12].mxu1 }
 0x3ae   : > { %v7049_v57 = vpop.f32.mrb[13].mxu1 }
 0x3b1   : > { %v4659_v4 = vpop.f32.mrb[14].mxu1 }
 0x3b2   : > { %v7052_v5 = vpop.f32.mrb[15].mxu1 }
 0x3b5   : > { %v4664_v7 = vpop.f32.mrb[16].mxu1 }
 0x3b6   : > { %v7055_v8 = vpop.f32.mrb[17].mxu1 }
 0x3b7   : > { %v4989_v8 = vld [vmem:[#allocation4 + $0x10] sm:$0xff] }
 0x3b9   : > { %v4669_v10 = vpop.f32.mrb[18].mxu1 }
 0x3ba   : > { %v7058_v11 = vpop.f32.mrb[19].mxu1 }
 0x3bd   : > { %v4674_v12 = vpop.f32.mrb[20].mxu1 }
 0x3be   : > { %v7061_v17 = vpop.f32.mrb[21].mxu1 }
 0x3c1   : > { %v4679_v18 = vpop.f32.mrb[22].mxu1 }
 0x3c2   : > { %v7064_v23 = vpop.f32.mrb[23].mxu1 }
 0x3c5   : > { %v4684_v26 = vpop.f32.mrb[24].mxu1 }
 0x3c6   : > { %v7067_v19 = vpop.f32.mrb[25].mxu1 }
 0x3c9   : > { %v4689_v28 = vpop.f32.mrb[26].mxu1 }
 0x3ca   : > { %v7070_v29 = vpop.f32.mrb[27].mxu1 }
 0x3cd   : > { %v4759_v31 = vpop.f32.mrb[28].mxu1 }
 0x3ce   : > { %v4760_v32 = vadd.f32 %v4759_v31, %v4649_v55  ;;  %v7105_v6 = vpop.f32.mrb[29].mxu1 }
 0x3cf   : > { %v4992_v6 = vld [vmem:[#allocation4 + $0x28] sm:$0xff] }
 0x3d1   : > { %v4764_v33 = vpop.f32.mrb[30].mxu1 }
 0x3d2   : > { %v4765_v34 = vadd.f32 %v4764_v33, %v4654_v56  ;;  %v7108_v61 = vpop.f32.mrb[31].mxu1 }
 0x3d5   : > { %v4769_v39 = vpop.f32.mrb[32].mxu1 }
 0x3d6   : > { %v4770_v42 = vadd.f32 %v4769_v39, %v4659_v4  ;;  %v7111_v13 = vpop.f32.mrb[33].mxu1 }
 0x3d9   : > { %v4774_v43 = vpop.f32.mrb[34].mxu1 }
 0x3da   : > { %v4775_v44 = vadd.f32 %v4774_v43, %v4664_v7  ;;  %v7114_v50 = vpop.f32.mrb[35].mxu1 }
 0x3dd   : > { %v4779_v58 = vpop.f32.mrb[36].mxu1 }
 0x3de   : > { %v4780_v63 = vadd.f32 %v4779_v58, %v4669_v10  ;;  %v7117_v15 = vpop.f32.mrb[37].mxu1  ;;  %v4990_v10 = vld [vmem:[#allocation4 + $0x18] sm:$0xff] }
 0x3df   : > { %v4994_v15 = vld [vmem:[#allocation4 + $0x38] sm:$0xff] }
 0x3e1   : > { %v4784_v1 = vpop.f32.mrb[38].mxu1 }
 0x3e2   : > { %v4785_v16 = vadd.f32 %v4784_v1, %v4674_v12  ;;  %v7120_v9 = vpop.f32.mrb[39].mxu1 }
 0x3e5   : > { %v4789_v52 = vpop.f32.mrb[40].mxu1 }
 0x3e6   : > { %v9303_v54 = vadd.f32 %v4789_v52, %v4679_v18  ;;  %v7123_v30 = vpop.f32.mrb[41].mxu1 }
 0x3e9   : > { %v4794_v20 = vpop.f32.mrb[42].mxu1 }
 0x3ea   : > { %v9305_v41 = vadd.f32 %v4794_v20, %v4684_v26  ;;  %v7126_v45 = vpop.f32.mrb[43].mxu1  ;;  %v7429_v26 = vpack.c.bf16 %v4990_v10, %v4989_v8 }
 0x3ed   : > { %v4799_v24 = vpop.f32.mrb[44].mxu1 }
 0x3ee   : > { %v9307_v59 = vadd.f32 %v4799_v24, %v4689_v28  ;;  %v7129_v21 = vpop.f32.mrb[45].mxu1 }
 0x3f1   : > { %v4915_v22 = vpop.f32.mrb[46].mxu1 }
 0x3f2   : > { %v4959_v49 = vadd.f32 %v4915_v22, %v4760_v32  ;;  %v7164_v38 = vpop.f32.mrb[47].mxu1  ;;  %v4991_v32 = vld [vmem:[#allocation4 + $0x20] sm:$0xff] }
 0x3f3   : > { %v7433_v13 = vpack.c.bf16 %v4992_v6, %v4991_v32  ;;  %v4995_v22 = vld [vmem:[#allocation4 + $0x40] sm:$0xff]  ;;  %v5002_v6 = vld [vmem:[#allocation4 + $0x78] sm:$0xff] }
 0x3f4   : > { %v4968_v14 = vadd.f32 %v4959_v49, %v9312_v27  ;;  %v4996_v49 = vld [vmem:[#allocation4 + $0x48] sm:$0xff] }
 0x3f5   : > { %v4920_v25 = vpop.f32.mrb[48].mxu1 }
 0x3f6   : > { %v4960_v40 = vadd.f32 %v4920_v25, %v4765_v34  ;;  %v7167_v36 = vpop.f32.mrb[49].mxu1  ;;  %v9315_v51 = vmax.f32 %v4968_v14, 0.0 }
 0x3f8   : > { %v4969_v60 = vadd.f32 %v4960_v40, %v9312_v27  ;;  %v5029_v35 = vrot.slane %v9315_v51, 1  ;;  %v5281_v55 = vrot.slane %v9315_v51, 2 }
 0x3f9   : > { %v4925_v2 = vpop.f32.mrb[50].mxu1 }
 0x3fa   : > { %v9318_v47 = vmax.f32 %v4969_v60, 0.0  ;;  %v4961_v3 = vadd.f32 %v4925_v2, %v4770_v42  ;;  %v7170_v48 = vpop.f32.mrb[51].mxu1  ;;  %v7441_v60 = vpack.c.bf16 %v4996_v49, %v4995_v22  ;;  %v5276_v22 = vld [vmem:[#allocation4 + $0x158] sm:$0xff]  ;;  %v5278_v49 = vld [vmem:[#allocation4 + $0x168] sm:$0xff] }
 0x3fc   : > { %v4970_v0 = vadd.f32 %v4961_v3, %v9312_v27  ;;  %v5030_v53 = vrot.slane %v9318_v47, 1  ;;  %v5282_v62 = vrot.slane %v9318_v47, 2 }
 0x3fd   : > { %v4930_v56 = vpop.f32.mrb[52].mxu1 }
 0x3fe   : > { %v9325_v57 = vmax.f32 %v4970_v0, 0.0  ;;  %v4962_v4 = vadd.f32 %v4930_v56, %v4775_v44  ;;  %v7173_v5 = vpop.f32.mrb[53].mxu1  ;;  %v5031_v7 = vsel %vm4554_vm2, %v5029_v35, %v5030_v53  ;;  %v9329_v11 = vsel %vm4820_vm3, %v5281_v55, %v5282_v62  ;;  %v4997_v35 = vld [vmem:[#allocation4 + $0x50] sm:$0xff]  ;;  %v4998_v0 = vld [vmem:[#allocation4 + $0x58] sm:$0xff] }
 0x3ff   : > { %7221 = vmatprep.mubr.f32.mxu1 %v5031_v7  ;;  %v7445_v5 = vpack.c.bf16 %v4998_v0, %v4997_v35  ;;  %v5479_v35 = vld [vmem:[#allocation6 + $0x30] sm:$0xff] }
 0x400   : > { %v5032_v12 = vrot.slane %v9325_v57, 1  ;;  %v5284_v17 = vrot.slane %v9325_v57, 2  ;;  %v4971_v18 = vadd.f32 %v4962_v4, %v9312_v27 }
 0x401   : > { %v4935_v23 = vpop.f32.mrb[54].mxu1 }
 0x402   : > { %v9334_v19 = vmax.f32 %v4971_v18, 0.0  ;;  %v4963_v28 = vadd.f32 %v4935_v23, %v4780_v63  ;;  %v7176_v29 = vpop.f32.mrb[55].mxu1  ;;  %v5033_v31 = vsel %vm4554_vm2, %v5030_v53, %v5032_v12  ;;  %v9338_v33 = vsel %vm4820_vm3, %v5282_v62, %v5284_v17  ;;  %v4993_v63 = vld [vmem:[#allocation4 + $0x30] sm:$0xff] }
 0x403   : > { %7222 = vmatmul.mubr.f32.vlgmr.msra.gmra.mrb[64].mxu1 %v5033_v31  ;;  %v7437_v20 = vpack.c.bf16 %v4994_v15, %v4993_v63  ;;  %v5267_v63 = vld [vmem:[#allocation4 + $0x110] sm:$0xff]  ;;  %v5268_v15 = vld [vmem:[#allocation4 + $0x118] sm:$0xff] }
 0x404   : > { %v4972_v34 = vadd.f32 %v4963_v28, %v9312_v27  ;;  %7428 = vmatpush3.bf16.msra.mxu1 %v9300_v46  ;;  %v5034_v61 = vrot.slane %v9334_v19, 1  ;;  %v5286_v39 = vrot.slane %v9334_v19, 2 }
 0x405   : > { %v4940_v42 = vpop.f32.mrb[56].mxu1  ;;  %7430 = vmatprep.subr.bf16.mxu1 %v7429_v26 }
 0x406   : > { %v9344_v43 = vmax.f32 %v4972_v34, 0.0  ;;  %v4964_v44 = vadd.f32 %v4940_v42, %v4785_v16  ;;  %v7179_v50 = vpop.f32.mrb[57].mxu1  ;;  %v5035_v58 = vsel %vm4554_vm2, %v5032_v12, %v5034_v61  ;;  %v9348_v1 = vsel %vm4820_vm3, %v5284_v17, %v5286_v39  ;;  %v4999_v12 = vld [vmem:[#allocation4 + $0x60] sm:$0xff]  ;;  %v5000_v17 = vld [vmem:[#allocation4 + $0x68] sm:$0xff] }
 0x407   : > { %7224 = vmatprep.mubr.f32.mxu1 %v5035_v58  ;;  %v7449_v29 = vpack.c.bf16 %v5000_v17, %v4999_v12  ;;  %v5490_v17 = vld [vmem:[#allocation6 + $0x88] sm:$0xff] }
 0x408   : > { %v4973_v46 = vadd.f32 %v4964_v44, %v9312_v27  ;;  %7432 = vmatpush3.bf16.msra.mxu1 %v7429_v26  ;;  %v5036_v9 = vrot.slane %v9344_v43, 1  ;;  %v5288_v52 = vrot.slane %v9344_v43, 2  ;;  %v5266_v44 = vld [vmem:[#allocation4 + $0x108] sm:$0xff] }
 0x409   : > { %v4945_v30 = vpop.f32.mrb[58].mxu1  ;;  %7434 = vmatprep.subr.bf16.mxu1 %v7433_v13 }
 0x40a   : > { %v9353_v16 = vmax.f32 %v4973_v46, 0.0  ;;  %v4965_v45 = vadd.f32 %v4945_v30, %v9303_v54  ;;  %v7182_v24 = vpop.f32.mrb[59].mxu1  ;;  %v5037_v21 = vsel %vm4554_vm2, %v5034_v61, %v5036_v9  ;;  %v9358_v38 = vsel %vm4820_vm3, %v5286_v39, %v5288_v52 }
 0x40b   : > { %7225 = vmatmul.mubr.f32.gmra.mrb[66].mxu1 %v5037_v21  ;;  %v7461_v46 = vpack.c.bf16 %v5268_v15, %v5267_v63  ;;  %v5273_v24 = vld [vmem:[#allocation4 + $0x140] sm:$0xff]  ;;  %v5274_v21 = vld [vmem:[#allocation4 + $0x148] sm:$0xff]  ;;  %v5504_v63 = vld [vmem:[#allocation6 + $0xf8] sm:$0xff] }
 0x40c   : > { %v4974_v14 = vadd.f32 %v4965_v45, %v9312_v27  ;;  %7436 = vmatpush3.bf16.msra.mxu1 %v7433_v13  ;;  %v5038_v25 = vrot.slane %v9353_v16, 1  ;;  %v5290_v40 = vrot.slane %v9353_v16, 2  ;;  %v5265_v13 = vld [vmem:[#allocation4 + $0x100] sm:$0xff]  ;;  %v5272_v45 = vld [vmem:[#allocation4 + $0x138] sm:$0xff] }
 0x40d   : > { %v4950_v36 = vpop.f32.mrb[60].mxu1  ;;  %7438 = vmatprep.subr.bf16.mxu1 %v7437_v20  ;;  %v7457_v58 = vpack.c.bf16 %v5266_v44, %v5265_v13  ;;  %v5497_v13 = vld [vmem:[#allocation6 + $0xc0] sm:$0xff]  ;;  %v5499_v44 = vld [vmem:[#allocation6 + $0xd0] sm:$0xff] }
 0x40e   : > { %v9363_v54 = vmax.f32 %v4974_v14, 0.0  ;;  %v4966_v2 = vadd.f32 %v4950_v36, %v9305_v41  ;;  %v7185_v3 = vpop.f32.mrb[61].mxu1  ;;  %v5039_v48 = vsel %vm4554_vm2, %v5036_v9, %v5038_v25  ;;  %v9368_v53 = vsel %vm4820_vm3, %v5288_v52, %v5290_v40  ;;  %v5269_v9 = vld [vmem:[#allocation4 + $0x120] sm:$0xff]  ;;  %v5270_v52 = vld [vmem:[#allocation4 + $0x128] sm:$0xff]  ;;  %v5476_v36 = vld [vmem:[#allocation6 + $0x18] sm:$0xff] }
 0x40f   : > { %7227 = vmatprep.mubr.f32.mxu1 %v5039_v48  ;;  %v7465_v30 = vpack.c.bf16 %v5270_v52, %v5269_v9  ;;  %v5477_v48 = vld [vmem:[#allocation6 + $0x20] sm:$0xff]  ;;  %v5503_v9 = vld [vmem:[#allocation6 + $0xf0] sm:$0xff] }
 0x410   : > { %v4975_v55 = vadd.f32 %v4966_v2, %v9312_v27  ;;  %7440 = vmatpush3.bf16.msra.mxu1 %v7437_v20  ;;  %v5040_v62 = vrot.slane %v9363_v54, 1  ;;  %v5292_v56 = vrot.slane %v9363_v54, 2  ;;  %v5271_v20 = vld [vmem:[#allocation4 + $0x130] sm:$0xff]  ;;  %v7495_v0 = vpack.c.bf16 %v5479_v35, %v5477_v48  ;;  %v5501_v15 = vld [vmem:[#allocation6 + $0xe0] sm:$0xff] }
 0x411   : > { %v4955_v4 = vpop.f32.mrb[62].mxu1  ;;  %7442 = vmatprep.subr.bf16.mxu1 %v7441_v60  ;;  %v5475_v2 = vld [vmem:[#allocation6 + $0x10] sm:$0xff]  ;;  %v7519_v52 = vpack.c.bf16 %v5503_v9, %v5501_v15 }
 0x412   : > { %v4984_v41 = vmax.f32 %v4975_v55, 0.0  ;;  %v4967_v7 = vadd.f32 %v4955_v4, %v9307_v59  ;;  %v7188_v8 = vpop.f32.mrb[63].mxu1  ;;  %v5041_v10 = vsel %vm4554_vm2, %v5038_v25, %v5040_v62  ;;  %v9376_v18 = vsel %vm4820_vm3, %v5290_v40, %v5292_v56  ;;  %v5001_v59 = vld [vmem:[#allocation4 + $0x70] sm:$0xff]  ;;  %v5484_v55 = vld [vmem:[#allocation6 + $0x58] sm:$0xff] }
 0x413   : > { %7228 = vmatmul.mubr.f32.gmra.mrb[68].mxu1 %v5041_v10  ;;  %v7453_v42 = vpack.c.bf16 %v5002_v6, %v5001_v59  ;;  %v5279_v25 = vld [vmem:[#allocation4 + $0x170] sm:$0xff]  ;;  %v5485_v8 = vld [vmem:[#allocation6 + $0x60] sm:$0xff] }
 0x414   : > { %v4976_v23 = vadd.f32 %v4967_v7, %v9312_v27  ;;  %7444 = vmatpush3.bf16.msra.mxu1 %v7441_v60  ;;  %v5042_v26 = vrot.slane %v4984_v41, 1  ;;  %v5294_v28 = vrot.slane %v4984_v41, 2  ;;  %v5487_v10 = vld [vmem:[#allocation6 + $0x70] sm:$0xff]  ;;  %v5493_v6 = vld [vmem:[#allocation6 + $0xa0] sm:$0xff] }
 0x415   : > { %7446 = vmatprep.subr.bf16.mxu1 %v7445_v5  ;;  %v7503_v12 = vpack.c.bf16 %v5487_v10, %v5485_v8  ;;  %v5601_v9 = vld [vmem:[#allocation7 + $0x50] sm:$0xff] }
 0x416   : > { %v4985_v31 = vmax.f32 %v4976_v23, 0.0  ;;  %v5043_v32 = vsel %vm4554_vm2, %v5040_v62, %v5042_v26  ;;  %v9381_v34 = vsel %vm4820_vm3, %v5292_v56, %v5294_v28  ;;  %v5483_v56 = vld [vmem:[#allocation6 + $0x50] sm:$0xff] }
 0x417   : > { %7230 = vmatprep.mubr.f32.mxu1 %v5043_v32  ;;  %v5496_v32 = vld [vmem:[#allocation6 + $0xb8] sm:$0xff] }
 0x418   : > { %v5044_v61 = vrot.slane %v4985_v31, 1  ;;  %v5296_v39 = vrot.slane %v4985_v31, 2  ;;  %7448 = vmatpush3.bf16.msra.mxu1 %v7445_v5  ;;  %v5486_v5 = vld [vmem:[#allocation6 + $0x68] sm:$0xff] }
 0x419   : > { %7450 = vmatprep.subr.bf16.mxu1 %v7449_v29  ;;  %v5494_v31 = vld [vmem:[#allocation6 + $0xa8] sm:$0xff] }
 0x41a   : > { %v5045_v27 = vsel %vm4554_vm2, %v5042_v26, %v5044_v61  ;;  %v5297_v50 = vsel %vm4820_vm3, %v5294_v28, %v5296_v39  ;;  %v5489_v26 = vld [vmem:[#allocation6 + $0x80] sm:$0xff]  ;;  %v5491_v28 = vld [vmem:[#allocation6 + $0x90] sm:$0xff]  ;;  %v7509_v59 = vpack.c.bf16 %v5496_v32, %v5494_v31  ;;  %v5498_v39 = vld [vmem:[#allocation6 + $0xc8] sm:$0xff] }
 0x41b   : > { %7231 = vmatmul.mubr.f32.gmra.mrb[70].mxu1 %v5045_v27  ;;  %v5591_v32 = vld [vmem:[#allocation7] sm:$0xff] }
 0x41c   : > { %7452 = vmatpush3.bf16.msra.mxu1 %v7449_v29  ;;  %7265 = vmatprep.mubr.f32.mxu1 %v9315_v51  ;;  %v7469_v51 = vpack.c.bf16 %v5272_v45, %v5271_v20  ;;  %v7507_v29 = vpack.c.bf16 %v5491_v28, %v5489_v26  ;;  %v5594_v20 = vld [vmem:[#allocation7 + $0x18] sm:$0xff] }
 0x41d   : > { %7454 = vmatprep.subr.bf16.mxu1 %v7453_v42 }
 0x420   : > { %7456 = vmatpush3.bf16.msra.mxu1 %v7453_v42  ;;  %v5500_v42 = vld [vmem:[#allocation6 + $0xd8] sm:$0xff] }
 0x421   : > { %7458 = vmatprep.subr.bf16.mxu1 %v7457_v58  ;;  %v7513_v27 = vpack.c.bf16 %v5500_v42, %v5498_v39 }
 0x423   : > { %7266 = vmatmul.mubr.f32.vlgmr.msra.gmra.mrb[64].mxu1 %v9318_v47  ;;  %v7473_v47 = vpack.c.bf16 %v5274_v21, %v5273_v24 }
 0x424   : > { %7268 = vmatprep.mubr.f32.mxu1 %v9325_v57  ;;  %7460 = vmatpush3.bf16.msra.mxu1 %v7457_v58  ;;  %v5275_v57 = vld [vmem:[#allocation4 + $0x150] sm:$0xff]  ;;  %v5502_v58 = vld [vmem:[#allocation6 + $0xe8] sm:$0xff] }
 0x425   : > { %7462 = vmatprep.subr.bf16.mxu1 %v7461_v46 }
 0x427   : > { %7269 = vmatmul.mubr.f32.gmra.mrb[66].mxu1 %v9334_v19  ;;  %v7477_v19 = vpack.c.bf16 %v5276_v22, %v5275_v57 }
 0x428   : > { %7271 = vmatprep.mubr.f32.mxu1 %v9344_v43  ;;  %7464 = vmatpush3.bf16.msra.mxu1 %v7461_v46  ;;  %v5277_v43 = vld [vmem:[#allocation4 + $0x160] sm:$0xff]  ;;  %v7517_v46 = vpack.c.bf16 %v5504_v63, %v5502_v58  ;;  %v5602_v58 = vld [vmem:[#allocation7 + $0x58] sm:$0xff] }
 0x429   : > { %7466 = vmatprep.subr.bf16.mxu1 %v7465_v30  ;;  %v7481_v14 = vpack.c.bf16 %v5278_v49, %v5277_v43 }
 0x42b   : > { %7272 = vmatmul.mubr.f32.gmra.mrb[72].mxu1 %v9353_v16  ;;  %v5280_v16 = vld [vmem:[#allocation4 + $0x178] sm:$0xff] }
 0x42c   : > { %7274 = vmatprep.mubr.f32.mxu1 %v9363_v54  ;;  %7468 = vmatpush3.bf16.msra.mxu1 %v7465_v30  ;;  %v7485_v40 = vpack.c.bf16 %v5280_v16, %v5279_v25  ;;  %v5473_v54 = vld [vmem:[#allocation6] sm:$0xff]  ;;  %v5592_v30 = vld [vmem:[#allocation7 + $0x8] sm:$0xff]  ;;  %v5435_v16 = vlaneseq }
 0x42d   : > { %7470 = vmatprep.subr.bf16.mxu1 %v7469_v51  ;;  %v7491_v3 = vpack.c.bf16 %v5475_v2, %v5473_v54  ;;  %v7521_v45 = vpack.c.bf16 %v5594_v20, %v5592_v30  ;;  %v5606_v30 = vld [vmem:[#allocation7 + $0x78] sm:$0xff] }
 0x42e   : > { %v9403_v54 = vshrl.u32 %v5435_v16, 7 }
 0x42f   : > { %7275 = vmatmul.mubr.f32.gmra.mrb[74].mxu1 %v4984_v41  ;;  %v5488_v41 = vld [vmem:[#allocation6 + $0x78] sm:$0xff] }
 0x430   : > { %7472 = vmatpush3.bf16.msra.mxu1 %v7469_v51  ;;  %7309 = vmatprep.mubr.f32.mxu1 %v9329_v11  ;;  %v5474_v11 = vld [vmem:[#allocation6 + $0x8] sm:$0xff]  ;;  %v7501_v7 = vpack.c.bf16 %v5488_v41, %v5486_v5 }
 0x431   : > { %7474 = vmatprep.subr.bf16.mxu1 %v7473_v47  ;;  %v7489_v60 = vpack.c.bf16 %v5476_v36, %v5474_v11 }
 0x434   : > { %7476 = vmatpush3.bf16.msra.mxu1 %v7473_v47 }
 0x435   : > { %7478 = vmatprep.subr.bf16.mxu1 %v7477_v19 }
 0x438   : > { %7480 = vmatpush3.bf16.msra.mxu1 %v7477_v19 }
 0x439   : > { %7482 = vmatprep.subr.bf16.mxu1 %v7481_v14 }
 0x43c   : > { %7484 = vmatpush3.bf16.msra.mxu1 %v7481_v14 }
 0x43d   : > { %7486 = vmatprep.subr.bf16.mxu1 %v7485_v40 }
 0x440   : > { %7488 = vmatpush3.bf16.msra.mxu1 %v7485_v40  ;;  %v4986_v40 = vld [vmem:[%s9433_s6 + $0x2] ss:$0 sm:$0xff] }
 0x441   : > { %7490 = vmatprep.subr.bf16.mxu1 %v7489_v60 }
 0x443   : > { %7310 = vmatmul.mubr.f32.vlgmr.msra.gmra.mrb[64].mxu1 %v9338_v33  ;;  %v5478_v33 = vld [vmem:[#allocation6 + $0x28] sm:$0xff] }
 0x444   : > { %7312 = vmatprep.mubr.f32.mxu1 %v9348_v1  ;;  %7492 = vmatpush1.bf16.msra.mxu1 %v7491_v3  ;;  %v5480_v1 = vld [vmem:[#allocation6 + $0x38] sm:$0xff] }
 0x447   : > { %7313 = vmatmul.mubr.f32.gmra.mrb[66].mxu1 %v9358_v38  ;;  %v7493_v38 = vpack.c.bf16 %v5480_v1, %v5478_v33 }
 0x448   : > { %7315 = vmatprep.mubr.f32.mxu1 %v9368_v53  ;;  %v5482_v53 = vld [vmem:[#allocation6 + $0x48] sm:$0xff] }
 0x449   : > { %7494 = vmatprep.subr.bf16.mxu1 %v7493_v38  ;;  %v7497_v62 = vpack.c.bf16 %v5484_v55, %v5482_v53 }
 0x44a   : > { %7496 = vmatpush1.bf16.msra.mxu1 %v7495_v0  ;;  %v5440_v0 = vadd.s32 32, %v9403_v54 }
 0x44b   : > { %7316 = vmatmul.mubr.f32.gmra.mrb[76].mxu1 %v9376_v18  ;;  %7498 = vmatprep.subr.bf16.mxu1 %v7497_v62  ;;  %v5492_v18 = vld [vmem:[#allocation6 + $0x98] sm:$0xff] }
 0x44c   : > { %7318 = vmatprep.mubr.f32.mxu1 %v9381_v34  ;;  %v7505_v23 = vpack.c.bf16 %v5492_v18, %v5490_v17  ;;  %v5495_v34 = vld [vmem:[#allocation6 + $0xb0] sm:$0xff]  ;;  %vm5448_vm4 = vcmp.lt.s32.totalorder %v5440_v0, 36 }
 0x44d   : > { %v7511_v61 = vpack.c.bf16 %v5495_v34, %v5493_v6  ;;  %v5596_v6 = vld [vmem:[#allocation7 + $0x28] sm:$0xff]  ;;  %v5598_v34 = vld [vmem:[#allocation7 + $0x38] sm:$0xff] }
 0x44f   : > { %7319 = vmatmul.mubr.f32.gmra.mrb[78].mxu1 %v5297_v50  ;;  %v7515_v50 = vpack.c.bf16 %v5499_v44, %v5497_v13  ;;  %v5595_v13 = vld [vmem:[#allocation7 + $0x20] sm:$0xff]  ;;  %v5597_v44 = vld [vmem:[#allocation7 + $0x30] sm:$0xff] }
 0x450   : > { %5582 = vmatprep.mubr.f32.mxu1 %v8038_v37  ;;  %v5481_v37 = vld [vmem:[#allocation6 + $0x40] sm:$0xff]  ;;  %v7527_v63 = vpack.c.bf16 %v5597_v44, %v5595_v13  ;;  %v5642_v13 = vld [vmem:[#allocation7 + $0x198] sm:$0xff] }
 0x451   : > { %v7499_v4 = vpack.c.bf16 %v5483_v56, %v5481_v37 }
 0x453   : > { %7500 = vmatpush1.bf16.msra.mxu1 %v7499_v4 }
 0x454   : > { %7502 = vmatprep.subr.bf16.mxu1 %v7501_v7 }
 0x457   : > { %7504 = vmatpush1.bf16.msra.mxu1 %v7503_v12 }
 0x458   : > { %7506 = vmatprep.subr.bf16.mxu1 %v7505_v23 }
 0x45b   : > { %7508 = vmatpush1.bf16.msra.mxu1 %v7507_v29 }
 0x45c   : > { %7510 = vmatprep.subr.bf16.mxu1 %v7509_v59  ;;  %v5593_v59 = vld [vmem:[#allocation7 + $0x10] sm:$0xff] }
 0x45d   : > { %v7523_v39 = vpack.c.bf16 %v5593_v59, %v5591_v32  ;;  %v5633_v32 = vld [vmem:[#allocation7 + $0x150] sm:$0xff]  ;;  %v5636_v59 = vld [vmem:[#allocation7 + $0x168] sm:$0xff] }
 0x45f   : > { %7512 = vmatpush1.bf16.msra.mxu1 %v7511_v61 }
 0x460   : > { %7514 = vmatprep.subr.bf16.mxu1 %v7513_v27  ;;  %v7525_v27 = vpack.c.bf16 %v5598_v34, %v5596_v6  ;;  %v5638_v6 = vld [vmem:[#allocation7 + $0x178] sm:$0xff] }
 0x463   : > { %7516 = vmatpush1.bf16.msra.mxu1 %v7515_v50  ;;  %v5600_v50 = vld [vmem:[#allocation7 + $0x48] sm:$0xff] }
 0x464   : > { %7518 = vmatprep.subr.bf16.mxu1 %v7517_v46  ;;  %v7529_v15 = vpack.c.bf16 %v5602_v58, %v5600_v50  ;;  %v5599_v46 = vld [vmem:[#allocation7 + $0x40] sm:$0xff] }
 0x465   : > { %v7531_v20 = vpack.c.bf16 %v5601_v9, %v5599_v46  ;;  %v5639_v58 = vld [vmem:[#allocation7 + $0x180] sm:$0xff]  ;;  %v5646_v46 = vld [vmem:[#allocation7 + $0x1b8] sm:$0xff] }
 0x467   : > { %7520 = vmatpush1.bf16.msra.mxu1 %v7519_v52  ;;  %v5604_v52 = vld [vmem:[#allocation7 + $0x68] sm:$0xff] }
 0x468   : > { %7522 = vmatprep.subr.bf16.mxu1 %v7521_v45  ;;  %v7533_v45 = vpack.c.bf16 %v5606_v30, %v5604_v52  ;;  %v5643_v30 = vld [vmem:[#allocation7 + $0x1a0] sm:$0xff] }
 0x4e6   : > { %v7229_v51 = vpop.f32.mrb[68].mxu1 }
 0x4e7   : > { %v5140_v24 = vpop.f32.mrb[69].mxu1  ;;  %v5603_v51 = vld [vmem:[#allocation7 + $0x60] sm:$0xff] }
 0x4ee   : > { %v7232_v21 = vpop.f32.mrb[70].mxu1 }
 0x4ef   : > { %v5150_v47 = vpop.f32.mrb[71].mxu1  ;;  %v5608_v21 = vld [vmem:[#allocation7 + $0x88] sm:$0xff] }
 0x4f0   : > { %v5610_v47 = vld [vmem:[#allocation7 + $0x98] sm:$0xff] }
 0x4fe   : > { %v7273_v57 = vpop.f32.mrb[72].mxu1 }
 0x4ff   : > { %v5245_v22 = vpop.f32.mrb[73].mxu1 }
 0x500   : > { %v5246_v19 = vadd.f32 %v5245_v22, %v5140_v24  ;;  %v5605_v24 = vld [vmem:[#allocation7 + $0x70] sm:$0xff]  ;;  %v7537_v22 = vpack.c.bf16 %v5610_v47, %v5608_v21  ;;  %v5647_v47 = vld [vmem:[#allocation7 + $0x1c0] sm:$0xff] }
 0x501   : > { %v7535_v57 = vpack.c.bf16 %v5605_v24, %v5603_v51  ;;  %v5650_v51 = vld [vmem:[#allocation7 + $0x1d8] sm:$0xff] }
 0x502   : > { %v7276_v43 = vpop.f32.mrb[74].mxu1 }
 0x503   : > { %v5255_v49 = vpop.f32.mrb[75].mxu1  ;;  %v5609_v43 = vld [vmem:[#allocation7 + $0x90] sm:$0xff] }
 0x504   : > { %v5612_v49 = vld [vmem:[#allocation7 + $0xa8] sm:$0xff] }
 0x516   : > { %v7311_v14 = vpop.f32.mrb[64].mxu1 }
 0x517   : > { %v5372_v25 = vpop.f32.mrb[65].mxu1  ;;  %v5420_v38 = vadd.f32 %v7311_v14, %v4986_v40  ;;  %v5614_v14 = vld [vmem:[#allocation7 + $0xb8] sm:$0xff] }
 0x518   : > { %v5419_v62 = vadd.f32 %v5372_v25, %v4986_v40  ;;  %v7541_v16 = vpack.c.bf16 %v5614_v14, %v5612_v49  ;;  %v5651_v14 = vld [vmem:[#allocation7 + $0x1e0] sm:$0xff] }
 0x519   : > { %v5428_v5 = vmax.f32 %v5420_v38, 0.0  ;;  %v5620_v38 = vld [vmem:[#allocation7 + $0xe8] sm:$0xff] }
 0x51a   : > { %v7314_v11 = vpop.f32.mrb[66].mxu1  ;;  %v5427_v8 = vmax.f32 %v5419_v62, 0.0  ;;  %v5624_v62 = vld [vmem:[#allocation7 + $0x108] sm:$0xff] }
 0x51b   : > { %v5422_v36 = vadd.f32 %v7314_v11, %v4986_v40  ;;  %v5382_v60 = vpop.f32.mrb[67].mxu1  ;;  %v5461_v12 = vmax.f32 %v5428_v5, 0.0  ;;  %v5613_v11 = vld [vmem:[#allocation7 + $0xb0] sm:$0xff]  ;;  %v5623_v5 = vld [vmem:[#allocation7 + $0x100] sm:$0xff] }
 0x51c   : > { %v5421_v2 = vadd.f32 %v5382_v60, %v4986_v40  ;;  %v5618_v60 = vld [vmem:[#allocation7 + $0xd8] sm:$0xff] }
 0x51d   : > { %v5430_v3 = vmax.f32 %v5422_v36, 0.0  ;;  %v5616_v36 = vld [vmem:[#allocation7 + $0xc8] sm:$0xff] }
 0x51e   : > { %v5429_v33 = vmax.f32 %v5421_v2, 0.0  ;;  %v7317_v1 = vpop.f32.mrb[76].mxu1 }
 0x51f   : > { %v5463_v48 = vmax.f32 %v5430_v3, 0.0  ;;  %v5392_v35 = vpop.f32.mrb[77].mxu1  ;;  %v7545_v3 = vpack.c.bf16 %v5618_v60, %v5616_v36  ;;  %v5617_v1 = vld [vmem:[#allocation7 + $0xd0] sm:$0xff]  ;;  %v5514_v36 = vsub.s32 1, %v9403_v54 }
 0x520   : > { %v5462_v53 = vmax.f32 %v5429_v33, 0.0  ;;  %v5415_v55 = vadd.f32 %v5392_v35, %v5246_v19  ;;  %v5607_v19 = vld [vmem:[#allocation7 + $0x80] sm:$0xff] }
 0x521   : > { %v7539_v25 = vpack.c.bf16 %v5609_v43, %v5607_v19  ;;  %v5615_v33 = vld [vmem:[#allocation7 + $0xc0] sm:$0xff]  ;;  %v5652_v19 = vld [vmem:[#allocation7 + $0x1e8] sm:$0xff]  ;;  %v5654_v43 = vld [vmem:[#allocation7 + $0x1f8] sm:$0xff] }
 0x522   : > { %v5465_v37 = vmax.f32 %v5462_v53, %v5463_v48  ;;  %v5423_v56 = vadd.f32 %v5415_v55, %v4986_v40  ;;  %v7320_v4 = vpop.f32.mrb[78].mxu1  ;;  %v5611_v40 = vld [vmem:[#allocation7 + $0xa0] sm:$0xff]  ;;  %v5622_v48 = vld [vmem:[#allocation7 + $0xf8] sm:$0xff]  ;;  %v7547_v35 = vpack.c.bf16 %v5617_v1, %v5615_v33  ;;  %v5621_v55 = vld [vmem:[#allocation7 + $0xf0] sm:$0xff]  ;;  %v7581_v49 = vpack.c.bf16 %v5654_v43, %v5652_v19 }
 0x523   : > { %v5402_v41 = vpop.f32.mrb[79].mxu1  ;;  %v7543_v2 = vpack.c.bf16 %v5613_v11, %v5611_v40  ;;  %v7549_v0 = vpack.c.bf16 %v5622_v48, %v5620_v38  ;;  %v5619_v53 = vld [vmem:[#allocation7 + $0xe0] sm:$0xff]  ;;  %v5510_v40 = vsub.s32 0, %v9403_v54 }
 0x524   : > { %v5431_v7 = vmax.f32 %v5423_v56, 0.0  ;;  %v7551_v56 = vpack.c.bf16 %v5621_v55, %v5619_v53  ;;  %v5625_v41 = vld [vmem:[#allocation7 + $0x110] sm:$0xff]  ;;  %v6160_v11 = vld [vmem:[%s9433_s6 + $0x3] ss:$8 sm:$0x3] }
 0x525   : > { %v5511_v60 = vrot.slane %v6160_v11, %v5510_v40  ;;  %v6162_v54 = vld [vmem:[%s9433_s6 + $0x5] ss:$8 sm:$0x3] }
 0x526   : > { %v5456_v10 = vsel %vm5448_vm4, %v5431_v7, 0.0  ;;  %v5628_v7 = vld [vmem:[#allocation7 + $0x128] sm:$0xff] }
 0x527   : > { %v5460_v17 = vmax.f32 %v5427_v8, %v5456_v10  ;;  %v5630_v8 = vld [vmem:[#allocation7 + $0x138] sm:$0xff]  ;;  %v7555_v10 = vpack.c.bf16 %v5625_v41, %v5623_v5  ;;  %v5751_v41 = vrot.slane %v6162_v54, %v5514_v36 }
 0x529   : > { %v5464_v18 = vmax.f32 %v5460_v17, %v5461_v12  ;;  %v7557_v12 = vpack.c.bf16 %v5630_v8, %v5628_v7  ;;  %v5627_v17 = vld [vmem:[#allocation7 + $0x120] sm:$0xff] }
 0x52b   : > { %v5466_v23 = vmax.f32 %v5464_v18, %v5465_v37  ;;  %v5626_v37 = vld [vmem:[#allocation7 + $0x118] sm:$0xff]  ;;  %v5629_v18 = vld [vmem:[#allocation7 + $0x130] sm:$0xff] }
 0x52c   : > { %v7553_v4 = vpack.c.bf16 %v5626_v37, %v5624_v62 }
 0x52d   : > { %v5467_v26 = vrot.slane %v5466_v23, 4 }
 0x52f   : > { %v5468_v28 = vmax.f32 %v5466_v23, %v5467_v26  ;;  %v5632_v23 = vld [vmem:[#allocation7 + $0x148] sm:$0xff]  ;;  %v5634_v26 = vld [vmem:[#allocation7 + $0x158] sm:$0xff] }
 0x531   : > { %v5469_v29 = vrot.slane %v5468_v28, 2 }
 0x533   : > { %v5470_v31 = vmax.f32 %v5468_v28, %v5469_v29  ;;  %v7559_v28 = vpack.c.bf16 %v5629_v18, %v5627_v17  ;;  %v7561_v29 = vpack.c.bf16 %v5634_v26, %v5632_v23  ;;  %v8039_v26 = vmov 0  }
 0x534   : > { %7891 = vset.pattern.permute.xlu0 %v8039_v26 }
 0x535   : > { %v5471_v61 = vrot.slane %v5470_v31, 1 }
 0x537   : > { %v5472_v42 = vmax.f32 %v5470_v31, %v5471_v61  ;;  %v5631_v31 = vld [vmem:[#allocation7 + $0x140] sm:$0xff]  ;;  %v7565_v61 = vpack.c.bf16 %v5638_v6, %v5636_v59 }
 0x538   : > { %v7563_v34 = vpack.c.bf16 %v5633_v32, %v5631_v31 }
 0x539   : > { %5583 = vmatmul.mubr.f32.vlgmr.msra.gmra.mrb[80].mxu1 %v5472_v42  ;;  %v5637_v42 = vld [vmem:[#allocation7 + $0x170] sm:$0xff] }
 0x53a   : > { %7524 = vmatpush1.bf16.msra.mxu1 %v7523_v39  ;;  %v5635_v39 = vld [vmem:[#allocation7 + $0x160] sm:$0xff] }
 0x53b   : > { %7526 = vmatprep.subr.bf16.mxu1 %v7525_v27  ;;  %v5640_v27 = vld [vmem:[#allocation7 + $0x188] sm:$0xff]  ;;  %v7567_v44 = vpack.c.bf16 %v5637_v42, %v5635_v39 }
 0x53c   : > { %v7569_v50 = vpack.c.bf16 %v5642_v13, %v5640_v27 }
 0x53e   : > { %7528 = vmatpush1.bf16.msra.mxu1 %v7527_v63  ;;  %v5641_v63 = vld [vmem:[#allocation7 + $0x190] sm:$0xff] }
 0x53f   : > { %7530 = vmatprep.subr.bf16.mxu1 %v7529_v15  ;;  %v5644_v15 = vld [vmem:[#allocation7 + $0x1a8] sm:$0xff]  ;;  %v7571_v9 = vpack.c.bf16 %v5641_v63, %v5639_v58 }
 0x540   : > { %v7573_v52 = vpack.c.bf16 %v5646_v46, %v5644_v15 }
 0x542   : > { %7532 = vmatpush1.bf16.msra.mxu1 %v7531_v20  ;;  %v5645_v20 = vld [vmem:[#allocation7 + $0x1b0] sm:$0xff] }
 0x543   : > { %7534 = vmatprep.subr.bf16.mxu1 %v7533_v45  ;;  %v5648_v45 = vld [vmem:[#allocation7 + $0x1c8] sm:$0xff]  ;;  %v7575_v24 = vpack.c.bf16 %v5645_v20, %v5643_v30 }
 0x544   : > { %v7577_v21 = vpack.c.bf16 %v5650_v51, %v5648_v45 }
 0x546   : > { %7536 = vmatpush1.bf16.msra.mxu1 %v7535_v57  ;;  %v5649_v57 = vld [vmem:[#allocation7 + $0x1d0] sm:$0xff] }
 0x547   : > { %7538 = vmatprep.subr.bf16.mxu1 %v7537_v22  ;;  %v7579_v22 = vpack.c.bf16 %v5649_v57, %v5647_v47 }
 0x54a   : > { %7540 = vmatpush1.bf16.msra.mxu1 %v7539_v25  ;;  %v5653_v25 = vld [vmem:[#allocation7 + $0x1f0] sm:$0xff] }
 0x54b   : > { %7542 = vmatprep.subr.bf16.mxu1 %v7541_v16  ;;  %v7583_v16 = vpack.c.bf16 %v5653_v25, %v5651_v14 }
 0x54e   : > { %7544 = vmatpush1.bf16.msra.mxu1 %v7543_v2  ;;  %v5515_v2 = vrot.slane %v6160_v11, %v5514_v36 }
 0x54f   : > { %7546 = vmatprep.subr.bf16.mxu1 %v7545_v3 }
 0x552   : > { %7548 = vmatpush1.bf16.msra.mxu1 %v7547_v35 }
 0x553   : > { %7550 = vmatprep.subr.bf16.mxu1 %v7549_v0  ;;  %v6161_v0 = vld [vmem:[%s9433_s6 + $0x4] ss:$8 sm:$0x3] }
 0x554   : > { %v5661_v53 = vrot.slane %v6161_v0, %v5510_v40  ;;  %v5665_v55 = vrot.slane %v6161_v0, %v5514_v36 }
 0x556   : > { %7552 = vmatpush1.bf16.msra.mxu1 %v7551_v56 }
 0x557   : > { %7554 = vmatprep.subr.bf16.mxu1 %v7553_v4  ;;  %v5747_v4 = vrot.slane %v6162_v54, %v5510_v40 }
 0x55a   : > { %7556 = vmatpush1.bf16.msra.mxu1 %v7555_v10 }
 0x55b   : > { %7558 = vmatprep.subr.bf16.mxu1 %v7557_v12 }
 0x55e   : > { %7560 = vmatpush1.bf16.msra.mxu1 %v7559_v28  ;;  %v5762_v28 = vld [vmem:[%s9433_s6 + $0x6] ss:$0 sm:$0xff] }
 0x55f   : > { %7562 = vmatprep.subr.bf16.mxu1 %v7561_v29 }
 0x562   : > { %7564 = vmatpush1.bf16.msra.mxu1 %v7563_v34 }
 0x563   : > { %7566 = vmatprep.subr.bf16.mxu1 %v7565_v61 }
 0x566   : > { %7568 = vmatpush1.bf16.msra.mxu1 %v7567_v44 }
 0x567   : > { %7570 = vmatprep.subr.bf16.mxu1 %v7569_v50 }
 0x56a   : > { %7572 = vmatpush1.bf16.msra.mxu1 %v7571_v9 }
 0x56b   : > { %7574 = vmatprep.subr.bf16.mxu1 %v7573_v52 }
 0x56e   : > { %7576 = vmatpush1.bf16.msra.mxu1 %v7575_v24 }
 0x56f   : > { %7578 = vmatprep.subr.bf16.mxu1 %v7577_v21 }
 0x572   : > { %7580 = vmatpush1.bf16.msra.mxu1 %v7579_v22 }
 0x573   : > { %7582 = vmatprep.subr.bf16.mxu1 %v7581_v49 }
 0x576   : > { %7584 = vmatpush1.bf16.msra.mxu1 %v7583_v16 }
 0x60c   : > { %v5584_v3 = vpop.f32.mrb[80].mxu1 }
 0x60d   : > { %v5585_v33 = vadd.f32 %v5584_v3, %v5511_v60  ;;  %v5586_v1 = vpop.f32.mrb[81].mxu1 }
 0x60e   : > { %v5587_v38 = vadd.f32 %v5586_v1, %v5515_v2 }
 0x60f   : > { %v5589_v35 = vmax.f32 %v5585_v33, 0.0 }
 0x610   : > { %v5590_v48 = vmax.f32 %v5587_v38, 0.0 }
 0x612   : > { %5732 = vmatprep.mubr.f32.mxu1 %v5590_v48 }
 0x613   : > { %5733 = vmatmul.mubr.f32.vlgmr.msra.gmra.mrb[82].mxu1 %v5589_v35 }
 0x6e6   : > { %v5734_v62 = vpop.f32.mrb[82].mxu1 }
 0x6e7   : > { %v5735_v37 = vadd.f32 %v5734_v62, %v5661_v53  ;;  %v5736_v56 = vpop.f32.mrb[83].mxu1 }
 0x6e8   : > { %v5737_v5 = vadd.f32 %v5736_v56, %v5665_v55 }
 0x6e9   : > { %v5739_v7 = vmax.f32 %v5735_v37, 0.0 }
 0x6ea   : > { %v5740_v8 = vmax.f32 %v5737_v5, 0.0 }
 0x6eb   : > { %v5754_v10 = vmul.f32 %v5747_v4, %v5739_v7 }
 0x6ec   : > { %v5755_v12 = vmul.f32 %v5751_v41, %v5740_v8 }
 0x6ed   : > { %v5757_v17 = vsel %vm5756_vm5, %v5754_v10, 0.0 }
 0x6ee   : > { %v5758_v18 = vsel %vm5756_vm5, %v5755_v12, 0.0 }
 0x6ef   : > { %v5759_v23 = vadd.f32 %v5758_v18, %v5757_v17 }
 0x6f1   : > { %5760 = vadd.xlane.f32.xlu0 %v5759_v23 }
 0x77e   : > { %v5761_v29 = vpop.xlane.xlu0 %5760 }
 0x77f   : > { %v5763_v31 = vadd.f32 %v5762_v28, %v5761_v29 }
 0x781   : > { %v5764_v32 = vsub.f32 0.0, %v5763_v31 }
 0x783   : > { %v5765_v59 = vmul.f32 1.442695, %v5764_v32 }
 0x785   : > { %7892 = vpow2.f32 %v5765_v59 }
 0x78f   : > { %v7893_v6 = vpop.eup %7892 }
 0x790   : > { %v5767_v34 = vadd.f32 1.0, %v7893_v6 }
 0x792   : > { %7894 = vrcp.f32 %v5767_v34 }
 0x79c   : > { %v7895_v61 = vpop.eup %7894 }
 0x79d   : > { %5772 = vperm.xlu0 %7891, %v7895_v61  }
 0x81c   : > { %v5773_v39 = vpop.permute.xlu0 %5772 }
 0x81d   : > { %5775 = vst [vmem:[%s333_s28] sm:$0x1] %v5773_v39 }
 0x81e PF: > { %s20_s24 = sadd.s32 1, %s8026_s24  }
 0x81f   : > { %p17_p6 = scmp.ge.s32.totalorder %s20_s24, 4  }
 0x821   :  { %19 = sbr.rel (!%p17_p6) target bundleno = 3 (0x3), region = 126 }
 0x828   :  { %5793 = vsyncpa [#allocation3], 1 }
 0x829   :  { %5795 = vsyncpa [#allocation3 + $0x1], 1 }
 0x82a   :  { %5796 = vsyncpa [#allocation5], 1 }
 0x82b   :  { %5797 = vsyncpa [#allocation8], 1 }

</bundles_post_ra>
